<compile_context>
chip_gen: v5e
topology: v5e:2x2
jax: 0.10.0
libtpu: 0.0.40
codegen_flags: <defaults>
</compile_context>

<pallas_src>
import jax
import jax.numpy as jnp
from jax.experimental import pallas as pl
from jax.experimental.pallas import tpu as pltpu

# ----- small, deterministic "config" ------------------------------------------------
D_ENC_T = 16          # text_encoder.encoder_hidden
D_ENC_R = 8           # residual_encoder.bottleneck_size
SPK = 8               # speaker_embed_size
D_IN = D_ENC_T + D_ENC_R + SPK      # 32
D_PRED = 32           # duration_predictor.predictor_hidden
N_LAYERS = 2          # duration_predictor.conv_layer
N_HEAD = 4            # duration_predictor.conv_head
KERNEL = 3            # duration_predictor.conv_kernel_size (odd -> 'same' padding)
LN_EPS = 1e-5


def _layer_norm(x, g, b):
    mu = jnp.mean(x, axis=-1, keepdims=True)
    var = jnp.mean(jnp.square(x - mu), axis=-1, keepdims=True)
    return (x - mu) * jax.lax.rsqrt(var + LN_EPS) * g + b


def _softplus(x):
    # numerically stable softplus: max(x,0) + log(1 + exp(-|x|))
    return jnp.maximum(x, 0.0) + jnp.log(1.0 + jnp.exp(-jnp.abs(x)))


def _sigmoid(x):
    # tanh identity: routes the transcendental to the EUP slot and avoids exp(-x) overflow.
    return 0.5 * jnp.tanh(0.5 * x) + 0.5


def duration_predictor_kernel(
    x_ref, mask_ref,
    w0_ref, glu_w_ref, glu_b_ref, conv_w_ref,
    fc1_w_ref, fc1_b_ref, fc2_w_ref, fc2_b_ref,
    ln_g_ref, ln_b_ref, proj_wt_ref,
    dur_ref, v_ref,
):
    Bb, T, Din = x_ref.shape
    D = v_ref.shape[2]
    L = glu_w_ref.shape[0]
    K = conv_w_ref.shape[1]
    p = K // 2            # odd kernel -> centered 'same' padding
    N = Bb * T

    # ---------- hoisted, layer-invariant masks (built once per grid step) ----------
    # padding keep: mask arrives lane-dense (Bb, T); one small XLU transpose puts T on
    # the sublane axis, then each batch column is lane-broadcast to D and the pieces
    # are concatenated into the (N, D) multiplier reused at every masking site.
    keep_bt = 1.0 - mask_ref[...]                                    # (Bb, T), 1.0 = valid
    keep_tb = keep_bt.T                                              # (T, Bb)
    keep_nd = jnp.concatenate(
        [jnp.broadcast_to(keep_tb[:, b:b + 1], (T, D)) for b in range(Bb)], axis=0)

    # per-tap conv boundary masks from an in-kernel iota (replaces the old (K, N, 1)
    # `valid` input, which padded 128x in VMEM).
    t_in_seq = jax.lax.broadcasted_iota(jnp.int32, (Bb, T, D), 1).reshape(N, D)
    tap_valid = {}
    for k in range(K):
        s = k - p
        if s != 0:
            tap_valid[k] = ((t_in_seq + s >= 0) & (t_in_seq + s < T)).astype(jnp.float32)

    # ---------- fused input_linear + layer-0 act_linear ----------
    # w0 = [w_in | w_in @ glu_w[0]] (host precomputed): one (N, Din) @ (Din, 3D) bf16
    # matmul yields layer-0's residual v and its GLU pre-activation in one MXU launch.
    x = x_ref[...].reshape(N, Din)                                   # bf16
    y = jnp.dot(x, w0_ref[...], preferred_element_type=jnp.float32)  # (N, 3D) f32
    v = y[:, :D]
    ab = y[:, D:] + glu_b_ref[0]

    for l in range(L):
        # ===================== LConvBlock l =====================
        if l > 0:
            ab = jnp.dot(v.astype(jnp.bfloat16), glu_w_ref[l],
                         preferred_element_type=jnp.float32) + glu_b_ref[l]
        residual = v
        g = ab[:, :D] * _sigmoid(ab[:, D:])                          # torch GLU(dim=-1)
        g = g * keep_nd                                              # masked_fill before conv

        # LightweightConv: per-head tap softmax + head->channel expansion done on host;
        # conv realized as XLU rolls of the flattened block.  tap_valid zeroes every
        # position whose source would cross a sequence boundary, which makes the
        # flattened roll exactly equivalent to per-sequence zero-padded 'same' conv.
        # TODO(synk): weight_dropout / conv_dropout are inference-time no-ops (eval mode).
        w_sm = conv_w_ref[l]                                         # (K, D) f32, softmaxed
        conv = g * w_sm[p:p + 1, :]                                  # center tap (always valid)
        for k in range(K):
            if k == p:
                continue
            s = k - p
            rolled = pltpu.roll(g, shift=(-s) % N, axis=0)           # rolled[i] = g[i + s]
            conv = conv + (rolled * tap_valid[k]) * w_sm[k:k + 1, :]

        v = _layer_norm(residual + conv, ln_g_ref[l], ln_b_ref[l])

        # feed-forward sub-block: relu(fc1) -> fc2, residual, layer_norm
        residual = v
        h = jnp.maximum(
            jnp.dot(v.astype(jnp.bfloat16), fc1_w_ref[l],
                    preferred_element_type=jnp.float32) + fc1_b_ref[l], 0.0)
        h = jnp.dot(h.astype(jnp.bfloat16), fc2_w_ref[l],
                    preferred_element_type=jnp.float32) + fc2_b_ref[l]
        # NOTE: the reference LConvBlock re-uses one nn.LayerNorm for both sub-blocks,
        # so the same (ln_g, ln_b) pair is intentionally applied twice per layer.
        v = _layer_norm(residual + h, ln_g_ref[l], ln_b_ref[l])
        v = v * keep_nd                                              # mask the block output

    # ---------- outputs ----------
    v3 = v.reshape(Bb, T, D)
    # TODO(synk): a (Bb, T*D) lane-dense V slab would avoid 32-lane masked stores, but the
    # required minor-dim reshape is a relayout; kept 3-D until its cost is verified.
    v_ref[...] = v3.astype(v_ref.dtype)

    # projection (bias=False) + softplus + masking: VPU multiply + lane reduction with a
    # lane-dense (Bb, T) store (no (T,32)@(32,1) matmul, no (Bb,T,1) narrow store).
    d = _softplus(jnp.sum(v3 * proj_wt_ref[...], axis=-1))           # (Bb, T)
    dur_ref[...] = (d * keep_bt).astype(dur_ref.dtype)


def _pick_batch_block(B):
    # Prefer >= 2 grid programs (DMA/compute overlap + 2-TC sharding on v7x) while
    # keeping the 2-D (Bb, T) blocks sublane-aligned: Bb % 8 == 0, or Bb == B.
    for bb in (8, 16, 32, 64):
        if B % bb == 0 and B // bb >= 2:
            return bb
    # TODO(synk): for batches too small to split (B < 16) with long T, add a T grid
    # axis with a +/-1 halo so the conv taps stay correct across tile edges.
    return B


def duration_predictor(x, mask, params, *, batch_block=None):
    """x: (B, T, D_IN); mask: (B, T) or (B, T, 1) float (1.0 = padded position).

    Returns (duration (B, T) f32, V (B, T, D) f32).
    """
    B, T, Din = x.shape
    D = params["ln_g"].shape[-1]

    if mask.ndim == 3:
        mask = mask[..., 0]
    mask = mask.astype(jnp.float32)               # lane-dense (B, T): no 128x VMEM pad
    x = x.astype(jnp.bfloat16)                    # MXU-native matmul operand dtype

    Bb = _pick_batch_block(B) if batch_block is None else batch_block
    assert B % Bb == 0

    ordered = [params[k] for k in (
        "w0", "glu_w", "glu_b", "conv_w_sm", "fc1_w", "fc1_b", "fc2_w", "fc2_b",
        "ln_g", "ln_b", "proj_wt")]

    # Grid-invariant weights: full-array blocks.  They total < 100 KB, so default
    # double-buffering is harmless (pl.Buffered(1) left out for lowering robustness).
    def full_spec(a):
        nd = a.ndim
        return pl.BlockSpec(a.shape, lambda bb_, _nd=nd: (0,) * _nd)

    in_specs = [
        pl.BlockSpec((Bb, T, Din), lambda bb_: (bb_, 0, 0)),
        pl.BlockSpec((Bb, T), lambda bb_: (bb_, 0)),
    ] + [full_spec(a) for a in ordered]

    out_specs = [
        pl.BlockSpec((Bb, T), lambda bb_: (bb_, 0)),          # duration, lane-dense
        pl.BlockSpec((Bb, T, D), lambda bb_: (bb_, 0, 0)),    # V
    ]
    out_shape = [
        jax.ShapeDtypeStruct((B, T), jnp.float32),
        jax.ShapeDtypeStruct((B, T, D), jnp.float32),
    ]

    dur, V = pl.pallas_call(
        duration_predictor_kernel,
        out_shape=out_shape,
        grid_spec=pltpu.PrefetchScalarGridSpec(
            num_scalar_prefetch=0,
            grid=(B // Bb,),
            in_specs=in_specs,
            out_specs=out_specs,
        ),
        compiler_params=pltpu.CompilerParams(
            dimension_semantics=("parallel",),
            vmem_limit_bytes=32 * 1024 * 1024,
        ),
    )(x, mask, *ordered)
    return dur, V


# ---------------------------------------------------------------------------
# Parameters: raw (PyTorch-shaped-ish) init + host-side preparation
# ---------------------------------------------------------------------------
def init_params(key):
    ks = jax.random.split(key, 8)

    def xavier(k, shape):
        fin, fout = shape[-2], shape[-1]
        lim = (6.0 / (fin + fout)) ** 0.5
        return jax.random.uniform(k, shape, jnp.float32, -lim, lim)

    L, D, K, H = N_LAYERS, D_PRED, KERNEL, N_HEAD
    return dict(
        w_in=xavier(ks[0], (D_IN, D)),                 # input_linear (bias=False)
        act_w_a=xavier(ks[1], (L, D, D)),              # GLU value half
        act_w_b=xavier(ks[2], (L, D, D)),              # GLU gate half
        act_b_a=jnp.zeros((L, 1, D), jnp.float32),     # LinearNorm inits bias to 0
        act_b_b=jnp.zeros((L, 1, D), jnp.float32),
        conv_raw=jax.random.normal(ks[5], (L, H, K), jnp.float32) * 0.1,   # per-head taps
        fc1_w=xavier(ks[3], (L, D, 4 * D)),
        fc1_b=jnp.zeros((L, 1, 4 * D), jnp.float32),
        fc2_w=xavier(ks[4], (L, 4 * D, D)),
        fc2_b=jnp.zeros((L, 1, D), jnp.float32),
        ln_g=jnp.ones((L, 1, D), jnp.float32),
        ln_b=jnp.zeros((L, 1, D), jnp.float32),
        proj_w=xavier(ks[6], (D, 1)),                  # projection (bias=False)
    )


def prepare_params(p):
    """Host-side, batch/grid-invariant precompute: GLU weight fusion, input_linear folded
    into layer 0, tap softmax + head->channel expansion, bf16 matmul weights."""
    D = p["w_in"].shape[1]
    H = p["conv_raw"].shape[1]
    R = D // H
    # Fused GLU weight: value half first, gate half second == torch.nn.GLU(dim=-1) ordering.
    glu_w = jnp.concatenate([p["act_w_a"], p["act_w_b"]], axis=-1)        # (L, D, 2D)
    glu_b = jnp.concatenate([p["act_b_a"], p["act_b_b"]], axis=-1)        # (L, 1, 2D)
    # Lightweight-conv: softmax over taps per head, expand each head over its R channels.
    w_sm = jax.nn.softmax(p["conv_raw"], axis=-1)                          # (L, H, K)
    conv_w_sm = jnp.repeat(jnp.transpose(w_sm, (0, 2, 1)), R, axis=-1)     # (L, K, D)
    # Fold input_linear into layer 0: x @ w0 = [v | layer-0 GLU pre-activation].
    w0 = jnp.concatenate(
        [p["w_in"],
         jnp.dot(p["w_in"], glu_w[0], precision=jax.lax.Precision.HIGHEST)],
        axis=-1)                                                           # (Din, 3D)
    return dict(
        w0=w0.astype(jnp.bfloat16),
        glu_w=glu_w.astype(jnp.bfloat16), glu_b=glu_b,
        conv_w_sm=conv_w_sm,
        fc1_w=p["fc1_w"].astype(jnp.bfloat16), fc1_b=p["fc1_b"],
        fc2_w=p["fc2_w"].astype(jnp.bfloat16), fc2_b=p["fc2_b"],
        ln_g=p["ln_g"], ln_b=p["ln_b"],
        proj_wt=jnp.transpose(p["proj_w"]),                                # (1, D) f32
    )


# ---------------------------------------------------------------------------
# Pure-JAX reference (same math, same bf16 matmul operands) for a correctness check
# ---------------------------------------------------------------------------
def duration_predictor_ref(x, mask, p):
    B, T, _ = x.shape
    D = p["ln_g"].shape[-1]
    L = p["glu_w"].shape[0]
    K = p["conv_w_sm"].shape[1]
    pd = K // 2
    bf = jnp.bfloat16
    keep2 = 1.0 - mask
    keep = keep2[..., None]
    y = jnp.einsum("btc,cd->btd", x.astype(bf), p["w0"],
                   preferred_element_type=jnp.float32)
    v = y[..., :D]
    ab = y[..., D:] + p["glu_b"][0]
    for l in range(L):
        if l > 0:
            ab = jnp.einsum("btc,cd->btd", v.astype(bf), p["glu_w"][l],
                            preferred_element_type=jnp.float32) + p["glu_b"][l]
        res = v
        g = ab[..., :D] * _sigmoid(ab[..., D:])
        g = g * keep
        gp = jnp.pad(g, ((0, 0), (pd, pd), (0, 0)))
        conv = sum(gp[:, k:k + T, :] * p["conv_w_sm"][l][k] for k in range(K))
        v = _layer_norm(res + conv, p["ln_g"][l], p["ln_b"][l])
        res = v
        h = jnp.maximum(jnp.einsum("btc,cd->btd", v.astype(bf), p["fc1_w"][l],
                                   preferred_element_type=jnp.float32) + p["fc1_b"][l], 0.0)
        h = jnp.einsum("btc,cd->btd", h.astype(bf), p["fc2_w"][l],
                       preferred_element_type=jnp.float32) + p["fc2_b"][l]
        v = _layer_norm(res + h, p["ln_g"][l], p["ln_b"][l])
        v = v * keep
    d = _softplus(jnp.sum(v * p["proj_wt"][0], axis=-1)) * keep2
    return d, v


if __name__ == "__main__":
    B, T = 16, 16                     # B=16 -> Bb=8, grid=(2,): exercises the multi-program path
    root = jax.random.PRNGKey(0)
    kx, kp = jax.random.split(root)

    x = jax.random.normal(kx, (B, T, D_IN), jnp.float32)
    lengths = jnp.array([T - (i % 5) for i in range(B)], jnp.int32)
    mask = (jnp.arange(T)[None, :] >= lengths[:, None]).astype(jnp.float32)   # (B, T), 1 = pad

    params = prepare_params(init_params(kp))

    duration, V = jax.block_until_ready(duration_predictor(x, mask, params))
    assert duration.shape == (B, T) and V.shape == (B, T, D_PRED)

    d_ref, v_ref_arr = duration_predictor_ref(x, mask, params)
    assert jnp.allclose(duration, d_ref, atol=5e-3, rtol=5e-3), \
        float(jnp.max(jnp.abs(duration - d_ref)))
    assert jnp.allclose(V, v_ref_arr, atol=5e-3, rtol=5e-3), \
        float(jnp.max(jnp.abs(V - v_ref_arr)))

    print("KERNEL_OK")
</pallas_src>

<mosaic_0001>
module attributes {stable_mosaic.version = 11 : i64} {
  func.func @duration_predictor_kernel(%arg0: i32, %arg1: memref<8x16x32xbf16, #tpu.memory_space<vmem>>, %arg2: memref<8x16xf32, #tpu.memory_space<vmem>>, %arg3: memref<32x96xbf16, #tpu.memory_space<vmem>>, %arg4: memref<2x32x64xbf16, #tpu.memory_space<vmem>>, %arg5: memref<2x1x64xf32, #tpu.memory_space<vmem>>, %arg6: memref<2x3x32xf32, #tpu.memory_space<vmem>>, %arg7: memref<2x32x128xbf16, #tpu.memory_space<vmem>>, %arg8: memref<2x1x128xf32, #tpu.memory_space<vmem>>, %arg9: memref<2x128x32xbf16, #tpu.memory_space<vmem>>, %arg10: memref<2x1x32xf32, #tpu.memory_space<vmem>>, %arg11: memref<2x1x32xf32, #tpu.memory_space<vmem>>, %arg12: memref<2x1x32xf32, #tpu.memory_space<vmem>>, %arg13: memref<1x32xf32, #tpu.memory_space<vmem>>, %arg14: memref<8x16xf32, #tpu.memory_space<vmem>>, %arg15: memref<8x16x32xf32, #tpu.memory_space<vmem>>) attributes {dimension_semantics = [#tpu.dimension_semantics<parallel>], iteration_bounds = array<i64: 2>, scalar_prefetch = 0 : i64, scratch_operands = 0 : i64, tpu.core_type = #tpu.core_type<tc>, window_params = [{transform_indices = @transform_0, window_bounds = array<i64: 8, 16, 32>}, {transform_indices = @transform_1, window_bounds = array<i64: 8, 16>}, {pipeline_mode = #tpu.pipeline_mode<synchronous>, transform_indices = @transform_2, window_bounds = array<i64: 32, 96>}, {pipeline_mode = #tpu.pipeline_mode<synchronous>, transform_indices = @transform_3, window_bounds = array<i64: 2, 32, 64>}, {pipeline_mode = #tpu.pipeline_mode<synchronous>, transform_indices = @transform_4, window_bounds = array<i64: 2, 1, 64>}, {pipeline_mode = #tpu.pipeline_mode<synchronous>, transform_indices = @transform_5, window_bounds = array<i64: 2, 3, 32>}, {pipeline_mode = #tpu.pipeline_mode<synchronous>, transform_indices = @transform_6, window_bounds = array<i64: 2, 32, 128>}, {pipeline_mode = #tpu.pipeline_mode<synchronous>, transform_indices = @transform_7, window_bounds = array<i64: 2, 1, 128>}, {pipeline_mode = #tpu.pipeline_mode<synchronous>, transform_indices = @transform_8, window_bounds = array<i64: 2, 128, 32>}, {pipeline_mode = #tpu.pipeline_mode<synchronous>, transform_indices = @transform_9, window_bounds = array<i64: 2, 1, 32>}, {pipeline_mode = #tpu.pipeline_mode<synchronous>, transform_indices = @transform_10, window_bounds = array<i64: 2, 1, 32>}, {pipeline_mode = #tpu.pipeline_mode<synchronous>, transform_indices = @transform_11, window_bounds = array<i64: 2, 1, 32>}, {pipeline_mode = #tpu.pipeline_mode<synchronous>, transform_indices = @transform_12, window_bounds = array<i64: 1, 32>}, {transform_indices = @transform_13, window_bounds = array<i64: 8, 16>}, {transform_indices = @transform_14, window_bounds = array<i64: 8, 16, 32>}]} {
    %c0 = arith.constant 0 : index
    %c0_0 = arith.constant 0 : index
    %0 = vector.load %arg2[%c0, %c0_0] : memref<8x16xf32, #tpu.memory_space<vmem>>, vector<8x16xf32>
    %cst = arith.constant 1.000000e+00 : f32
    %1 = vector.broadcast %cst : f32 to vector<8x16xf32>
    %2 = arith.subf %1, %0 : vector<8x16xf32>
    %3 = tpu.transpose %2, [1, 0] : vector<8x16xf32> -> vector<16x8xf32>
    %4 = vector.extract_strided_slice %3 {offsets = [0, 0], sizes = [16, 1], strides = [1, 1]} : vector<16x8xf32> to vector<16x1xf32>
    %5 = vector.shape_cast %4 : vector<16x1xf32> to vector<16x1xf32>
    %6 = vector.broadcast %5 : vector<16x1xf32> to vector<16x32xf32>
    %7 = vector.extract_strided_slice %3 {offsets = [0, 1], sizes = [16, 1], strides = [1, 1]} : vector<16x8xf32> to vector<16x1xf32>
    %8 = vector.shape_cast %7 : vector<16x1xf32> to vector<16x1xf32>
    %9 = vector.broadcast %8 : vector<16x1xf32> to vector<16x32xf32>
    %10 = vector.extract_strided_slice %3 {offsets = [0, 2], sizes = [16, 1], strides = [1, 1]} : vector<16x8xf32> to vector<16x1xf32>
    %11 = vector.shape_cast %10 : vector<16x1xf32> to vector<16x1xf32>
    %12 = vector.broadcast %11 : vector<16x1xf32> to vector<16x32xf32>
    %13 = vector.extract_strided_slice %3 {offsets = [0, 3], sizes = [16, 1], strides = [1, 1]} : vector<16x8xf32> to vector<16x1xf32>
    %14 = vector.shape_cast %13 : vector<16x1xf32> to vector<16x1xf32>
    %15 = vector.broadcast %14 : vector<16x1xf32> to vector<16x32xf32>
    %16 = vector.extract_strided_slice %3 {offsets = [0, 4], sizes = [16, 1], strides = [1, 1]} : vector<16x8xf32> to vector<16x1xf32>
    %17 = vector.shape_cast %16 : vector<16x1xf32> to vector<16x1xf32>
    %18 = vector.broadcast %17 : vector<16x1xf32> to vector<16x32xf32>
    %19 = vector.extract_strided_slice %3 {offsets = [0, 5], sizes = [16, 1], strides = [1, 1]} : vector<16x8xf32> to vector<16x1xf32>
    %20 = vector.shape_cast %19 : vector<16x1xf32> to vector<16x1xf32>
    %21 = vector.broadcast %20 : vector<16x1xf32> to vector<16x32xf32>
    %22 = vector.extract_strided_slice %3 {offsets = [0, 6], sizes = [16, 1], strides = [1, 1]} : vector<16x8xf32> to vector<16x1xf32>
    %23 = vector.shape_cast %22 : vector<16x1xf32> to vector<16x1xf32>
    %24 = vector.broadcast %23 : vector<16x1xf32> to vector<16x32xf32>
    %25 = vector.extract_strided_slice %3 {offsets = [0, 7], sizes = [16, 1], strides = [1, 1]} : vector<16x8xf32> to vector<16x1xf32>
    %26 = vector.shape_cast %25 : vector<16x1xf32> to vector<16x1xf32>
    %27 = vector.broadcast %26 : vector<16x1xf32> to vector<16x32xf32>
    %28 = tpu.concatenate %6, %9, %12, %15, %18, %21, %24, %27 in 0 : vector<16x32xf32>, vector<16x32xf32>, vector<16x32xf32>, vector<16x32xf32>, vector<16x32xf32>, vector<16x32xf32>, vector<16x32xf32>, vector<16x32xf32> -> vector<128x32xf32>
    %29 = tpu.iota {dimensions = array<i32: 1>} : vector<8x16x32xi32>
    %30 = vector.shape_cast %29 : vector<8x16x32xi32> to vector<128x32xi32>
    %c-1_i32 = arith.constant -1 : i32
    %31 = vector.broadcast %c-1_i32 : i32 to vector<128x32xi32>
    %32 = arith.addi %30, %31 : vector<128x32xi32>
    %c0_i32 = arith.constant 0 : i32
    %33 = vector.broadcast %c0_i32 : i32 to vector<128x32xi32>
    %34 = arith.cmpi sge, %32, %33 : vector<128x32xi32>
    %c-1_i32_1 = arith.constant -1 : i32
    %35 = vector.broadcast %c-1_i32_1 : i32 to vector<128x32xi32>
    %36 = arith.addi %30, %35 : vector<128x32xi32>
    %c16_i32 = arith.constant 16 : i32
    %37 = vector.broadcast %c16_i32 : i32 to vector<128x32xi32>
    %38 = arith.cmpi slt, %36, %37 : vector<128x32xi32>
    %39 = arith.andi %34, %38 : vector<128x32xi1>
    %40 = arith.extui %39 : vector<128x32xi1> to vector<128x32xi32>
    %41 = arith.sitofp %40 : vector<128x32xi32> to vector<128x32xf32>
    %c1_i32 = arith.constant 1 : i32
    %42 = vector.broadcast %c1_i32 : i32 to vector<128x32xi32>
    %43 = arith.addi %30, %42 : vector<128x32xi32>
    %c0_i32_2 = arith.constant 0 : i32
    %44 = vector.broadcast %c0_i32_2 : i32 to vector<128x32xi32>
    %45 = arith.cmpi sge, %43, %44 : vector<128x32xi32>
    %c1_i32_3 = arith.constant 1 : i32
    %46 = vector.broadcast %c1_i32_3 : i32 to vector<128x32xi32>
    %47 = arith.addi %30, %46 : vector<128x32xi32>
    %c16_i32_4 = arith.constant 16 : i32
    %48 = vector.broadcast %c16_i32_4 : i32 to vector<128x32xi32>
    %49 = arith.cmpi slt, %47, %48 : vector<128x32xi32>
    %50 = arith.andi %45, %49 : vector<128x32xi1>
    %51 = arith.extui %50 : vector<128x32xi1> to vector<128x32xi32>
    %52 = arith.sitofp %51 : vector<128x32xi32> to vector<128x32xf32>
    %c0_5 = arith.constant 0 : index
    %c0_6 = arith.constant 0 : index
    %c0_7 = arith.constant 0 : index
    %53 = vector.load %arg1[%c0_5, %c0_6, %c0_7] : memref<8x16x32xbf16, #tpu.memory_space<vmem>>, vector<8x16x32xbf16>
    %54 = vector.shape_cast %53 : vector<8x16x32xbf16> to vector<128x32xbf16>
    %c0_8 = arith.constant 0 : index
    %c0_9 = arith.constant 0 : index
    %55 = vector.load %arg3[%c0_8, %c0_9] : memref<32x96xbf16, #tpu.memory_space<vmem>>, vector<32x96xbf16>
    %cst_10 = arith.constant dense<0.000000e+00> : vector<128x96xf32>
    %56 = tpu.matmul %54, %55, %cst_10 {dimension_numbers = #tpu.dot_dimension_numbers<[1], [0], [0], [1], [0, 0, 1, 1], [], []>} : vector<128x32xbf16>, vector<32x96xbf16>, vector<128x96xf32> -> vector<128x96xf32>
    %57 = vector.extract_strided_slice %56 {offsets = [0, 0], sizes = [128, 32], strides = [1, 1]} : vector<128x96xf32> to vector<128x32xf32>
    %58 = vector.extract_strided_slice %56 {offsets = [0, 32], sizes = [128, 64], strides = [1, 1]} : vector<128x96xf32> to vector<128x64xf32>
    %c0_11 = arith.constant 0 : index
    %c0_12 = arith.constant 0 : index
    %c0_13 = arith.constant 0 : index
    %59 = vector.load %arg5[%c0_11, %c0_12, %c0_13] : memref<2x1x64xf32, #tpu.memory_space<vmem>>, vector<1x1x64xf32>
    %60 = vector.shape_cast %59 : vector<1x1x64xf32> to vector<1x64xf32>
    %61 = vector.broadcast %60 : vector<1x64xf32> to vector<128x64xf32>
    %62 = arith.addf %58, %61 : vector<128x64xf32>
    %63 = vector.extract_strided_slice %62 {offsets = [0, 0], sizes = [128, 32], strides = [1, 1]} : vector<128x64xf32> to vector<128x32xf32>
    %64 = vector.extract_strided_slice %62 {offsets = [0, 32], sizes = [128, 32], strides = [1, 1]} : vector<128x64xf32> to vector<128x32xf32>
    %cst_14 = arith.constant 5.000000e-01 : f32
    %65 = vector.broadcast %cst_14 : f32 to vector<128x32xf32>
    %66 = arith.mulf %65, %64 : vector<128x32xf32>
    %67 = math.tanh %66 : vector<128x32xf32>
    %cst_15 = arith.constant 5.000000e-01 : f32
    %68 = vector.broadcast %cst_15 : f32 to vector<128x32xf32>
    %69 = arith.mulf %68, %67 : vector<128x32xf32>
    %cst_16 = arith.constant 5.000000e-01 : f32
    %70 = vector.broadcast %cst_16 : f32 to vector<128x32xf32>
    %71 = arith.addf %69, %70 : vector<128x32xf32>
    %72 = arith.mulf %63, %71 : vector<128x32xf32>
    %73 = arith.mulf %72, %28 : vector<128x32xf32>
    %c0_17 = arith.constant 0 : index
    %c0_18 = arith.constant 0 : index
    %c0_19 = arith.constant 0 : index
    %74 = vector.load %arg6[%c0_17, %c0_18, %c0_19] : memref<2x3x32xf32, #tpu.memory_space<vmem>>, vector<1x3x32xf32>
    %75 = vector.shape_cast %74 : vector<1x3x32xf32> to vector<3x32xf32>
    %76 = vector.extract_strided_slice %75 {offsets = [1, 0], sizes = [1, 32], strides = [1, 1]} : vector<3x32xf32> to vector<1x32xf32>
    %77 = vector.broadcast %76 : vector<1x32xf32> to vector<128x32xf32>
    %78 = arith.mulf %73, %77 : vector<128x32xf32>
    %c1_i32_20 = arith.constant 1 : i32
    %79 = tpu.dynamic_rotate %73 by %c1_i32_20 dim 0 : vector<128x32xf32>, i32 -> vector<128x32xf32>
    %80 = arith.mulf %79, %41 : vector<128x32xf32>
    %81 = vector.extract_strided_slice %75 {offsets = [0, 0], sizes = [1, 32], strides = [1, 1]} : vector<3x32xf32> to vector<1x32xf32>
    %82 = vector.broadcast %81 : vector<1x32xf32> to vector<128x32xf32>
    %83 = arith.mulf %80, %82 : vector<128x32xf32>
    %84 = arith.addf %78, %83 : vector<128x32xf32>
    %c127_i32 = arith.constant 127 : i32
    %85 = tpu.dynamic_rotate %73 by %c127_i32 dim 0 : vector<128x32xf32>, i32 -> vector<128x32xf32>
    %86 = arith.mulf %85, %52 : vector<128x32xf32>
    %87 = vector.extract_strided_slice %75 {offsets = [2, 0], sizes = [1, 32], strides = [1, 1]} : vector<3x32xf32> to vector<1x32xf32>
    %88 = vector.broadcast %87 : vector<1x32xf32> to vector<128x32xf32>
    %89 = arith.mulf %86, %88 : vector<128x32xf32>
    %90 = arith.addf %84, %89 : vector<128x32xf32>
    %91 = arith.addf %57, %90 : vector<128x32xf32>
    %c0_21 = arith.constant 0 : index
    %c0_22 = arith.constant 0 : index
    %c0_23 = arith.constant 0 : index
    %92 = vector.load %arg11[%c0_21, %c0_22, %c0_23] : memref<2x1x32xf32, #tpu.memory_space<vmem>>, vector<1x1x32xf32>
    %93 = vector.shape_cast %92 : vector<1x1x32xf32> to vector<1x32xf32>
    %c0_24 = arith.constant 0 : index
    %c0_25 = arith.constant 0 : index
    %c0_26 = arith.constant 0 : index
    %94 = vector.load %arg12[%c0_24, %c0_25, %c0_26] : memref<2x1x32xf32, #tpu.memory_space<vmem>>, vector<1x1x32xf32>
    %95 = vector.shape_cast %94 : vector<1x1x32xf32> to vector<1x32xf32>
    %cst_27 = arith.constant dense<0.000000e+00> : vector<128xf32>
    %96 = vector.multi_reduction <add>, %91, %cst_27 [1] : vector<128x32xf32> to vector<128xf32>
    %97 = vector.shape_cast %96 : vector<128xf32> to vector<128x1xf32>
    %cst_28 = arith.constant 3.200000e+01 : f32
    %98 = vector.broadcast %cst_28 : f32 to vector<128x1xf32>
    %99 = arith.divf %97, %98 : vector<128x1xf32>
    %100 = vector.broadcast %99 : vector<128x1xf32> to vector<128x32xf32>
    %101 = arith.subf %91, %100 : vector<128x32xf32>
    %102 = arith.mulf %101, %101 : vector<128x32xf32>
    %cst_29 = arith.constant dense<0.000000e+00> : vector<128xf32>
    %103 = vector.multi_reduction <add>, %102, %cst_29 [1] : vector<128x32xf32> to vector<128xf32>
    %104 = vector.shape_cast %103 : vector<128xf32> to vector<128x1xf32>
    %cst_30 = arith.constant 3.200000e+01 : f32
    %105 = vector.broadcast %cst_30 : f32 to vector<128x1xf32>
    %106 = arith.divf %104, %105 : vector<128x1xf32>
    %107 = vector.broadcast %99 : vector<128x1xf32> to vector<128x32xf32>
    %108 = arith.subf %91, %107 : vector<128x32xf32>
    %cst_31 = arith.constant 9.99999974E-6 : f32
    %109 = vector.broadcast %cst_31 : f32 to vector<128x1xf32>
    %110 = arith.addf %106, %109 : vector<128x1xf32>
    %111 = math.rsqrt %110 : vector<128x1xf32>
    %112 = vector.broadcast %111 : vector<128x1xf32> to vector<128x32xf32>
    %113 = arith.mulf %108, %112 : vector<128x32xf32>
    %114 = vector.broadcast %93 : vector<1x32xf32> to vector<128x32xf32>
    %115 = arith.mulf %113, %114 : vector<128x32xf32>
    %116 = vector.broadcast %95 : vector<1x32xf32> to vector<128x32xf32>
    %117 = arith.addf %115, %116 : vector<128x32xf32>
    %118 = arith.truncf %117 : vector<128x32xf32> to vector<128x32xbf16>
    %c0_32 = arith.constant 0 : index
    %c0_33 = arith.constant 0 : index
    %c0_34 = arith.constant 0 : index
    %119 = vector.load %arg7[%c0_32, %c0_33, %c0_34] : memref<2x32x128xbf16, #tpu.memory_space<vmem>>, vector<1x32x128xbf16>
    %120 = vector.shape_cast %119 : vector<1x32x128xbf16> to vector<32x128xbf16>
    %cst_35 = arith.constant dense<0.000000e+00> : vector<128x128xf32>
    %121 = tpu.matmul %118, %120, %cst_35 {dimension_numbers = #tpu.dot_dimension_numbers<[1], [0], [0], [1], [0, 0, 1, 1], [], []>} : vector<128x32xbf16>, vector<32x128xbf16>, vector<128x128xf32> -> vector<128x128xf32>
    %c0_36 = arith.constant 0 : index
    %c0_37 = arith.constant 0 : index
    %c0_38 = arith.constant 0 : index
    %122 = vector.load %arg8[%c0_36, %c0_37, %c0_38] : memref<2x1x128xf32, #tpu.memory_space<vmem>>, vector<1x1x128xf32>
    %123 = vector.shape_cast %122 : vector<1x1x128xf32> to vector<1x128xf32>
    %124 = vector.broadcast %123 : vector<1x128xf32> to vector<128x128xf32>
    %125 = arith.addf %121, %124 : vector<128x128xf32>
    %cst_39 = arith.constant 0.000000e+00 : f32
    %126 = vector.broadcast %cst_39 : f32 to vector<128x128xf32>
    %127 = arith.maximumf %125, %126 : vector<128x128xf32>
    %128 = arith.truncf %127 : vector<128x128xf32> to vector<128x128xbf16>
    %c0_40 = arith.constant 0 : index
    %c0_41 = arith.constant 0 : index
    %c0_42 = arith.constant 0 : index
    %129 = vector.load %arg9[%c0_40, %c0_41, %c0_42] : memref<2x128x32xbf16, #tpu.memory_space<vmem>>, vector<1x128x32xbf16>
    %130 = vector.shape_cast %129 : vector<1x128x32xbf16> to vector<128x32xbf16>
    %cst_43 = arith.constant dense<0.000000e+00> : vector<128x32xf32>
    %131 = tpu.matmul %128, %130, %cst_43 {dimension_numbers = #tpu.dot_dimension_numbers<[1], [0], [0], [1], [0, 0, 1, 1], [], []>} : vector<128x128xbf16>, vector<128x32xbf16>, vector<128x32xf32> -> vector<128x32xf32>
    %c0_44 = arith.constant 0 : index
    %c0_45 = arith.constant 0 : index
    %c0_46 = arith.constant 0 : index
    %132 = vector.load %arg10[%c0_44, %c0_45, %c0_46] : memref<2x1x32xf32, #tpu.memory_space<vmem>>, vector<1x1x32xf32>
    %133 = vector.shape_cast %132 : vector<1x1x32xf32> to vector<1x32xf32>
    %134 = vector.broadcast %133 : vector<1x32xf32> to vector<128x32xf32>
    %135 = arith.addf %131, %134 : vector<128x32xf32>
    %136 = arith.addf %117, %135 : vector<128x32xf32>
    %c0_47 = arith.constant 0 : index
    %c0_48 = arith.constant 0 : index
    %c0_49 = arith.constant 0 : index
    %137 = vector.load %arg11[%c0_47, %c0_48, %c0_49] : memref<2x1x32xf32, #tpu.memory_space<vmem>>, vector<1x1x32xf32>
    %138 = vector.shape_cast %137 : vector<1x1x32xf32> to vector<1x32xf32>
    %c0_50 = arith.constant 0 : index
    %c0_51 = arith.constant 0 : index
    %c0_52 = arith.constant 0 : index
    %139 = vector.load %arg12[%c0_50, %c0_51, %c0_52] : memref<2x1x32xf32, #tpu.memory_space<vmem>>, vector<1x1x32xf32>
    %140 = vector.shape_cast %139 : vector<1x1x32xf32> to vector<1x32xf32>
    %cst_53 = arith.constant dense<0.000000e+00> : vector<128xf32>
    %141 = vector.multi_reduction <add>, %136, %cst_53 [1] : vector<128x32xf32> to vector<128xf32>
    %142 = vector.shape_cast %141 : vector<128xf32> to vector<128x1xf32>
    %cst_54 = arith.constant 3.200000e+01 : f32
    %143 = vector.broadcast %cst_54 : f32 to vector<128x1xf32>
    %144 = arith.divf %142, %143 : vector<128x1xf32>
    %145 = vector.broadcast %144 : vector<128x1xf32> to vector<128x32xf32>
    %146 = arith.subf %136, %145 : vector<128x32xf32>
    %147 = arith.mulf %146, %146 : vector<128x32xf32>
    %cst_55 = arith.constant dense<0.000000e+00> : vector<128xf32>
    %148 = vector.multi_reduction <add>, %147, %cst_55 [1] : vector<128x32xf32> to vector<128xf32>
    %149 = vector.shape_cast %148 : vector<128xf32> to vector<128x1xf32>
    %cst_56 = arith.constant 3.200000e+01 : f32
    %150 = vector.broadcast %cst_56 : f32 to vector<128x1xf32>
    %151 = arith.divf %149, %150 : vector<128x1xf32>
    %152 = vector.broadcast %144 : vector<128x1xf32> to vector<128x32xf32>
    %153 = arith.subf %136, %152 : vector<128x32xf32>
    %cst_57 = arith.constant 9.99999974E-6 : f32
    %154 = vector.broadcast %cst_57 : f32 to vector<128x1xf32>
    %155 = arith.addf %151, %154 : vector<128x1xf32>
    %156 = math.rsqrt %155 : vector<128x1xf32>
    %157 = vector.broadcast %156 : vector<128x1xf32> to vector<128x32xf32>
    %158 = arith.mulf %153, %157 : vector<128x32xf32>
    %159 = vector.broadcast %138 : vector<1x32xf32> to vector<128x32xf32>
    %160 = arith.mulf %158, %159 : vector<128x32xf32>
    %161 = vector.broadcast %140 : vector<1x32xf32> to vector<128x32xf32>
    %162 = arith.addf %160, %161 : vector<128x32xf32>
    %163 = arith.mulf %162, %28 : vector<128x32xf32>
    %164 = arith.truncf %163 : vector<128x32xf32> to vector<128x32xbf16>
    %c1 = arith.constant 1 : index
    %c0_58 = arith.constant 0 : index
    %c0_59 = arith.constant 0 : index
    %165 = vector.load %arg4[%c1, %c0_58, %c0_59] : memref<2x32x64xbf16, #tpu.memory_space<vmem>>, vector<1x32x64xbf16>
    %166 = vector.shape_cast %165 : vector<1x32x64xbf16> to vector<32x64xbf16>
    %cst_60 = arith.constant dense<0.000000e+00> : vector<128x64xf32>
    %167 = tpu.matmul %164, %166, %cst_60 {dimension_numbers = #tpu.dot_dimension_numbers<[1], [0], [0], [1], [0, 0, 1, 1], [], []>} : vector<128x32xbf16>, vector<32x64xbf16>, vector<128x64xf32> -> vector<128x64xf32>
    %c1_61 = arith.constant 1 : index
    %c0_62 = arith.constant 0 : index
    %c0_63 = arith.constant 0 : index
    %168 = vector.load %arg5[%c1_61, %c0_62, %c0_63] : memref<2x1x64xf32, #tpu.memory_space<vmem>>, vector<1x1x64xf32>
    %169 = vector.shape_cast %168 : vector<1x1x64xf32> to vector<1x64xf32>
    %170 = vector.broadcast %169 : vector<1x64xf32> to vector<128x64xf32>
    %171 = arith.addf %167, %170 : vector<128x64xf32>
    %172 = vector.extract_strided_slice %171 {offsets = [0, 0], sizes = [128, 32], strides = [1, 1]} : vector<128x64xf32> to vector<128x32xf32>
    %173 = vector.extract_strided_slice %171 {offsets = [0, 32], sizes = [128, 32], strides = [1, 1]} : vector<128x64xf32> to vector<128x32xf32>
    %cst_64 = arith.constant 5.000000e-01 : f32
    %174 = vector.broadcast %cst_64 : f32 to vector<128x32xf32>
    %175 = arith.mulf %174, %173 : vector<128x32xf32>
    %176 = math.tanh %175 : vector<128x32xf32>
    %cst_65 = arith.constant 5.000000e-01 : f32
    %177 = vector.broadcast %cst_65 : f32 to vector<128x32xf32>
    %178 = arith.mulf %177, %176 : vector<128x32xf32>
    %cst_66 = arith.constant 5.000000e-01 : f32
    %179 = vector.broadcast %cst_66 : f32 to vector<128x32xf32>
    %180 = arith.addf %178, %179 : vector<128x32xf32>
    %181 = arith.mulf %172, %180 : vector<128x32xf32>
    %182 = arith.mulf %181, %28 : vector<128x32xf32>
    %c1_67 = arith.constant 1 : index
    %c0_68 = arith.constant 0 : index
    %c0_69 = arith.constant 0 : index
    %183 = vector.load %arg6[%c1_67, %c0_68, %c0_69] : memref<2x3x32xf32, #tpu.memory_space<vmem>>, vector<1x3x32xf32>
    %184 = vector.shape_cast %183 : vector<1x3x32xf32> to vector<3x32xf32>
    %185 = vector.extract_strided_slice %184 {offsets = [1, 0], sizes = [1, 32], strides = [1, 1]} : vector<3x32xf32> to vector<1x32xf32>
    %186 = vector.broadcast %185 : vector<1x32xf32> to vector<128x32xf32>
    %187 = arith.mulf %182, %186 : vector<128x32xf32>
    %c1_i32_70 = arith.constant 1 : i32
    %188 = tpu.dynamic_rotate %182 by %c1_i32_70 dim 0 : vector<128x32xf32>, i32 -> vector<128x32xf32>
    %189 = arith.mulf %188, %41 : vector<128x32xf32>
    %190 = vector.extract_strided_slice %184 {offsets = [0, 0], sizes = [1, 32], strides = [1, 1]} : vector<3x32xf32> to vector<1x32xf32>
    %191 = vector.broadcast %190 : vector<1x32xf32> to vector<128x32xf32>
    %192 = arith.mulf %189, %191 : vector<128x32xf32>
    %193 = arith.addf %187, %192 : vector<128x32xf32>
    %c127_i32_71 = arith.constant 127 : i32
    %194 = tpu.dynamic_rotate %182 by %c127_i32_71 dim 0 : vector<128x32xf32>, i32 -> vector<128x32xf32>
    %195 = arith.mulf %194, %52 : vector<128x32xf32>
    %196 = vector.extract_strided_slice %184 {offsets = [2, 0], sizes = [1, 32], strides = [1, 1]} : vector<3x32xf32> to vector<1x32xf32>
    %197 = vector.broadcast %196 : vector<1x32xf32> to vector<128x32xf32>
    %198 = arith.mulf %195, %197 : vector<128x32xf32>
    %199 = arith.addf %193, %198 : vector<128x32xf32>
    %200 = arith.addf %163, %199 : vector<128x32xf32>
    %c1_72 = arith.constant 1 : index
    %c0_73 = arith.constant 0 : index
    %c0_74 = arith.constant 0 : index
    %201 = vector.load %arg11[%c1_72, %c0_73, %c0_74] : memref<2x1x32xf32, #tpu.memory_space<vmem>>, vector<1x1x32xf32>
    %202 = vector.shape_cast %201 : vector<1x1x32xf32> to vector<1x32xf32>
    %c1_75 = arith.constant 1 : index
    %c0_76 = arith.constant 0 : index
    %c0_77 = arith.constant 0 : index
    %203 = vector.load %arg12[%c1_75, %c0_76, %c0_77] : memref<2x1x32xf32, #tpu.memory_space<vmem>>, vector<1x1x32xf32>
    %204 = vector.shape_cast %203 : vector<1x1x32xf32> to vector<1x32xf32>
    %cst_78 = arith.constant dense<0.000000e+00> : vector<128xf32>
    %205 = vector.multi_reduction <add>, %200, %cst_78 [1] : vector<128x32xf32> to vector<128xf32>
    %206 = vector.shape_cast %205 : vector<128xf32> to vector<128x1xf32>
    %cst_79 = arith.constant 3.200000e+01 : f32
    %207 = vector.broadcast %cst_79 : f32 to vector<128x1xf32>
    %208 = arith.divf %206, %207 : vector<128x1xf32>
    %209 = vector.broadcast %208 : vector<128x1xf32> to vector<128x32xf32>
    %210 = arith.subf %200, %209 : vector<128x32xf32>
    %211 = arith.mulf %210, %210 : vector<128x32xf32>
    %cst_80 = arith.constant dense<0.000000e+00> : vector<128xf32>
    %212 = vector.multi_reduction <add>, %211, %cst_80 [1] : vector<128x32xf32> to vector<128xf32>
    %213 = vector.shape_cast %212 : vector<128xf32> to vector<128x1xf32>
    %cst_81 = arith.constant 3.200000e+01 : f32
    %214 = vector.broadcast %cst_81 : f32 to vector<128x1xf32>
    %215 = arith.divf %213, %214 : vector<128x1xf32>
    %216 = vector.broadcast %208 : vector<128x1xf32> to vector<128x32xf32>
    %217 = arith.subf %200, %216 : vector<128x32xf32>
    %cst_82 = arith.constant 9.99999974E-6 : f32
    %218 = vector.broadcast %cst_82 : f32 to vector<128x1xf32>
    %219 = arith.addf %215, %218 : vector<128x1xf32>
    %220 = math.rsqrt %219 : vector<128x1xf32>
    %221 = vector.broadcast %220 : vector<128x1xf32> to vector<128x32xf32>
    %222 = arith.mulf %217, %221 : vector<128x32xf32>
    %223 = vector.broadcast %202 : vector<1x32xf32> to vector<128x32xf32>
    %224 = arith.mulf %222, %223 : vector<128x32xf32>
    %225 = vector.broadcast %204 : vector<1x32xf32> to vector<128x32xf32>
    %226 = arith.addf %224, %225 : vector<128x32xf32>
    %227 = arith.truncf %226 : vector<128x32xf32> to vector<128x32xbf16>
    %c1_83 = arith.constant 1 : index
    %c0_84 = arith.constant 0 : index
    %c0_85 = arith.constant 0 : index
    %228 = vector.load %arg7[%c1_83, %c0_84, %c0_85] : memref<2x32x128xbf16, #tpu.memory_space<vmem>>, vector<1x32x128xbf16>
    %229 = vector.shape_cast %228 : vector<1x32x128xbf16> to vector<32x128xbf16>
    %cst_86 = arith.constant dense<0.000000e+00> : vector<128x128xf32>
    %230 = tpu.matmul %227, %229, %cst_86 {dimension_numbers = #tpu.dot_dimension_numbers<[1], [0], [0], [1], [0, 0, 1, 1], [], []>} : vector<128x32xbf16>, vector<32x128xbf16>, vector<128x128xf32> -> vector<128x128xf32>
    %c1_87 = arith.constant 1 : index
    %c0_88 = arith.constant 0 : index
    %c0_89 = arith.constant 0 : index
    %231 = vector.load %arg8[%c1_87, %c0_88, %c0_89] : memref<2x1x128xf32, #tpu.memory_space<vmem>>, vector<1x1x128xf32>
    %232 = vector.shape_cast %231 : vector<1x1x128xf32> to vector<1x128xf32>
    %233 = vector.broadcast %232 : vector<1x128xf32> to vector<128x128xf32>
    %234 = arith.addf %230, %233 : vector<128x128xf32>
    %cst_90 = arith.constant 0.000000e+00 : f32
    %235 = vector.broadcast %cst_90 : f32 to vector<128x128xf32>
    %236 = arith.maximumf %234, %235 : vector<128x128xf32>
    %237 = arith.truncf %236 : vector<128x128xf32> to vector<128x128xbf16>
    %c1_91 = arith.constant 1 : index
    %c0_92 = arith.constant 0 : index
    %c0_93 = arith.constant 0 : index
    %238 = vector.load %arg9[%c1_91, %c0_92, %c0_93] : memref<2x128x32xbf16, #tpu.memory_space<vmem>>, vector<1x128x32xbf16>
    %239 = vector.shape_cast %238 : vector<1x128x32xbf16> to vector<128x32xbf16>
    %cst_94 = arith.constant dense<0.000000e+00> : vector<128x32xf32>
    %240 = tpu.matmul %237, %239, %cst_94 {dimension_numbers = #tpu.dot_dimension_numbers<[1], [0], [0], [1], [0, 0, 1, 1], [], []>} : vector<128x128xbf16>, vector<128x32xbf16>, vector<128x32xf32> -> vector<128x32xf32>
    %c1_95 = arith.constant 1 : index
    %c0_96 = arith.constant 0 : index
    %c0_97 = arith.constant 0 : index
    %241 = vector.load %arg10[%c1_95, %c0_96, %c0_97] : memref<2x1x32xf32, #tpu.memory_space<vmem>>, vector<1x1x32xf32>
    %242 = vector.shape_cast %241 : vector<1x1x32xf32> to vector<1x32xf32>
    %243 = vector.broadcast %242 : vector<1x32xf32> to vector<128x32xf32>
    %244 = arith.addf %240, %243 : vector<128x32xf32>
    %245 = arith.addf %226, %244 : vector<128x32xf32>
    %c1_98 = arith.constant 1 : index
    %c0_99 = arith.constant 0 : index
    %c0_100 = arith.constant 0 : index
    %246 = vector.load %arg11[%c1_98, %c0_99, %c0_100] : memref<2x1x32xf32, #tpu.memory_space<vmem>>, vector<1x1x32xf32>
    %247 = vector.shape_cast %246 : vector<1x1x32xf32> to vector<1x32xf32>
    %c1_101 = arith.constant 1 : index
    %c0_102 = arith.constant 0 : index
    %c0_103 = arith.constant 0 : index
    %248 = vector.load %arg12[%c1_101, %c0_102, %c0_103] : memref<2x1x32xf32, #tpu.memory_space<vmem>>, vector<1x1x32xf32>
    %249 = vector.shape_cast %248 : vector<1x1x32xf32> to vector<1x32xf32>
    %cst_104 = arith.constant dense<0.000000e+00> : vector<128xf32>
    %250 = vector.multi_reduction <add>, %245, %cst_104 [1] : vector<128x32xf32> to vector<128xf32>
    %251 = vector.shape_cast %250 : vector<128xf32> to vector<128x1xf32>
    %cst_105 = arith.constant 3.200000e+01 : f32
    %252 = vector.broadcast %cst_105 : f32 to vector<128x1xf32>
    %253 = arith.divf %251, %252 : vector<128x1xf32>
    %254 = vector.broadcast %253 : vector<128x1xf32> to vector<128x32xf32>
    %255 = arith.subf %245, %254 : vector<128x32xf32>
    %256 = arith.mulf %255, %255 : vector<128x32xf32>
    %cst_106 = arith.constant dense<0.000000e+00> : vector<128xf32>
    %257 = vector.multi_reduction <add>, %256, %cst_106 [1] : vector<128x32xf32> to vector<128xf32>
    %258 = vector.shape_cast %257 : vector<128xf32> to vector<128x1xf32>
    %cst_107 = arith.constant 3.200000e+01 : f32
    %259 = vector.broadcast %cst_107 : f32 to vector<128x1xf32>
    %260 = arith.divf %258, %259 : vector<128x1xf32>
    %261 = vector.broadcast %253 : vector<128x1xf32> to vector<128x32xf32>
    %262 = arith.subf %245, %261 : vector<128x32xf32>
    %cst_108 = arith.constant 9.99999974E-6 : f32
    %263 = vector.broadcast %cst_108 : f32 to vector<128x1xf32>
    %264 = arith.addf %260, %263 : vector<128x1xf32>
    %265 = math.rsqrt %264 : vector<128x1xf32>
    %266 = vector.broadcast %265 : vector<128x1xf32> to vector<128x32xf32>
    %267 = arith.mulf %262, %266 : vector<128x32xf32>
    %268 = vector.broadcast %247 : vector<1x32xf32> to vector<128x32xf32>
    %269 = arith.mulf %267, %268 : vector<128x32xf32>
    %270 = vector.broadcast %249 : vector<1x32xf32> to vector<128x32xf32>
    %271 = arith.addf %269, %270 : vector<128x32xf32>
    %272 = arith.mulf %271, %28 : vector<128x32xf32>
    %273 = vector.shape_cast %272 : vector<128x32xf32> to vector<8x16x32xf32>
    %c0_109 = arith.constant 0 : index
    %c0_110 = arith.constant 0 : index
    %c0_111 = arith.constant 0 : index
    %274 = vector.load %arg15[%c0_109, %c0_110, %c0_111] : memref<8x16x32xf32, #tpu.memory_space<vmem>>, vector<8x16x32xf32>
    tpu.vector_store %arg15[%c0_109, %c0_110, %c0_111], %273 {strides = array<i32>} : memref<8x16x32xf32, #tpu.memory_space<vmem>>, vector<8x16x32xf32>,
    %c0_112 = arith.constant 0 : index
    %c0_113 = arith.constant 0 : index
    %275 = vector.load %arg13[%c0_112, %c0_113] : memref<1x32xf32, #tpu.memory_space<vmem>>, vector<1x32xf32>
    %276 = vector.shape_cast %275 : vector<1x32xf32> to vector<1x1x32xf32>
    %277 = vector.broadcast %276 : vector<1x1x32xf32> to vector<8x16x32xf32>
    %278 = arith.mulf %273, %277 : vector<8x16x32xf32>
    %cst_114 = arith.constant dense<0.000000e+00> : vector<8x16xf32>
    %279 = vector.multi_reduction <add>, %278, %cst_114 [2] : vector<8x16x32xf32> to vector<8x16xf32>
    %cst_115 = arith.constant 0.000000e+00 : f32
    %280 = vector.broadcast %cst_115 : f32 to vector<8x16xf32>
    %281 = arith.maximumf %279, %280 : vector<8x16xf32>
    %282 = math.absf %279 : vector<8x16xf32>
    %cst_116 = arith.constant 0.000000e+00 : f32
    %283 = vector.broadcast %cst_116 : f32 to vector<8x16xf32>
    %284 = arith.subf %283, %282 : vector<8x16xf32>
    %285 = math.exp %284 : vector<8x16xf32>
    %cst_117 = arith.constant 1.000000e+00 : f32
    %286 = vector.broadcast %cst_117 : f32 to vector<8x16xf32>
    %287 = arith.addf %286, %285 : vector<8x16xf32>
    %288 = math.log %287 : vector<8x16xf32>
    %289 = arith.addf %281, %288 : vector<8x16xf32>
    %290 = arith.mulf %289, %2 : vector<8x16xf32>
    %c0_118 = arith.constant 0 : index
    %c0_119 = arith.constant 0 : index
    %291 = vector.load %arg14[%c0_118, %c0_119] : memref<8x16xf32, #tpu.memory_space<vmem>>, vector<8x16xf32>
    tpu.vector_store %arg14[%c0_118, %c0_119], %290 {strides = array<i32>} : memref<8x16xf32, #tpu.memory_space<vmem>>, vector<8x16xf32>,
    return
  }
  func.func @transform_0(%arg0: i32) -> (i32, i32, i32) {
    %c0_i32 = arith.constant 0 : i32
    %c0_i32_0 = arith.constant 0 : i32
    %c0_i32_1 = arith.constant 0 : i32
    return %arg0, %c0_i32, %c0_i32_0 : i32, i32, i32
  }
  func.func @transform_1(%arg0: i32) -> (i32, i32) {
    %c0_i32 = arith.constant 0 : i32
    %c0_i32_0 = arith.constant 0 : i32
    return %arg0, %c0_i32 : i32, i32
  }
  func.func @transform_2(%arg0: i32) -> (i32, i32) {
    %c0_i32 = arith.constant 0 : i32
    %c0_i32_0 = arith.constant 0 : i32
    %c0_i32_1 = arith.constant 0 : i32
    return %c0_i32, %c0_i32_0 : i32, i32
  }
  func.func @transform_3(%arg0: i32) -> (i32, i32, i32) {
    %c0_i32 = arith.constant 0 : i32
    %c0_i32_0 = arith.constant 0 : i32
    %c0_i32_1 = arith.constant 0 : i32
    %c0_i32_2 = arith.constant 0 : i32
    return %c0_i32, %c0_i32_0, %c0_i32_1 : i32, i32, i32
  }
  func.func @transform_4(%arg0: i32) -> (i32, i32, i32) {
    %c0_i32 = arith.constant 0 : i32
    %c0_i32_0 = arith.constant 0 : i32
    %c0_i32_1 = arith.constant 0 : i32
    %c0_i32_2 = arith.constant 0 : i32
    return %c0_i32, %c0_i32_0, %c0_i32_1 : i32, i32, i32
  }
  func.func @transform_5(%arg0: i32) -> (i32, i32, i32) {
    %c0_i32 = arith.constant 0 : i32
    %c0_i32_0 = arith.constant 0 : i32
    %c0_i32_1 = arith.constant 0 : i32
    %c0_i32_2 = arith.constant 0 : i32
    return %c0_i32, %c0_i32_0, %c0_i32_1 : i32, i32, i32
  }
  func.func @transform_6(%arg0: i32) -> (i32, i32, i32) {
    %c0_i32 = arith.constant 0 : i32
    %c0_i32_0 = arith.constant 0 : i32
    %c0_i32_1 = arith.constant 0 : i32
    %c0_i32_2 = arith.constant 0 : i32
    return %c0_i32, %c0_i32_0, %c0_i32_1 : i32, i32, i32
  }
  func.func @transform_7(%arg0: i32) -> (i32, i32, i32) {
    %c0_i32 = arith.constant 0 : i32
    %c0_i32_0 = arith.constant 0 : i32
    %c0_i32_1 = arith.constant 0 : i32
    %c0_i32_2 = arith.constant 0 : i32
    return %c0_i32, %c0_i32_0, %c0_i32_1 : i32, i32, i32
  }
  func.func @transform_8(%arg0: i32) -> (i32, i32, i32) {
    %c0_i32 = arith.constant 0 : i32
    %c0_i32_0 = arith.constant 0 : i32
    %c0_i32_1 = arith.constant 0 : i32
    %c0_i32_2 = arith.constant 0 : i32
    return %c0_i32, %c0_i32_0, %c0_i32_1 : i32, i32, i32
  }
  func.func @transform_9(%arg0: i32) -> (i32, i32, i32) {
    %c0_i32 = arith.constant 0 : i32
    %c0_i32_0 = arith.constant 0 : i32
    %c0_i32_1 = arith.constant 0 : i32
    %c0_i32_2 = arith.constant 0 : i32
    return %c0_i32, %c0_i32_0, %c0_i32_1 : i32, i32, i32
  }
  func.func @transform_10(%arg0: i32) -> (i32, i32, i32) {
    %c0_i32 = arith.constant 0 : i32
    %c0_i32_0 = arith.constant 0 : i32
    %c0_i32_1 = arith.constant 0 : i32
    %c0_i32_2 = arith.constant 0 : i32
    return %c0_i32, %c0_i32_0, %c0_i32_1 : i32, i32, i32
  }
  func.func @transform_11(%arg0: i32) -> (i32, i32, i32) {
    %c0_i32 = arith.constant 0 : i32
    %c0_i32_0 = arith.constant 0 : i32
    %c0_i32_1 = arith.constant 0 : i32
    %c0_i32_2 = arith.constant 0 : i32
    return %c0_i32, %c0_i32_0, %c0_i32_1 : i32, i32, i32
  }
  func.func @transform_12(%arg0: i32) -> (i32, i32) {
    %c0_i32 = arith.constant 0 : i32
    %c0_i32_0 = arith.constant 0 : i32
    %c0_i32_1 = arith.constant 0 : i32
    return %c0_i32, %c0_i32_0 : i32, i32
  }
  func.func @transform_13(%arg0: i32) -> (i32, i32) {
    %c0_i32 = arith.constant 0 : i32
    %c0_i32_0 = arith.constant 0 : i32
    return %arg0, %c0_i32 : i32, i32
  }
  func.func @transform_14(%arg0: i32) -> (i32, i32, i32) {
    %c0_i32 = arith.constant 0 : i32
    %c0_i32_0 = arith.constant 0 : i32
    %c0_i32_1 = arith.constant 0 : i32
    return %arg0, %c0_i32, %c0_i32_0 : i32, i32, i32
  }
}

</mosaic_0001>

<bundles_post_ra>
// kernel: tpu_custom_call.1
= control target key start
LH: loop header
LB: loop body
LE: loop exit
PB: predicated region body
PF: predicated region fallthrough
CT: control target
= control target key end

     0   :  { %s8568_s0 = inlined_call_operand.vmem [shape: bf16[16,16,32], index: 0, kind: input, shape index: {}]   ;;  %s8569_s1 = inlined_call_operand.hbm [shape: f32[16,16], index: 1, kind: input, shape index: {}]   ;;  %s8570_s2 = inlined_call_operand.hbm [shape: bf16[32,96], index: 2, kind: input, shape index: {}]   ;;  %s8571_s3 = inlined_call_operand.vmem [shape: bf16[2,32,64], index: 3, kind: input, shape index: {}]   ;;  %s8572_s4 = inlined_call_operand.vmem [shape: f32[2,1,64], index: 4, kind: input, shape index: {}]   ;;  %s8573_s5 = inlined_call_operand.vmem [shape: f32[2,3,32], index: 5, kind: input, shape index: {}]   ;;  %s8574_s6 = inlined_call_operand.hbm [shape: bf16[2,32,128], index: 6, kind: input, shape index: {}]   ;;  %s8575_s7 = inlined_call_operand.vmem [shape: f32[2,1,128], index: 7, kind: input, shape index: {}]   ;;  %s8576_s8 = inlined_call_operand.vmem [shape: bf16[2,128,32], index: 8, kind: input, shape index: {}]   ;;  %s8577_s9 = inlined_call_operand.vmem [shape: f32[2,1,32], index: 9, kind: input, shape index: {}]   ;;  %s8578_s10 = inlined_call_operand.vmem [shape: f32[2,1,32], index: 10, kind: input, shape index: {}]   ;;  %s8579_s11 = inlined_call_operand.vmem [shape: f32[2,1,32], index: 11, kind: input, shape index: {}]   ;;  %s8580_s12 = inlined_call_operand.vmem [shape: f32[1,32], index: 12, kind: input, shape index: {}]   ;;  %s8581_s13 = inlined_call_operand.hbm [shape: f32[16,16], index: 13, kind: output, shape index: {0}]   ;;  %s8582_s14 = inlined_call_operand.hbm [shape: f32[16,16,32], index: 14, kind: output, shape index: {1}]  }
   0x1   :  { %8642 = sst [smem:[#allocation38_spill]] %s8570_s2 }
   0x2   :  { %8643 = sst [smem:[#allocation39_spill]] %s8574_s6 }
   0x3   :  { %8644 = sst [smem:[#allocation40_spill]] %s8581_s13 }
   0x4   :  { %8645 = sst [smem:[#allocation41_spill]] %s8582_s14 }
   0x5   :  { %20 = vsyncpa [#allocation3], 0 }
   0x6   :  { %22 = vsyncpa [#allocation3 + $0x1], 0 }
   0x7   :  { %23 = vsyncpa [#allocation6], 0 }
   0x8   :  { %24 = vsyncpa [#allocation4], 0 }
   0x9   :  { %26 = vsyncpa [#allocation4 + $0x1], 0 }
   0xa   :  { %27 = vsyncpa [#allocation10], 0 }
   0xb   :  { %29 = vsyncpa [#allocation10 + $0x1], 0  ;;  %s5664_s29 = smov 0   ;;  %s5666_s30 = smov 0  }
   0xc   :  { %s5668_s15 = smov 0   ;;  %s5670_s16 = smov 0  }
   0xd LB: > { %8646 = sst [smem:[#allocation15_spill]] %s5557_s29  ;;  %s5688_s20 = sadd.s32 4294967295, %s5569_s16   ;;  %s5569_s16 = sphi %s5670_s16, %s8729_s16   ;;  %s5565_s15 = sphi %s5668_s15, %s8734_s15   ;;  %s5561_s30 = sphi %s5666_s30, %s8733_s30   ;;  %s5557_s29 = sphi %s5664_s29, %s8732_s29  }
   0xe   : > { %8647 = sst [smem:[#allocation16_spill]] %s5565_s15  ;;  %p4738_p0 = scmp.ge.s32.totalorder %s5569_s16, 1 }
   0xf   : > { %s8648_s2 = sld [smem:[#allocation38_spill]]  ;;  %p82_p1 = scmp.eq.s32.totalorder %s5688_s20, 0 }
  0x10   : > { %p375_p2 = scmp.lt.s32.totalorder %s5569_s16, 3  ;;  %s5571_s22 = smov [#allocation5]  }
  0x11   : > { %s388_s23 = sshll.u32 %s5571_s22, 4  ;;  %s8650_s6 = sld [smem:[#allocation39_spill]]  ;;  %s389_s23 = int_to_ptr.vmem [resolvable:$true] %s388_s23 }
  0x12   : > { %p5693_p3 = pnand %p4738_p0, %p375_p2  ;;  %s5572_s27 = smov [#allocation7]  }
  0x13   : > { %s411_s28 = sshll.u32 %s5572_s27, 4  ;;  %s5573_s17 = smov 64   ;;  %s412_s28 = int_to_ptr.vmem [resolvable:$true] %s411_s28 }
  0x14   : > { %p5002_p4 = pneg %p5693_p3  ;;  %s5574_s18 = smov 4  }
  0x15   : > { %s386_s19 = sshll.u32 %s8648_s2, 4  ;;  %s4737_s22 = sadd.s32 4294967294, %s5569_s16   ;;  %s387_s19 = int_to_ptr.hbm [resolvable:$true] %s386_s19 }
  0x16   : > { %p5003_p6 = pnand %p5002_p4, %p82_p1  ;;  %s5707_s24 = sadd.s32 1, %s5569_s16  }
  0x17   : > { %s409_s26 = sshll.u32 %s8650_s6, 4  ;;  %8651 = sst [smem:[#allocation17_spill]] %s5707_s24  ;;  %s410_s26 = int_to_ptr.hbm [resolvable:$true] %s409_s26 }
  0x18   : > { %5005 = dma.hbm_to_vmem [thread:$0]  (!%p5003_p6), %s387_s19, 256, %s389_s23, [#allocation6], %s5573_s17, %s5573_s17, %s5574_s18  }
  0x19   : > { %5008 = dma.hbm_to_vmem [thread:$0]  (!%p5003_p6), %s410_s26, 512, %s412_s28, [#allocation6], %s5573_s17, %s5573_s17, %s5574_s18  }
  0x1a   : > { %s65_s25 = ssub.s32 %s5569_s16, %s5707_s24  ;;  %s68_s2 = sadd.s32 1, %s5565_s15 }
  0x1b   : > { %p66_p7 = scmp.eq.s32.totalorder %s65_s25, 0  ;;  %p75_p8 = scmp.ne.s32.totalorder %s5565_s15, %s5561_s30 }
  0x1c   : > { %p76_p9 = scmp.eq.s32.totalorder %s5569_s16, 0  ;;  %p81_p10 = scmp.ne.s32.totalorder %s5561_s30, %s5557_s29 }
  0x1d   : > { %s5718_s27 = scalar_select %p66_p7, %s5565_s15, %s68_s2  }
  0x1e   : > { %p5720_p11 = por %p76_p9, %p75_p8  ;;  %p5726_p12 = por %p82_p1, %p81_p10 }
  0x1f   : > { %8652 = sst [smem:[#allocation18_spill]] %s5718_s27  ;;  %p336_p13 = scmp.eq.s32.totalorder %s5688_s20, 1 }
  0x20   : > { %p342_p0 = scmp.eq.s32.totalorder %s4737_s22, 1  ;;  %p5022_p2 = scmp.lt.s32.totalorder %s5569_s16, 2 }
  0x21   : > { %s453_s23 = sand.u32 1, %s5565_s15   ;;  %p5733_p4 = por %p336_p13, %p75_p8 }
  0x22   : > { %p5737_p6 = por %p342_p0, %p81_p10  ;;  %s4742_s28 = sshll.u32 %s453_s23, 3 }
  0x23   : > { %s4743_s17 = sshll.u32 %s5569_s16, 3  ;;  %s457_s24 = scalar_lea.vmem [#allocation2], %s4742_s28 }
  0x24   : > { %s8656_s2 = scalar_select %p5737_p6, 1, 0 }
  0x25   : > { %s461_s27 = scalar_lea.hbm %s8569_s1, %s4743_s17  ;;  %s465_s29 = sshll.u32 %s457_s24, 4  ;;  %s466_s29 = int_to_ptr.vmem [resolvable:$true] %s465_s29 }
  0x26   : > { %8657 = sst [smem:[#allocation19_spill]] %s8656_s2  ;;  %s463_s13 = sshll.u32 %s461_s27, 4  ;;  %s464_s13 = int_to_ptr.hbm [resolvable:$true] %s463_s13 }
  0x27   : > { %p5747_p7 = pnand %p5022_p2, %p5720_p11  ;;  %s454_s15 = scalar_lea.sflag [#allocation3], %s453_s23 }
  0x28   : > { %s5437_s14 = sshra.s32 %s464_s13, 4  ;;  %s5444_s27 = scalar_lea.hbm %s8569_s1, 16  ;;  %s5438_s14 = int_to_ptr.hbm [resolvable:$true] %s5437_s14 }
  0x29   : > { %s5439_s2 = scalar_lea.hbm %s5438_s14, 8  ;;  %p5441_p9 = pneg %p5747_p7 }
  0x2a   : > { %p5440_p8 = scmp.ne.s32.totalorder %s5438_s14, %s5439_s2  ;;  %p5445_p11 = scmp.lt.s32.totalorder %s5438_s14, %s8569_s1 }
  0x2b   : > { %p5446_p0 = scmp.lt.s32.totalorder %s5444_s27, %s5439_s2 }
  0x2c   : > { %p5442_p10 = pnand %p5441_p9, %p5440_p8 }
  0x2d   : > { %p5447_p2 = por %p5446_p0, %p5445_p11 }
  0x2e   : > { %p5443_p13 = pneg %p5442_p10 }
  0x30   : > { %p5448_p5 = pnand %p5447_p2, %p5443_p13 }
  0x32   : > { %5451 = shalt.err (!%p5448_p5)
}
  0x33   : > { %5012 = dma.hbm_to_vmem [thread:$0]  (!%p5747_p7), %s464_s13, 128, %s466_s29, %s454_s15  }
  0x34   : > { %474 = sbr.rel (%p5693_p3) target bundleno = 3818 (0xeea), region = 72 }
  0x39   : > { %s5764_s23 = sand.u32 1, %s5561_s30  }
  0x3a   : > { %s4745_s18 = sshll.u32 %s5764_s23, 3  ;;  %s477_s25 = scalar_lea.sflag [#allocation3], %s5764_s23 }
  0x3b   : > { %s480_s14 = scalar_lea.vmem [#allocation2], %s4745_s18 }
  0x3c   : > { %5540 = dma.done.wait (%p5726_p12), %s477_s25, 128  }
  0x3d   : > { %5542 = vsyncadd (%p5726_p12), %s477_s25, 4294967168 }
  0x3e   : > { %5544 = dma.done.wait (%p82_p1), [#allocation6], 768  }
  0x3f   : > { %5546 = vsyncadd (%p82_p1), [#allocation6], 4294966528  ;;  %s5779_s13 = sshll.u32 %s5688_s20, 3  ;;  %v556_v0 = vld [vmem:[%s480_s14] sm:$0xff]  ;;  %v4959_v1 = vld [vmem:[#allocation5 + $0x8] sm:$0xff]  ;;  %vm755_vm0 = vcmask 261120  }
  0x40   : > { %p548_p3 = scmp.lt.s32.totalorder %s5779_s13, 15  ;;  %v5786_v2 = vsub.f32 1.0, %v556_v0  ;;  %4984 = vmatpush.bf16.msra.mxu3 %v4959_v1  ;;  %v4958_v3 = vld [vmem:[#allocation5] sm:$0xff]  ;;  %786 = vmatpush.bf16.msra.mxu0 %v4959_v1  ;;  %v5575_v8 = vmov 1   ;;  %v8590_v9 = vmov 0   ;;  %s5577_s24 = smov 32  }
  0x41   : > { %5077 = vset.pattern.permute.xlu2 %v5575_v8  ;;  %5076 = vset.pattern.permute.xlu1 %v8590_v9  ;;  %v5104_v12 = vld [vmem:[%s8572_s4] ss:$0 sm:$0xff]  ;;  %v5578_v15 = vmov 6   ;;  %v5579_v18 = vmov 2   ;;  %v5580_v19 = vmov 7   ;;  %v5581_v20 = vmov 3  }
  0x42   : > { %s549_s29 = scalar_select %p548_p3, %s5779_s13, 15  ;;  %8659 = vst [vmem:[#allocation20_spill] sm:$0xff] %v5786_v2  ;;  %558 = vxpose.xlu0.b32.start.end [1/1] (short) (narrow) %v5786_v2, 16  ;;  %v5582_v21 = vmov 4   ;;  %v5583_v22 = vmov 5  }
  0x43   : > { %v5805_v23 = vld [vmem:[%s8573_s5] sm:$0x7]  ;;  %s5584_s6 = smov 96   ;;  %s4749_s27 = sshll.u32 %s5764_s23, 7 }
  0x44   : > { %s4949_s15 = sshll.u32 %s549_s29, 3  ;;  %4985 = vmatpush.bf16.msra.mxu3 %v4958_v3  ;;  %787 = vmatpush.bf16.msra.mxu0 %v4958_v3  ;;  %v1060_v24 = vperm.slane %v5805_v23, 1  ;;  %s8170_s29 = scalar_lea.vmem [#allocation9], %s4749_s27 }
  0x45   : > { %s552_s19 = scalar_lea.vmem %s8568_s0, %s4949_s15  ;;  %s4983_s2 = sshll.u32 %s5688_s20, 7 }
  0x46   : > { %v4954_v4 = vld [vmem:[%s552_s19 + $0x20] sm:$0xff]  ;;  %v4955_v6 = vld [vmem:[%s552_s19 + $0x28] sm:$0xff]  ;;  %v4956_v10 = vld [vmem:[%s552_s19 + $0x30] sm:$0xff]  ;;  %s8723_s28 = sld [smem:[#allocation41_spill]]  ;;  %s4597_s27 = sshll.u32 %s8170_s29, 4  ;;  %s4598_s27 = int_to_ptr.vmem [resolvable:$true] %s4597_s27 }
  0x47   : > { %v4950_v5 = vld [vmem:[%s552_s19] sm:$0xff]  ;;  %4799 = vmatmul.msk.bf16.vlgmr.msra.gmra.mxu3 %vm755_vm0, %v4954_v4  ;;  %v4951_v7 = vld [vmem:[%s552_s19 + $0x8] sm:$0xff]  ;;  %v4952_v11 = vld [vmem:[%s552_s19 + $0x10] sm:$0xff] }
  0x48   : > { %4795 = vmatmul.msk.bf16.vlgmr.msra.gmra.mxu0 %vm755_vm0, %v4950_v5  ;;  %v4957_v13 = vld [vmem:[%s552_s19 + $0x38] sm:$0xff] }
  0x49   : > { %v4953_v14 = vld [vmem:[%s552_s19 + $0x18] sm:$0xff] }
  0x4c   : > { %s5487_s21 = scalar_lea.hbm %s8723_s28, 256 }
  0x57   : > { %4800 = vmatmul.msk.bf16.gmra.mxu3 %vm755_vm0, %v4955_v6 }
  0x58   : > { %4796 = vmatmul.msk.bf16.gmra.mxu0 %vm755_vm0, %v4951_v7 }
  0x67   : > { %4801 = vmatmul.msk.bf16.gmra.mxu3 %vm755_vm0, %v4956_v10 }
  0x68   : > { %4797 = vmatmul.msk.bf16.gmra.mxu0 %vm755_vm0, %v4952_v11 }
  0x77   : > { %4802 = vmatmul.msk.bf16.gmra.mxu3 %vm755_vm0, %v4957_v13 }
  0x78   : > { %4798 = vmatmul.msk.bf16.gmra.mxu0 %vm755_vm0, %v4953_v14 }
  0xa9   : > { %5090 = vset.pattern.permute.xlu0 %v5578_v15 }
  0xb8   : > { %832 = vrot.lane.b32.xlu0 %v5104_v12, %s5577_s24 }
  0xc5   : > { %v5812_v26 = vpop.f32.mrf.mxu0 }
  0xca   : > { %v5810_v25 = vpop.f32.mrf.mxu3 }
  0xcd   : > { %v5816_v28 = vpop.f32.mrf.mxu0 }
  0xd2   : > { %v5814_v27 = vpop.f32.mrf.mxu3 }
  0xd5   : > { %v5873_v57 = vpop.f32.mrf.mxu0 }
  0xda   : > { %v5834_v35 = vpop.f32.mrf.mxu3 }
  0xdd   : > { %v5891_v3 = vpop.f32.mrf.mxu0 }
  0xe2   : > { %v5837_v41 = vpop.f32.mrf.mxu3 }
  0xe5   : > { %v5907_v14 = vpop.f32.mrf.mxu0 }
  0xe6   : > { %v574_v16 = vpop.trf.xlu0 }
  0xe7   : > { %601 = vperm.xlu2 %5077, %v574_v16   ;;  %592 = vperm.xlu1 %5076, %v574_v16  }
  0xea   : > { %v5845_v48 = vpop.f32.mrf.mxu3 }
  0xee   : > { %v575_v17 = vpop.trf.xlu0 }
  0xef   : > { %5078 = vset.pattern.permute.xlu2 %v5579_v18  ;;  %5083 = vset.pattern.permute.xlu1 %v5580_v19 }
  0xf0   : > { %645 = vperm.xlu0 %5090, %v575_v17   ;;  %609 = vperm.xlu2 %5078, %v574_v16  }
  0xf1   : > { %653 = vperm.xlu1 %5083, %v575_v17  }
  0xf2   : > { %v5852_v50 = vpop.f32.mrf.mxu3 }
  0xf8   : > { %5079 = vset.pattern.permute.xlu2 %v5581_v20  ;;  %1062 = vrot.lane.b32.xlu0 %v1060_v24, %s5577_s24 }
  0xf9   : > { %5085 = vset.pattern.permute.xlu1 %v5575_v8  ;;  %617 = vperm.xlu2 %5079, %v574_v16  }
  0xfa   : > { %605 = vperm.xlu1 %5085, %v575_v17   ;;  %v5863_v54 = vpop.f32.mrf.mxu3 }
 0x101   : > { %5080 = vset.pattern.permute.xlu2 %v5582_v21 }
 0x102   : > { %5086 = vset.pattern.permute.xlu1 %v5579_v18  ;;  %625 = vperm.xlu2 %5080, %v574_v16  }
 0x103   : > { %613 = vperm.xlu1 %5086, %v575_v17  }
 0x10a   : > { %5081 = vset.pattern.permute.xlu2 %v5583_v22 }
 0x10b   : > { %5087 = vset.pattern.permute.xlu1 %v5581_v20  ;;  %633 = vperm.xlu2 %5081, %v574_v16  }
 0x10c   : > { %621 = vperm.xlu1 %5087, %v575_v17  }
 0x113   : > { %5082 = vset.pattern.permute.xlu2 %v5578_v15 }
 0x114   : > { %5088 = vset.pattern.permute.xlu1 %v5582_v21  ;;  %641 = vperm.xlu2 %5082, %v574_v16  }
 0x115   : > { %629 = vperm.xlu1 %5088, %v575_v17  }
 0x11c   : > { %5084 = vset.pattern.permute.xlu2 %v8590_v9 }
 0x11d   : > { %5089 = vset.pattern.permute.xlu1 %v5583_v22  ;;  %597 = vperm.xlu2 %5084, %v575_v17   ;;  %v5919_v22 = vpop.f32.mrf.mxu0 }
 0x11e   : > { %637 = vperm.xlu1 %5089, %v575_v17  }
 0x126   : > { %5091 = vset.pattern.permute.xlu1 %v5580_v19 }
 0x127   : > { %649 = vperm.xlu1 %5091, %v574_v16  }
 0x12a   : > { %v5818_v29 = vpop.permute.xlu0 %832 }
 0x12b   : > { %v5822_v30 = vadd.f32 %v5818_v29, %v5810_v25  ;;  %v5826_v31 = vadd.f32 %v5818_v29, %v5812_v26  ;;  %v5830_v32 = vadd.f32 %v5818_v29, %v5816_v28  ;;  %v5856_v51 = vadd.f32 %v5818_v29, %v5837_v41 }
 0x12c   : > { %v5871_v56 = vadd.f32 %v5818_v29, %v5863_v54  ;;  %v5881_v59 = vadd.f32 %v5818_v29, %v5814_v27  ;;  %v5897_v5 = vadd.f32 %v5818_v29, %v5873_v57  ;;  %v5917_v21 = vadd.f32 %v5818_v29, %v5907_v14 }
 0x12d   : > { %v859_v33 = vmul.f32 0.5, %v5822_v30  ;;  %v851_v34 = vmul.f32 0.5, %v5826_v31  ;;  %v852_v36 = vmul.f32 0.5, %v5830_v32  ;;  %v862_v53 = vmul.f32 0.5, %v5856_v51 }
 0x12e   : > { %v865_v60 = vmul.f32 0.5, %v5871_v56  ;;  %v860_v62 = vmul.f32 0.5, %v5881_v59  ;;  %v853_v8 = vmul.f32 0.5, %v5897_v5  ;;  %v6015_v9 = vadd.f32 %v5818_v29, %v5919_v22 }
 0x12f   : > { %5115 = vtanh.f32 %v859_v33  ;;  %v855_v33 = vmul.f32 0.5, %v5917_v21 }
 0x130   : > { %5117 = vtanh.f32 %v851_v34 }
 0x131   : > { %5119 = vtanh.f32 %v852_v36  ;;  %v5927_v36 = vadd.f32 %v5818_v29, %v5852_v50 }
 0x132   : > { %5121 = vtanh.f32 %v862_v53 }
 0x133   : > { %5123 = vtanh.f32 %v865_v60 }
 0x134   : > { %5125 = vtanh.f32 %v860_v62 }
 0x135   : > { %v5116_v37 = vpop.eup %5115  ;;  %5127 = vtanh.f32 %v853_v8 }
 0x136   : > { %v5118_v38 = vpop.eup %5117  ;;  %v891_v39 = vmul.f32 0.5, %v5116_v37  ;;  %5129 = vtanh.f32 %v855_v33  ;;  %v5929_v37 = vpop.f32.mrf.mxu0 }
 0x137   : > { %v883_v40 = vmul.f32 0.5, %v5118_v38  ;;  %v5120_v42 = vpop.eup %5119  ;;  %v864_v38 = vmul.f32 0.5, %v5927_v36 }
 0x138   : > { %v907_v43 = vadd.f32 0.5, %v891_v39  ;;  %v884_v45 = vmul.f32 0.5, %v5120_v42  ;;  %v5122_v61 = vpop.eup %5121  ;;  %v5938_v42 = vadd.f32 %v5818_v29, %v5929_v37 }
 0x139   : > { %v899_v44 = vadd.f32 0.5, %v883_v40  ;;  %v894_v1 = vmul.f32 0.5, %v5122_v61  ;;  %v5124_v7 = vpop.eup %5123  ;;  %5131 = vtanh.f32 %v864_v38 }
 0x13a   : > { %947 = vrot.lane.b32.xlu0 %v907_v43, %s5584_s6  ;;  %v900_v47 = vadd.f32 0.5, %v884_v45  ;;  %v897_v10 = vmul.f32 0.5, %v5124_v7  ;;  %v5126_v11 = vpop.eup %5125  ;;  %v5953_v7 = vpop.f32.mrf.mxu3 }
 0x13b   : > { %931 = vrot.lane.b32.xlu1 %v899_v44, %s5584_s6  ;;  %v910_v6 = vadd.f32 0.5, %v894_v1  ;;  %v892_v16 = vmul.f32 0.5, %v5126_v11  ;;  %v5128_v18 = vpop.eup %5127  ;;  %v857_v44 = vmul.f32 0.5, %v5938_v42  ;;  %v5958_v11 = vadd.f32 %v5818_v29, %v5953_v7 }
 0x13c   : > { %v913_v15 = vadd.f32 0.5, %v897_v10  ;;  %v885_v20 = vmul.f32 0.5, %v5128_v18  ;;  %v5130_v39 = vpop.eup %5129 }
 0x13d   : > { %v908_v17 = vadd.f32 0.5, %v892_v16  ;;  %v887_v43 = vmul.f32 0.5, %v5130_v39  ;;  %5133 = vtanh.f32 %v857_v44 }
 0x13e   : > { %v901_v24 = vadd.f32 0.5, %v885_v20  ;;  %v5941_v45 = vpop.f32.mrf.mxu0 }
 0x13f   : > { %v5132_v53 = vpop.eup %5131  ;;  %v5946_v60 = vadd.f32 %v5818_v29, %v5941_v45 }
 0x140   : > { %v896_v62 = vmul.f32 0.5, %v5132_v53 }
 0x141   : > { %v5841_v46 = vpop.permute.xlu2 %601  ;;  %v858_v1 = vmul.f32 0.5, %v5946_v60 }
 0x142   : > { %8660 = vst [vmem:[#allocation21_spill] sm:$0xff] %v5841_v46  ;;  %999 = vrot.lane.b32.xlu2 %v5841_v46, %s5577_s24  ;;  %v912_v8 = vadd.f32 0.5, %v896_v62 }
 0x143   : > { %933 = vrot.lane.b32.xlu1 %v900_v47, %s5584_s6  ;;  %v903_v47 = vadd.f32 0.5, %v887_v43  ;;  %v5134_v10 = vpop.eup %5133  ;;  %5135 = vtanh.f32 %v858_v1 }
 0x144   : > { %v889_v16 = vmul.f32 0.5, %v5134_v10 }
 0x146   : > { %v905_v20 = vadd.f32 0.5, %v889_v16 }
 0x14a   : > { %v5848_v49 = vpop.permute.xlu2 %609 }
 0x14b   : > { %8661 = vst [vmem:[#allocation22_spill] sm:$0xff] %v5848_v49  ;;  %1003 = vrot.lane.b32.xlu2 %v5848_v49, %s5577_s24 }
 0x153   : > { %v5858_v52 = vpop.permute.xlu2 %617 }
 0x154   : > { %8662 = vst [vmem:[#allocation23_spill] sm:$0xff] %v5858_v52  ;;  %1007 = vrot.lane.b32.xlu2 %v5858_v52, %s5577_s24 }
 0x159   : > { %v5865_v55 = vpop.permute.xlu1 %592 }
 0x15a   : > { %8663 = vst [vmem:[#allocation24_spill] sm:$0xff] %v5865_v55  ;;  %995 = vrot.lane.b32.xlu1 %v5865_v55, %s5577_s24 }
 0x15c   : > { %v5875_v58 = vpop.permute.xlu2 %625 }
 0x15d   : > { %8664 = vst [vmem:[#allocation25_spill] sm:$0xff] %v5875_v58  ;;  %1011 = vrot.lane.b32.xlu2 %v5875_v58, %s5577_s24 }
 0x162   : > { %v5885_v63 = vpop.permute.xlu0 %645 }
 0x163   : > { %8665 = vst [vmem:[#allocation26_spill] sm:$0xff] %v5885_v63  ;;  %v5887_v0 = vpop.permute.xlu1 %653  ;;  %1021 = vrot.lane.b32.xlu0 %v5885_v63, %s5577_s24 }
 0x164   : > { %8666 = vst [vmem:[#allocation27_spill] sm:$0xff] %v5887_v0 }
 0x165   : > { %v5893_v4 = vpop.permute.xlu2 %633 }
 0x166   : > { %8667 = vst [vmem:[#allocation28_spill] sm:$0xff] %v5893_v4  ;;  %1015 = vrot.lane.b32.xlu2 %v5893_v4, %s5577_s24 }
 0x16a   : > { %v5973_v44 = vpop.permute.xlu0 %1062 }
 0x16b   : > { %953 = vrot.lane.b32.xlu0 %v910_v6, %s5584_s6 }
 0x16c   : > { %v5903_v12 = vpop.permute.xlu1 %605 }
 0x16d   : > { %8668 = vst [vmem:[#allocation29_spill] sm:$0xff] %v5903_v12 }
 0x16e   : > { %v5905_v13 = vpop.permute.xlu2 %641 }
 0x16f   : > { %8669 = vst [vmem:[#allocation30_spill] sm:$0xff] %v5905_v13  ;;  %1019 = vrot.lane.b32.xlu2 %v5905_v13, %s5577_s24 }
 0x173   : > { %959 = vrot.lane.b32.xlu0 %v913_v15, %s5584_s6 }
 0x175   : > { %v5912_v19 = vpop.permute.xlu1 %613 }
 0x176   : > { %8670 = vst [vmem:[#allocation31_spill] sm:$0xff] %v5912_v19 }
 0x177   : > { %949 = vrot.lane.b32.xlu2 %v908_v17, %s5584_s6  ;;  %v5951_v6 = vpop.permute.xlu2 %597  ;;  %v866_v17 = vmul.f32 0.5, %v5958_v11 }
 0x178   : > { %8674 = vst [vmem:[#allocation35_spill] sm:$0xff] %v5951_v6 }
 0x179   : > { %5137 = vtanh.f32 %v866_v17  ;;  %v5991_v17 = vadd.f32 %v5818_v29, %v5834_v35 }
 0x17e   : > { %v5922_v34 = vpop.permute.xlu1 %621 }
 0x17f   : > { %8671 = vst [vmem:[#allocation32_spill] sm:$0xff] %v5922_v34  ;;  %935 = vrot.lane.b32.xlu2 %v901_v24, %s5584_s6  ;;  %v5136_v24 = vpop.eup %5135 }
 0x180   : > { %v890_v33 = vmul.f32 0.5, %v5136_v24  ;;  %v5138_v43 = vpop.eup %5137 }
 0x182   : > { %v906_v39 = vadd.f32 0.5, %v890_v33 }
 0x187   : > { %v5932_v40 = vpop.permute.xlu1 %629  ;;  %1025 = vrot.lane.b32.xlu2 %v5887_v0, %s5577_s24 }
 0x188   : > { %8672 = vst [vmem:[#allocation33_spill] sm:$0xff] %v5932_v40 }
 0x18f   : > { %939 = vrot.lane.b32.xlu2 %v903_v47, %s5584_s6  ;;  %v898_v47 = vmul.f32 0.5, %v5138_v43 }
 0x190   : > { %v5948_v61 = vpop.permute.xlu1 %637 }
 0x191   : > { %8673 = vst [vmem:[#allocation34_spill] sm:$0xff] %v5948_v61  ;;  %v914_v53 = vadd.f32 0.5, %v898_v47  ;;  %v6009_v47 = vadd.f32 %v5818_v29, %v5845_v48 }
 0x197   : > { %957 = vrot.lane.b32.xlu2 %v912_v8, %s5584_s6 }
 0x199   : > { %v5960_v15 = vpop.permute.xlu1 %649 }
 0x19a   : > { %8675 = vst [vmem:[#allocation36_spill] sm:$0xff] %v5960_v15  ;;  %1023 = vrot.lane.b32.xlu1 %v5960_v15, %s5577_s24 }
 0x19c   : > { %v5965_v18 = vpop.permute.xlu2 %999 }
 0x19f   : > { %943 = vrot.lane.b32.xlu2 %v905_v20, %s5584_s6  ;;  %v861_v20 = vmul.f32 0.5, %v5991_v17 }
 0x1a1   : > { %5139 = vtanh.f32 %v861_v20 }
 0x1a2   : > { %997 = vrot.lane.b32.xlu1 %v5951_v6, %s5577_s24 }
 0x1a5   : > { %v5970_v38 = vpop.permute.xlu2 %1003 }
 0x1a7   : > { %945 = vrot.lane.b32.xlu2 %v906_v39, %s5584_s6  ;;  %v5140_v39 = vpop.eup %5139 }
 0x1aa   : > { %1001 = vrot.lane.b32.xlu1 %v5903_v12, %s5577_s24 }
 0x1ac   : > { %v948_v1 = vpop.permute.xlu0 %947 }
 0x1ad   : > { %v987_v8 = vmul.f32 %v948_v1, %v5822_v30  ;;  %v6000_v30 = vadd.f32 %v5818_v29, %v5891_v3  ;;  %v863_v1 = vmul.f32 0.5, %v6009_v47 }
 0x1ae   : > { %v5977_v62 = vpop.permute.xlu2 %1007 }
 0x1af   : > { %961 = vrot.lane.b32.xlu2 %v914_v53, %s5584_s6  ;;  %v854_v33 = vmul.f32 0.5, %v6000_v30  ;;  %v893_v53 = vmul.f32 0.5, %v5140_v39  ;;  %v932_v39 = vpop.permute.xlu1 %931 }
 0x1b1   : > { %5141 = vtanh.f32 %v854_v33  ;;  %v856_v33 = vmul.f32 0.5, %v6015_v9 }
 0x1b2   : > { %1005 = vrot.lane.b32.xlu1 %v5912_v19, %s5577_s24  ;;  %5143 = vtanh.f32 %v863_v1 }
 0x1b3   : > { %5145 = vtanh.f32 %v856_v33 }
 0x1b7   : > { %v1012_v10 = vpop.permute.xlu2 %1011 }
 0x1b8   : > { %v5983_v16 = vmul.f32 %v1012_v10, %v987_v8  ;;  %v909_v8 = vadd.f32 0.5, %v893_v53  ;;  %v5142_v10 = vpop.eup %5141 }
 0x1b9   : > { %v886_v2 = vmul.f32 0.5, %v5142_v10  ;;  %v5144_v15 = vpop.eup %5143 }
 0x1ba   : > { %1009 = vrot.lane.b32.xlu1 %v5922_v34, %s5577_s24  ;;  %1113 = vrot.lane.b32.xlu2 %v5983_v16, %s5584_s6  ;;  %v895_v53 = vmul.f32 0.5, %v5144_v15 }
 0x1bb   : > { %v902_v0 = vadd.f32 0.5, %v886_v2  ;;  %v979_v2 = vmul.f32 %v932_v39, %v5826_v31 }
 0x1bc   : > { %v911_v13 = vadd.f32 0.5, %v895_v53 }
 0x1c0   : > { %v5994_v24 = vpop.permute.xlu2 %1015 }
 0x1c2   : > { %1013 = vrot.lane.b32.xlu1 %v5932_v40, %s5577_s24 }
 0x1c9   : > { %v6003_v43 = vpop.permute.xlu2 %1019 }
 0x1ca   : > { %1017 = vrot.lane.b32.xlu1 %v5948_v61, %s5577_s24  ;;  %v5146_v61 = vpop.eup %5145 }
 0x1cb   : > { %v888_v1 = vmul.f32 0.5, %v5146_v61 }
 0x1cd   : > { %v904_v29 = vadd.f32 0.5, %v888_v1 }
 0x1d1   : > { %v950_v20 = vpop.permute.xlu2 %949 }
 0x1d2   : > { %951 = vrot.lane.b32.xlu1 %v909_v8, %s5584_s6  ;;  %v934_v8 = vpop.permute.xlu1 %933 }
 0x1d3   : > { %v980_v39 = vmul.f32 %v934_v8, %v5830_v32  ;;  %v988_v32 = vmul.f32 %v950_v20, %v5881_v59 }
 0x1d5   : > { %v1022_v53 = vpop.permute.xlu0 %1021 }
 0x1d9   : > { %v936_v63 = vpop.permute.xlu2 %935 }
 0x1da   : > { %937 = vrot.lane.b32.xlu1 %v902_v0, %s5584_s6  ;;  %v996_v10 = vpop.permute.xlu1 %995  ;;  %v981_v15 = vmul.f32 %v936_v63, %v5897_v5 }
 0x1db   : > { %v6024_v0 = vmul.f32 %v996_v10, %v979_v2 }
 0x1e1   : > { %v6020_v4 = vpop.permute.xlu2 %1025 }
 0x1e2   : > { %955 = vrot.lane.b32.xlu1 %v911_v13, %s5584_s6  ;;  %v6030_v13 = vmul.f32 %v5965_v18, %v981_v15 }
 0x1e9   : > { %v940_v40 = vpop.permute.xlu2 %939 }
 0x1ea   : > { %941 = vrot.lane.b32.xlu1 %v904_v29, %s5584_s6 }
 0x1f1   : > { %v958_v61 = vpop.permute.xlu2 %957 }
 0x1f2   : > { %1097 = vrot.lane.b32.xlu1 %v6024_v0, %s5584_s6  ;;  %v992_v33 = vmul.f32 %v958_v61, %v5927_v36 }
 0x1f4   : > { %v6035_v1 = vmul.f32 %v1022_v53, %v992_v33 }
 0x1f9   : > { %v944_v18 = vpop.permute.xlu2 %943 }
 0x1fa   : > { %1101 = vrot.lane.b32.xlu1 %v6030_v13, %s5584_s6 }
 0x201   : > { %v946_v2 = vpop.permute.xlu2 %945 }
 0x202   : > { %1123 = vrot.lane.b32.xlu1 %v6035_v1, %s5584_s6  ;;  %v986_v36 = vmul.f32 %v946_v2, %v5946_v60  ;;  %v983_v2 = vmul.f32 %v940_v40, %v5917_v21 }
 0x204   : > { %v6063_v20 = vmul.f32 %v5970_v38, %v983_v2  ;;  %v985_v38 = vmul.f32 %v944_v18, %v5938_v42 }
 0x20c   : > { %v1024_v31 = vpop.permute.xlu1 %1023 }
 0x214   : > { %v998_v29 = vpop.permute.xlu1 %997 }
 0x215   : > { %v6040_v63 = vmul.f32 %v998_v29, %v980_v39 }
 0x217   : > { %1099 = vrot.lane.b32.xlu0 %v6040_v63, %s5584_s6 }
 0x21c   : > { %v1002_v5 = vpop.permute.xlu1 %1001 }
 0x224   : > { %v1006_v10 = vpop.permute.xlu1 %1005 }
 0x22c   : > { %v1010_v15 = vpop.permute.xlu1 %1009 }
 0x22d   : > { %v6045_v61 = vmul.f32 %v1010_v15, %v986_v36 }
 0x22f   : > { %1111 = vrot.lane.b32.xlu1 %v6045_v61, %s5584_s6 }
 0x234   : > { %v1014_v8 = vpop.permute.xlu1 %1013 }
 0x235   : > { %v6050_v33 = vmul.f32 %v1014_v8, %v988_v32 }
 0x237   : > { %1115 = vrot.lane.b32.xlu2 %v6050_v33, %s5584_s6 }
 0x23c   : > { %v1018_v53 = vpop.permute.xlu1 %1017 }
 0x244   : > { %v952_v39 = vpop.permute.xlu1 %951 }
 0x245   : > { %v989_v29 = vmul.f32 %v952_v39, %v5991_v17  ;;  %v954_v17 = vpop.permute.xlu0 %953  ;;  %v8608_v39 = vlaneseq }
 0x246   : > { %v990_v32 = vmul.f32 %v954_v17, %v5856_v51  ;;  %v6085_v51 = vmul.f32 %v5977_v62, %v985_v38 }
 0x247   : > { %v6056_v60 = vmul.f32 %v5994_v24, %v989_v29  ;;  %v6097_v42 = vshrl.u32 %v8608_v39, 7 }
 0x248   : > { %v6073_v40 = vmul.f32 %v1018_v53, %v990_v32 }
 0x249   : > { %1117 = vrot.lane.b32.xlu0 %v6056_v60, %s5584_s6  ;;  %5092 = vset.pattern.permute.xlu1 %v6097_v42  ;;  %v6113_v18 = vadd.s32 8, %v6097_v42  ;;  %vm1307_vm2 = vcmp.lt.s32.totalorder %v6097_v42, 7  ;;  %vm1161_vm3 = vcmp.lt.s32.totalorder %v6097_v42, 1  ;;  %v659_v32 = vadd.s32 4294967295, %v6097_v42 }
 0x24a   : > { %5093 = vset.pattern.permute.xlu2 %v6097_v42  ;;  %5095 = vset.pattern.permute.xlu0 %v6097_v42 }
 0x24b   : > { %8676 = vst [vmem:[#allocation37_spill] sm:$0xff] %v6113_v18  ;;  %vm661_vm4 = vcmp.ge.s32.totalorder %v659_v32, 0 }
 0x24c   : > { %v938_v36 = vpop.permute.xlu1 %937 }
 0x24d   : > { %v982_v59 = vmul.f32 %v938_v36, %v6000_v30  ;;  %v6117_v36 = vperm.slane %v5805_v23, 0 }
 0x24f   : > { %v6065_v15 = vmul.f32 %v1002_v5, %v982_v59 }
 0x251   : > { %1105 = vrot.lane.b32.xlu0 %v6063_v20, %s5584_s6  ;;  %1103 = vrot.lane.b32.xlu2 %v6065_v15, %s5584_s6 }
 0x254   : > { %v956_v24 = vpop.permute.xlu1 %955 }
 0x255   : > { %v991_v21 = vmul.f32 %v956_v24, %v6009_v47 }
 0x257   : > { %v6076_v30 = vmul.f32 %v6003_v43, %v991_v21  ;;  %v960_v43 = vpop.permute.xlu0 %959 }
 0x258   : > { %v993_v53 = vmul.f32 %v960_v43, %v5871_v56 }
 0x259   : > { %1121 = vrot.lane.b32.xlu0 %v6076_v30, %s5584_s6  ;;  %1119 = vrot.lane.b32.xlu2 %v6073_v40, %s5584_s6 }
 0x25a   : > { %v6094_v29 = vmul.f32 %v1024_v31, %v993_v53 }
 0x25c   : > { %v942_v5 = vpop.permute.xlu1 %941 }
 0x25d   : > { %v984_v8 = vmul.f32 %v942_v5, %v6015_v9  ;;  %v962_v9 = vpop.permute.xlu2 %961 }
 0x25e   : > { %v994_v62 = vmul.f32 %v962_v9, %v5958_v11  ;;  %v6120_v11 = vperm.slane %v5805_v23, 2 }
 0x25f   : > { %v6087_v47 = vmul.f32 %v1006_v10, %v984_v8  ;;  %v672_v10 = vadd.s32 1, %v6113_v18  ;;  %v5585_v8 = vmov 0.0  }
 0x260   : > { %v6106_v56 = vmul.f32 %v6020_v4, %v994_v62  ;;  %v6147_v18 = vsel %vm661_vm4, 1.0, %v5585_v8 }
 0x261   : > { %1109 = vrot.lane.b32.xlu0 %v6085_v51, %s5584_s6  ;;  %1107 = vrot.lane.b32.xlu2 %v6087_v47, %s5584_s6  ;;  %vm676_vm1 = vcmp.lt.s32.totalorder %v672_v10, 16 }
 0x262   : > { %v6129_v43 = vsel %vm676_vm1, 1.0, %v5585_v8 }
 0x264   : > { %v6110_v31 = vpop.permute.xlu1 %1097 }
 0x265   : > { %v8612_v4 = vrot.slane %v6110_v31, 7  ;;  %v6123_v59 = vpop.permute.xlu2 %1113  ;;  %v8609_v17 = vrot.slane %v6110_v31, 1 }
 0x269   : > { %1125 = vrot.lane.b32.xlu2 %v6094_v29, %s5584_s6 }
 0x26c   : > { %v1102_v2 = vpop.permute.xlu1 %1101 }
 0x26d   : > { %v1293_v21 = vrot.slane %v1102_v2, 1  ;;  %v1147_v39 = vrot.slane %v1102_v2, 7 }
 0x271   : > { %1127 = vrot.lane.b32.xlu2 %v6106_v56, %s5584_s6 }
 0x289   : > { %v1100_v24 = vpop.permute.xlu0 %1099 }
 0x28a   : > { %v1146_v38 = vrot.slane %v1100_v24, 7  ;;  %v1292_v5 = vrot.slane %v1100_v24, 1 }
 0x28c   : > { %v1322_v23 = vsel %vm1307_vm2, %v8609_v17, %v1292_v5  ;;  %v1176_v53 = vsel %vm1161_vm3, %v8612_v4, %v1146_v38  ;;  %v1321_v9 = vsel %vm1307_vm2, %v1292_v5, %v1293_v21  ;;  %v1175_v4 = vsel %vm1161_vm3, %v1146_v38, %v1147_v39 }
 0x28d   : > { %v1341_v62 = vmul.f32 %v6120_v11, %v1322_v23  ;;  %v1196_v10 = vmul.f32 %v6117_v36, %v1176_v53  ;;  %v1325_v24 = vmul.f32 %v6129_v43, %v1321_v9  ;;  %v8614_v23 = vrot.slane %v6123_v59, 7 }
 0x28e   : > { %v1180_v32 = vmul.f32 %v6147_v18, %v1175_v4 }
 0x28f   : > { %1373 = vrot.lane.b32.xlu0 %v1341_v62, %s5577_s24  ;;  %1229 = vrot.lane.b32.xlu2 %v1196_v10, %s5577_s24  ;;  %v1342_v17 = vmul.f32 %v6120_v11, %v1325_v24  ;;  %v8613_v62 = vrot.slane %v6123_v59, 1 }
 0x290   : > { %v1197_v38 = vmul.f32 %v6117_v36, %v1180_v32 }
 0x291   : > { %v1116_v5 = vpop.permute.xlu2 %1115  ;;  %1375 = vrot.lane.b32.xlu1 %v1342_v17, %s5577_s24 }
 0x292   : > { %v1154_v53 = vrot.slane %v1116_v5, 7  ;;  %v1300_v8 = vrot.slane %v1116_v5, 1 }
 0x294   : > { %v1168_v2 = vsel %vm1161_vm3, %v8614_v23, %v1154_v53  ;;  %v1314_v4 = vsel %vm1307_vm2, %v8613_v62, %v1300_v8 }
 0x295   : > { %v1204_v9 = vmul.f32 %v6117_v36, %v1168_v2  ;;  %v1349_v17 = vmul.f32 %v6120_v11, %v1314_v4 }
 0x297   : > { %1245 = vrot.lane.b32.xlu2 %v1204_v9, %s5577_s24 }
 0x299   : > { %1231 = vrot.lane.b32.xlu1 %v1197_v38, %s5577_s24 }
 0x29f   : > { %1389 = vrot.lane.b32.xlu2 %v1349_v17, %s5577_s24 }
 0x2ab   : > { %v1104_v10 = vpop.permute.xlu2 %1103 }
 0x2ac   : > { %v1148_v24 = vrot.slane %v1104_v10, 7  ;;  %v1294_v5 = vrot.slane %v1104_v10, 1 }
 0x2ae   : > { %v1320_v2 = vsel %vm1307_vm2, %v1293_v21, %v1294_v5  ;;  %v1174_v32 = vsel %vm1161_vm3, %v1147_v39, %v1148_v24 }
 0x2af   : > { %v1343_v9 = vmul.f32 %v6120_v11, %v1320_v2  ;;  %v1198_v38 = vmul.f32 %v6117_v36, %v1174_v32 }
 0x2b1   : > { %1377 = vrot.lane.b32.xlu0 %v1343_v9, %s5577_s24  ;;  %1233 = vrot.lane.b32.xlu2 %v1198_v38, %s5577_s24 }
 0x2b3   : > { %v1120_v4 = vpop.permute.xlu2 %1119 }
 0x2b4   : > { %v1156_v17 = vrot.slane %v1120_v4, 7  ;;  %v1302_v52 = vrot.slane %v1120_v4, 1 }
 0x2bb   : > { %v1118_v62 = vpop.permute.xlu0 %1117  ;;  %v6186_v38 = vpop.permute.xlu2 %1107 }
 0x2bc   : > { %v1155_v23 = vrot.slane %v1118_v62, 7  ;;  %v1301_v58 = vrot.slane %v1118_v62, 1 }
 0x2be   : > { %v1166_v10 = vsel %vm1161_vm3, %v1155_v23, %v1156_v17  ;;  %v1313_v21 = vsel %vm1307_vm2, %v1300_v8, %v1301_v58  ;;  %v1167_v39 = vsel %vm1161_vm3, %v1154_v53, %v1155_v23  ;;  %v1296_v53 = vrot.slane %v6186_v38, 1 }
 0x2bf   : > { %v1206_v2 = vmul.f32 %v6117_v36, %v1166_v10  ;;  %v1333_v32 = vmul.f32 %v6129_v43, %v1313_v21  ;;  %v1188_v9 = vmul.f32 %v6147_v18, %v1167_v39  ;;  %v1312_v10 = vsel %vm1307_vm2, %v1301_v58, %v1302_v52 }
 0x2c0   : > { %v1351_v4 = vmul.f32 %v6120_v11, %v1312_v10  ;;  %v1150_v58 = vrot.slane %v6186_v38, 7 }
 0x2c1   : > { %1249 = vrot.lane.b32.xlu2 %v1206_v2, %s5577_s24  ;;  %v1350_v62 = vmul.f32 %v6120_v11, %v1333_v32  ;;  %v1205_v34 = vmul.f32 %v6117_v36, %v1188_v9  ;;  %v1124_v9 = vpop.permute.xlu1 %1123 }
 0x2c2   : > { %v1304_v49 = vrot.slane %v1124_v9, 1 }
 0x2c3   : > { %1391 = vrot.lane.b32.xlu0 %v1350_v62, %s5577_s24  ;;  %1247 = vrot.lane.b32.xlu1 %v1205_v34, %s5577_s24  ;;  %v1106_v23 = vpop.permute.xlu0 %1105  ;;  %v6217_v19 = vpop.permute.xlu2 %1125 }
 0x2c4   : > { %v1295_v8 = vrot.slane %v1106_v23, 1  ;;  %v1149_v21 = vrot.slane %v1106_v23, 7 }
 0x2c6   : > { %v1319_v39 = vsel %vm1307_vm2, %v1294_v5, %v1295_v8  ;;  %v1318_v2 = vsel %vm1307_vm2, %v1295_v8, %v1296_v53  ;;  %v1173_v23 = vsel %vm1161_vm3, %v1148_v24, %v1149_v21  ;;  %v1172_v10 = vsel %vm1161_vm3, %v1149_v21, %v1150_v58 }
 0x2c7   : > { %v1327_v32 = vmul.f32 %v6129_v43, %v1319_v39  ;;  %v1345_v62 = vmul.f32 %v6120_v11, %v1318_v2  ;;  %v1182_v39 = vmul.f32 %v6147_v18, %v1173_v23  ;;  %v1200_v38 = vmul.f32 %v6117_v36, %v1172_v10 }
 0x2c9   : > { %1393 = vrot.lane.b32.xlu2 %v1351_v4, %s5577_s24  ;;  %v1344_v34 = vmul.f32 %v6120_v11, %v1327_v32  ;;  %v1112_v24 = vpop.permute.xlu1 %1111 }
 0x2ca   : > { %v1298_v23 = vrot.slane %v1112_v24, 1 }
 0x2cb   : > { %1379 = vrot.lane.b32.xlu1 %v1344_v34, %s5577_s24  ;;  %1381 = vrot.lane.b32.xlu0 %v1345_v62, %s5577_s24  ;;  %v1122_v5 = vpop.permute.xlu0 %1121  ;;  %v1199_v34 = vmul.f32 %v6117_v36, %v1182_v39 }
 0x2cc   : > { %v1303_v8 = vrot.slane %v1122_v5, 1  ;;  %v1157_v4 = vrot.slane %v1122_v5, 7  ;;  %v1305_v5 = vrot.slane %v6217_v19, 1 }
 0x2ce   : > { %v1311_v2 = vsel %vm1307_vm2, %v1302_v52, %v1303_v8  ;;  %v1165_v21 = vsel %vm1161_vm3, %v1156_v17, %v1157_v4 }
 0x2cf   : > { %v1335_v32 = vmul.f32 %v6129_v43, %v1311_v2  ;;  %v1190_v2 = vmul.f32 %v6147_v18, %v1165_v21 }
 0x2d1   : > { %1237 = vrot.lane.b32.xlu2 %v1200_v38, %s5577_s24  ;;  %v1352_v62 = vmul.f32 %v6120_v11, %v1335_v32 }
 0x2d3   : > { %1235 = vrot.lane.b32.xlu1 %v1199_v34, %s5577_s24  ;;  %1395 = vrot.lane.b32.xlu0 %v1352_v62, %s5577_s24  ;;  %v1110_v52 = vpop.permute.xlu0 %1109  ;;  %v1309_v34 = vsel %vm1307_vm2, %v1304_v49, %v1305_v5  ;;  %v1207_v62 = vmul.f32 %v6117_v36, %v1190_v2 }
 0x2d4   : > { %v1297_v10 = vrot.slane %v1110_v52, 1  ;;  %v1151_v12 = vrot.slane %v1110_v52, 7 }
 0x2d6   : > { %v1316_v39 = vsel %vm1307_vm2, %v1297_v10, %v1298_v23  ;;  %v1317_v38 = vsel %vm1307_vm2, %v1296_v53, %v1297_v10  ;;  %v1337_v53 = vmul.f32 %v6129_v43, %v1309_v34  ;;  %v1158_v10 = vrot.slane %v1124_v9, 7 }
 0x2d7   : > { %v1347_v17 = vmul.f32 %v6120_v11, %v1316_v39  ;;  %v1329_v32 = vmul.f32 %v6129_v43, %v1317_v38  ;;  %v1152_v39 = vrot.slane %v1112_v24, 7  ;;  %v1159_v38 = vrot.slane %v6217_v19, 7 }
 0x2d8   : > { %v1164_v46 = vsel %vm1161_vm3, %v1157_v4, %v1158_v10  ;;  %v1354_v2 = vmul.f32 %v6120_v11, %v1337_v53  ;;  %v1310_v4 = vsel %vm1307_vm2, %v1303_v8, %v1304_v49  ;;  %v1128_v8 = vpop.permute.xlu2 %1127 }
 0x2d9   : > { %1385 = vrot.lane.b32.xlu2 %v1347_v17, %s5577_s24  ;;  %v1346_v21 = vmul.f32 %v6120_v11, %v1329_v32  ;;  %v1170_v17 = vsel %vm1161_vm3, %v1151_v12, %v1152_v39  ;;  %v1208_v52 = vmul.f32 %v6117_v36, %v1164_v46  ;;  %v1163_v9 = vsel %vm1161_vm3, %v1158_v10, %v1159_v38 }
 0x2da   : > { %v1202_v32 = vmul.f32 %v6117_v36, %v1170_v17  ;;  %v1192_v19 = vmul.f32 %v6147_v18, %v1163_v9  ;;  %v1353_v24 = vmul.f32 %v6120_v11, %v1310_v4  ;;  %v1171_v46 = vsel %vm1161_vm3, %v1150_v58, %v1151_v12 }
 0x2db   : > { %1251 = vrot.lane.b32.xlu0 %v1207_v62, %s5577_s24  ;;  %1383 = vrot.lane.b32.xlu1 %v1346_v21, %s5577_s24  ;;  %v8677_v62 = vrot.slane %v6123_v59, 7  ;;  %v1184_v53 = vmul.f32 %v6147_v18, %v1171_v46  ;;  %v8678_v12 = vrot.slane %v6123_v59, 1  ;;  %v1066_v4 = vmul.f32 %v5973_v44, %v6040_v63 }
 0x2dc   : > { %v1209_v34 = vmul.f32 %v6117_v36, %v1192_v19  ;;  %v1306_v19 = vrot.slane %v1128_v8, 1  ;;  %v8680_v63 = vrot.slane %v6110_v31, 1 }
 0x2dd   : > { %v1169_v21 = vsel %vm1161_vm3, %v1152_v39, %v8677_v62  ;;  %v1201_v10 = vmul.f32 %v6117_v36, %v1184_v53  ;;  %v1315_v58 = vsel %vm1307_vm2, %v1298_v23, %v8678_v12 }
 0x2de   : > { %v1186_v49 = vmul.f32 %v6147_v18, %v1169_v21  ;;  %v1331_v39 = vmul.f32 %v6129_v43, %v1315_v58  ;;  %v1308_v59 = vsel %vm1307_vm2, %v1305_v5, %v1306_v19 }
 0x2e0   : > { %v1203_v17 = vmul.f32 %v6117_v36, %v1186_v49  ;;  %v1323_v49 = vsel %vm1307_vm2, %v1306_v19, %v8680_v63  ;;  %v1069_v63 = vmul.f32 %v5973_v44, %v6063_v20 }
 0x2e1   : > { %1399 = vrot.lane.b32.xlu2 %v1354_v2, %s5577_s24  ;;  %v1160_v2 = vrot.slane %v1128_v8, 7  ;;  %v1339_v8 = vmul.f32 %v6129_v43, %v1323_v49 }
 0x2e3   : > { %1253 = vrot.lane.b32.xlu0 %v1208_v52, %s5577_s24  ;;  %1241 = vrot.lane.b32.xlu1 %v1202_v32, %s5577_s24  ;;  %v1162_v52 = vsel %vm1161_vm3, %v1159_v38, %v1160_v2  ;;  %v1348_v32 = vmul.f32 %v6120_v11, %v1331_v39  ;;  %v8679_v38 = vrot.slane %v6110_v31, 7 }
 0x2e4   : > { %v1210_v9 = vmul.f32 %v6117_v36, %v1162_v52 }
 0x2e5   : > { %v1177_v46 = vsel %vm1161_vm3, %v1160_v2, %v8679_v38 }
 0x2e6   : > { %v1178_v53 = vmul.f32 %v6147_v18, %v1177_v46 }
 0x2e8   : > { %v1195_v5 = vmul.f32 %v6117_v36, %v1178_v53  ;;  %v1067_v36 = vmul.f32 %v5973_v44, %v6030_v13  ;;  %v1068_v13 = vmul.f32 %v5973_v44, %v6065_v15 }
 0x2e9   : > { %v1230_v23 = vpop.permute.xlu2 %1229 }
 0x2eb   : > { %1397 = vrot.lane.b32.xlu0 %v1353_v24, %s5577_s24  ;;  %1255 = vrot.lane.b32.xlu1 %v1209_v34, %s5577_s24  ;;  %v1355_v24 = vmul.f32 %v6120_v11, %v1308_v59  ;;  %v1276_v34 = vadd.f32 %v1230_v23, %v1066_v4 }
 0x2f3   : > { %1239 = vrot.lane.b32.xlu0 %v1201_v10, %s5577_s24  ;;  %1243 = vrot.lane.b32.xlu1 %v1203_v17, %s5577_s24  ;;  %v1356_v10 = vmul.f32 %v6120_v11, %v1339_v8  ;;  %v1246_v17 = vpop.permute.xlu2 %1245 }
 0x2fb   : > { %1387 = vrot.lane.b32.xlu0 %v1348_v32, %s5577_s24  ;;  %1257 = vrot.lane.b32.xlu1 %v1210_v9, %s5577_s24  ;;  %v1390_v58 = vpop.permute.xlu2 %1389  ;;  %v1074_v9 = vmul.f32 %v5973_v44, %v6050_v33 }
 0x2fd   : > { %v1284_v19 = vadd.f32 %v1246_v17, %v1074_v9  ;;  %v1077_v9 = vmul.f32 %v5973_v44, %v6076_v30 }
 0x301   : > { %v6306_v2 = vpop.permute.xlu0 %1373 }
 0x303   : > { %v1376_v62 = vpop.permute.xlu1 %1375  ;;  %1401 = vrot.lane.b32.xlu1 %v1355_v24, %s5577_s24  ;;  %v1075_v24 = vmul.f32 %v5973_v44, %v6056_v60 }
 0x304   : > { %v1422_v21 = vadd.f32 %v1376_v62, %v1276_v34 }
 0x306   : > { %1455 = vrot.lane.b32.xlu0 %v1422_v21, %s5584_s6 }
 0x30b   : > { %1227 = vrot.lane.b32.xlu1 %v1195_v5, %s5577_s24  ;;  %v1232_v12 = vpop.permute.xlu1 %1231  ;;  %v1234_v32 = vpop.permute.xlu2 %1233  ;;  %v1076_v5 = vmul.f32 %v5973_v44, %v6073_v40 }
 0x30c   : > { %v1277_v31 = vadd.f32 %v1232_v12, %v1067_v36  ;;  %v1278_v38 = vadd.f32 %v1234_v32, %v1068_v13  ;;  %v1070_v36 = vmul.f32 %v5973_v44, %v6087_v47  ;;  %v1073_v47 = vmul.f32 %v5973_v44, %v5983_v16 }
 0x313   : > { %1403 = vrot.lane.b32.xlu1 %v1356_v10, %s5577_s24  ;;  %s4596_s24 = scalar_lea.hbm %s8723_s28, %s4983_s2 }
 0x314   : > { %s4599_s17 = sshll.u32 %s4596_s24, 4  ;;  %s4600_s17 = int_to_ptr.hbm [resolvable:$true] %s4599_s17 }
 0x315   : > { %s5481_s25 = sshra.s32 %s4600_s17, 4  ;;  %s5482_s25 = int_to_ptr.hbm [resolvable:$true] %s5481_s25 }
 0x316   : > { %s5483_s14 = scalar_lea.hbm %s5482_s25, 128  ;;  %p5488_p7 = scmp.lt.s32.totalorder %s5482_s25, %s8723_s28 }
 0x317   : > { %p5484_p1 = scmp.ne.s32.totalorder %s5482_s25, %s5483_s14  ;;  %p5489_p8 = scmp.lt.s32.totalorder %s5487_s21, %s5483_s14 }
 0x319   : > { %p5485_p5 = pnand %p5484_p1, %p5733_p4  ;;  %p5490_p9 = por %p5489_p8, %p5488_p7 }
 0x31b   : > { %v1250_v11 = vpop.permute.xlu2 %1249  ;;  %p5486_p12 = pneg %p5485_p5 }
 0x31c   : > { %v1286_v60 = vadd.f32 %v1250_v11, %v1076_v5 }
 0x31d   : > { %p5491_p10 = pnand %p5490_p9, %p5486_p12 }
 0x323   : > { %v1378_v39 = vpop.permute.xlu0 %1377  ;;  %v1394_v46 = vpop.permute.xlu2 %1393 }
 0x324   : > { %v1423_v52 = vadd.f32 %v1378_v39, %v1277_v31 }
 0x326   : > { %1457 = vrot.lane.b32.xlu0 %v1423_v52, %s5584_s6 }
 0x32b   : > { %v1238_v12 = vpop.permute.xlu2 %1237 }
 0x32c   : > { %v1280_v31 = vadd.f32 %v1238_v12, %v1070_v36 }
 0x335   : > { %v1248_v59 = vpop.permute.xlu1 %1247  ;;  %v1392_v23 = vpop.permute.xlu0 %1391 }
 0x336   : > { %v1430_v4 = vadd.f32 %v1392_v23, %v1284_v19  ;;  %v1285_v34 = vadd.f32 %v1248_v59, %v1075_v24 }
 0x338   : > { %1471 = vrot.lane.b32.xlu0 %v1430_v4, %s5584_s6  ;;  %v1431_v53 = vadd.f32 %v1394_v46, %v1285_v34  ;;  %v1071_v4 = vmul.f32 %v5973_v44, %v6085_v51  ;;  %v1386_v46 = vpop.permute.xlu2 %1385 }
 0x33d   : > { %v1380_v62 = vpop.permute.xlu1 %1379  ;;  %v1382_v21 = vpop.permute.xlu0 %1381 }
 0x33e   : > { %v1424_v33 = vadd.f32 %v1380_v62, %v1278_v38 }
 0x340   : > { %1459 = vrot.lane.b32.xlu1 %v1424_v33, %s5584_s6  ;;  %1473 = vrot.lane.b32.xlu0 %v1431_v53, %s5584_s6 }
 0x345   : > { %v1236_v49 = vpop.permute.xlu1 %1235  ;;  %v1396_v15 = vpop.permute.xlu0 %1395 }
 0x346   : > { %v1279_v8 = vadd.f32 %v1236_v49, %v1069_v63  ;;  %v1432_v10 = vadd.f32 %v1396_v15, %v1286_v60 }
 0x348   : > { %v1425_v17 = vadd.f32 %v1382_v21, %v1279_v8  ;;  %1475 = vrot.lane.b32.xlu1 %v1432_v10, %s5584_s6  ;;  %v1072_v21 = vmul.f32 %v5973_v44, %v6045_v61 }
 0x34a   : > { %1461 = vrot.lane.b32.xlu0 %v1425_v17, %s5584_s6 }
 0x34d   : > { %v1384_v39 = vpop.permute.xlu1 %1383  ;;  %v1252_v40 = vpop.permute.xlu0 %1251 }
 0x34e   : > { %v1426_v52 = vadd.f32 %v1384_v39, %v1280_v31  ;;  %v1287_v11 = vadd.f32 %v1252_v40, %v1077_v9  ;;  %v1078_v9 = vmul.f32 %v5973_v44, %v6035_v1 }
 0x350   : > { %1463 = vrot.lane.b32.xlu1 %v1426_v52, %s5584_s6 }
 0x355   : > { %v1242_v20 = vpop.permute.xlu1 %1241  ;;  %v1254_v32 = vpop.permute.xlu0 %1253 }
 0x356   : > { %v1282_v33 = vadd.f32 %v1242_v20, %v1072_v21 }
 0x35d   : > { %v6331_v19 = vpop.permute.xlu1 %1255  ;;  %v1398_v59 = vpop.permute.xlu0 %1397 }
 0x35e   : > { %v1433_v23 = vadd.f32 %v1398_v59, %v1287_v11  ;;  %v1288_v11 = vadd.f32 %v1254_v32, %v1078_v9  ;;  %v1400_v59 = vpop.permute.xlu2 %1399 }
 0x360   : > { %1477 = vrot.lane.b32.xlu2 %v1433_v23, %s5584_s6  ;;  %v1434_v23 = vadd.f32 %v1400_v59, %v1288_v11 }
 0x365   : > { %v1244_v24 = vpop.permute.xlu1 %1243  ;;  %v1240_v13 = vpop.permute.xlu0 %1239 }
 0x366   : > { %v1283_v34 = vadd.f32 %v1244_v24, %v1073_v47  ;;  %v1281_v38 = vadd.f32 %v1240_v13, %v1071_v4 }
 0x368   : > { %v1429_v62 = vadd.f32 %v1390_v58, %v1283_v34  ;;  %v1427_v30 = vadd.f32 %v1386_v46, %v1281_v38  ;;  %v1065_v58 = vmul.f32 %v5973_v44, %v6024_v0 }
 0x36a   : > { %1469 = vrot.lane.b32.xlu1 %v1429_v62, %s5584_s6  ;;  %1465 = vrot.lane.b32.xlu0 %v1427_v30, %s5584_s6  ;;  %v5586_v30 = vmov 32.0  }
 0x36b   : > { %5147 = vrcp.f32 %v5586_v30 }
 0x36d   : > { %v6342_v53 = vpop.permute.xlu1 %1257  ;;  %v1388_v16 = vpop.permute.xlu0 %1387 }
 0x36e   : > { %v1428_v5 = vadd.f32 %v1388_v16, %v1282_v33 }
 0x371   : > { %v5148_v16 = vpop.eup %5147 }
 0x372   : > { %1467 = vrot.lane.b32.xlu0 %v1428_v5, %s5584_s6  ;;  %vm1572_vm5 = vweird.f32 %v5148_v16 }
 0x375   : > { %v6345_v51 = vpop.permute.xlu1 %1401 }
 0x378   : > { %v1456_v15 = vpop.permute.xlu0 %1455 }
 0x379   : > { %v1502_v17 = vadd.f32 %v1456_v15, %v5816_v28 }
 0x37b   : > { %v1522_v0 = vsel %vm755_vm0, %v1502_v17, 0.0 }
 0x37d   : > { %v1228_v60 = vpop.permute.xlu1 %1227 }
 0x37e   : > { %v1275_v63 = vadd.f32 %v1228_v60, %v1065_v58 }
 0x380   : > { %v1421_v49 = vadd.f32 %v6306_v2, %v1275_v63 }
 0x382   : > { %1453 = vrot.lane.b32.xlu2 %v1421_v49, %s5584_s6 }
 0x385   : > { %v6354_v12 = vpop.permute.xlu1 %1403 }
 0x398   : > { %v1458_v61 = vpop.permute.xlu0 %1457 }
 0x399   : > { %v1503_v8 = vadd.f32 %v1458_v61, %v5873_v57 }
 0x39b   : > { %v1525_v10 = vsel %vm755_vm0, %v1503_v8, 0.0 }
 0x39c   : > { %1526 = vadd.xlane.f32.xlu0 %v1525_v10 }
 0x3aa   : > { %v1472_v36 = vpop.permute.xlu0 %1471 }
 0x3ab   : > { %v6358_v31 = vadd.f32 %v1472_v36, %v5814_v27  ;;  %1523 = vadd.xlane.f32.xlu2 %v1522_v0 }
 0x3ad   : > { %v1546_v2 = vsel %vm755_vm0, %v6358_v31, 0.0 }
 0x3ae   : > { %1547 = vadd.xlane.f32.xlu0 %v1546_v2 }
 0x3b2   : > { %v1460_v39 = vpop.permute.xlu1 %1459 }
 0x3b3   : > { %v1504_v57 = vadd.f32 %v1460_v39, %v5891_v3  ;;  %v6373_v3 = vpop.permute.xlu0 %1473 }
 0x3b5   : > { %v1528_v40 = vsel %vm755_vm0, %v1504_v57, 0.0 }
 0x3b6   : > { %1529 = vadd.xlane.f32.xlu2 %v1528_v40 }
 0x3ba   : > { %v6364_v28 = vpop.permute.xlu1 %1475  ;;  %v6376_v4 = vpop.permute.xlu2 %1477 }
 0x3bc   : > { %v1462_v47 = vpop.permute.xlu0 %1461 }
 0x3c2   : > { %v1464_v52 = vpop.permute.xlu1 %1463 }
 0x3c3   : > { %v6367_v20 = vadd.f32 %v1464_v52, %v5919_v22 }
 0x3c5   : > { %v1534_v27 = vsel %vm755_vm0, %v6367_v20, 0.0 }
 0x3c6   : > { %1535 = vadd.xlane.f32.xlu1 %v1534_v27 }
 0x3ce   : > { %1479 = vrot.lane.b32.xlu2 %v1434_v23, %s5584_s6 }
 0x3dc   : > { %v1466_v24 = vpop.permute.xlu0 %1465  ;;  %v1454_v34 = vpop.permute.xlu2 %1453 }
 0x3dd   : > { %v6379_v22 = vadd.f32 %v1466_v24, %v5929_v37  ;;  %v1501_v1 = vadd.f32 %v1454_v34, %v5812_v26  ;;  %v1470_v38 = vpop.permute.xlu1 %1469  ;;  %v6391_v37 = vadd.f32 %v1462_v47, %v5907_v14  ;;  %v1080_v47 = vmul.f32 %v5973_v44, %v6106_v56 }
 0x3de   : > { %v6386_v46 = vadd.f32 %v1470_v38, %v5810_v25  ;;  %v1568_v25 = vmul.f32 32.0, %v5148_v16 }
 0x3df   : > { %v1537_v13 = vsel %vm755_vm0, %v6379_v22, 0.0  ;;  %v1519_v32 = vsel %vm755_vm0, %v1501_v1, 0.0  ;;  %v1531_v21 = vsel %vm755_vm0, %v6391_v37, 0.0 }
 0x3e0   : > { %1538 = vadd.xlane.f32.xlu1 %v1537_v13  ;;  %v1543_v62 = vsel %vm755_vm0, %v6386_v46, 0.0  ;;  %v1569_v58 = vsub.f32 1.0, %v1568_v25 }
 0x3e2   : > { %v1570_v60 = vmul.f32 %v5148_v16, %v1569_v58 }
 0x3e4   : > { %v1468_v26 = vpop.permute.xlu0 %1467  ;;  %v1571_v14 = vadd.f32 %v5148_v16, %v1570_v60 }
 0x3e5   : > { %v6396_v33 = vadd.f32 %v1468_v26, %v5941_v45 }
 0x3e6   : > { %v6400_v63 = vsel %vm1572_vm5, %v5148_v16, %v1571_v14 }
 0x3e7   : > { %v1540_v5 = vsel %vm755_vm0, %v6396_v33, 0.0 }
 0x3e8   : > { %1520 = vadd.xlane.f32.xlu1 %v1519_v32 }
 0x3f0   : > { %1544 = vadd.xlane.f32.xlu1 %v1543_v62 }
 0x3f7   : > { %1532 = vadd.xlane.f32.xlu2 %v1531_v21 }
 0x3ff   : > { %1541 = vadd.xlane.f32.xlu2 %v1540_v5 }
 0x40f   : > { %v1527_v49 = vpop.xlane.xlu0 %1526 }
 0x410   : > { %v1576_v15 = vmul.f32 %v6400_v63, %v1527_v49 }
 0x412   : > { %v6403_v61 = vsub.f32 %v1503_v8, %v1576_v15  ;;  %v1079_v8 = vmul.f32 %v5973_v44, %v6094_v29  ;;  %v1290_v29 = vadd.f32 %v6342_v53, %v1080_v47  ;;  %v6438_v44 = vadd.f32 %v6364_v28, %v5837_v41 }
 0x413   : > { %v6477_v15 = vadd.f32 %v6376_v4, %v5845_v48 }
 0x414   : > { %v1608_v45 = vmul.f32 %v6403_v61, %v6403_v61  ;;  %v1289_v9 = vadd.f32 %v6331_v19, %v1079_v8  ;;  %v1436_v24 = vadd.f32 %v6354_v12, %v1290_v29  ;;  %v6443_v12 = vadd.f32 %v6373_v3, %v5834_v35 }
 0x415   : > { %v1552_v41 = vsel %vm755_vm0, %v6438_v44, 0.0 }
 0x416   : > { %v1628_v10 = vsel %vm755_vm0, %v1608_v45, 0.0  ;;  %v1435_v59 = vadd.f32 %v6345_v51, %v1289_v9  ;;  %v1549_v3 = vsel %vm755_vm0, %v6443_v12, 0.0  ;;  %v1555_v45 = vsel %vm755_vm0, %v6477_v15, 0.0 }
 0x417   : > { %1629 = vadd.xlane.f32.xlu1 %v1628_v10 }
 0x41e   : > { %v1524_v36 = vpop.xlane.xlu2 %1523 }
 0x41f   : > { %v1575_v0 = vmul.f32 %v6400_v63, %v1524_v36 }
 0x421   : > { %v6409_v2 = vsub.f32 %v1502_v17, %v1575_v0 }
 0x423   : > { %v1607_v39 = vmul.f32 %v6409_v2, %v6409_v2 }
 0x425   : > { %v1625_v40 = vsel %vm755_vm0, %v1607_v39, 0.0 }
 0x426   : > { %1626 = vadd.xlane.f32.xlu0 %v1625_v40 }
 0x429   : > { %v1530_v52 = vpop.xlane.xlu2 %1529 }
 0x42a   : > { %v1577_v27 = vmul.f32 %v6400_v63, %v1530_v52 }
 0x42c   : > { %v6418_v11 = vsub.f32 %v1504_v57, %v1577_v27 }
 0x42e   : > { %v1609_v17 = vmul.f32 %v6418_v11, %v6418_v11 }
 0x430   : > { %1481 = vrot.lane.b32.xlu1 %v1435_v59, %s5584_s6  ;;  %v1631_v23 = vsel %vm755_vm0, %v1609_v17, 0.0 }
 0x431   : > { %1632 = vadd.xlane.f32.xlu0 %v1631_v23  ;;  %v1480_v38 = vpop.permute.xlu2 %1479 }
 0x432   : > { %v6483_v10 = vadd.f32 %v1480_v38, %v5852_v50 }
 0x434   : > { %v1558_v48 = vsel %vm755_vm0, %v6483_v10, 0.0 }
 0x439   : > { %v1536_v19 = vpop.xlane.xlu1 %1535 }
 0x43a   : > { %v1579_v56 = vmul.f32 %v6400_v63, %v1536_v19 }
 0x43c   : > { %v6447_v26 = vsub.f32 %v6367_v20, %v1579_v56  ;;  %v4960_v56 = vld [vmem:[#allocation7] sm:$0xff] }
 0x43e   : > { %v1611_v5 = vmul.f32 %v6447_v26, %v6447_v26 }
 0x445   : > { %1483 = vrot.lane.b32.xlu0 %v1436_v24, %s5584_s6 }
 0x453   : > { %v1539_v57 = vpop.xlane.xlu1 %1538 }
 0x454   : > { %v1580_v36 = vmul.f32 %v6400_v63, %v1539_v57 }
 0x456   : > { %v6487_v0 = vsub.f32 %v6379_v22, %v1580_v36 }
 0x458   : > { %v1612_v40 = vmul.f32 %v6487_v0, %v6487_v0 }
 0x45a   : > { %v1640_v50 = vsel %vm755_vm0, %v1612_v40, 0.0 }
 0x45b   : > { %v1521_v51 = vpop.xlane.xlu1 %1520 }
 0x45c   : > { %v1574_v13 = vmul.f32 %v6400_v63, %v1521_v51 }
 0x45e   : > { %v6431_v34 = vsub.f32 %v1501_v1, %v1574_v13  ;;  %v1548_v1 = vpop.xlane.xlu0 %1547  ;;  %v4961_v13 = vld [vmem:[#allocation7 + $0x8] sm:$0xff] }
 0x45f   : > { %v1583_v28 = vmul.f32 %v6400_v63, %v1548_v1  ;;  %1974 = vmatpush.bf16.msra.mxu1 %v4961_v13  ;;  %4986 = vmatpush.bf16.msra.mxu2 %v4961_v13 }
 0x460   : > { %v1606_v32 = vmul.f32 %v6431_v34, %v6431_v34 }
 0x461   : > { %v6466_v58 = vsub.f32 %v6358_v31, %v1583_v28 }
 0x462   : > { %v1622_v62 = vsel %vm755_vm0, %v1606_v32, 0.0 }
 0x463   : > { %1623 = vadd.xlane.f32.xlu2 %v1622_v62  ;;  %v1545_v53 = vpop.xlane.xlu1 %1544  ;;  %v1615_v14 = vmul.f32 %v6466_v58, %v6466_v58  ;;  %1975 = vmatpush.bf16.msra.mxu1 %v4960_v56 }
 0x464   : > { %v1582_v30 = vmul.f32 %v6400_v63, %v1545_v53  ;;  %4987 = vmatpush.bf16.msra.mxu2 %v4960_v56 }
 0x465   : > { %v1649_v31 = vsel %vm755_vm0, %v1615_v14, 0.0 }
 0x466   : > { %v6457_v35 = vsub.f32 %v6386_v46, %v1582_v30 }
 0x468   : > { %v1614_v46 = vmul.f32 %v6457_v35, %v6457_v35 }
 0x46a   : > { %v1533_v21 = vpop.xlane.xlu2 %1532  ;;  %v1646_v49 = vsel %vm755_vm0, %v1614_v46, 0.0 }
 0x46b   : > { %v1578_v16 = vmul.f32 %v6400_v63, %v1533_v21  ;;  %1553 = vadd.xlane.f32.xlu2 %v1552_v41 }
 0x46d   : > { %v6454_v25 = vsub.f32 %v6391_v37, %v1578_v16  ;;  %v1637_v37 = vsel %vm755_vm0, %v1611_v5, 0.0 }
 0x46f   : > { %1550 = vadd.xlane.f32.xlu0 %v1549_v3  ;;  %v1610_v20 = vmul.f32 %v6454_v25, %v6454_v25 }
 0x471   : > { %v1634_v60 = vsel %vm755_vm0, %v1610_v20, 0.0 }
 0x472   : > { %1635 = vadd.xlane.f32.xlu1 %v1634_v60  ;;  %v1542_v4 = vpop.xlane.xlu2 %1541 }
 0x473   : > { %1638 = vadd.xlane.f32.xlu2 %v1637_v37  ;;  %v1581_v39 = vmul.f32 %v6400_v63, %v1542_v4 }
 0x475   : > { %v6495_v52 = vsub.f32 %v6396_v33, %v1581_v39 }
 0x477   : > { %1647 = vadd.xlane.f32.xlu0 %v1646_v49  ;;  %v1613_v22 = vmul.f32 %v6495_v52, %v6495_v52 }
 0x479   : > { %v1643_v8 = vsel %vm755_vm0, %v1613_v22, 0.0 }
 0x47a   : > { %1650 = vadd.xlane.f32.xlu1 %v1649_v31 }
 0x47b   : > { %1556 = vadd.xlane.f32.xlu2 %v1555_v45 }
 0x483   : > { %1559 = vadd.xlane.f32.xlu2 %v1558_v48 }
 0x48a   : > { %v1630_v27 = vpop.xlane.xlu1 %1629 }
 0x48b   : > { %1641 = vadd.xlane.f32.xlu2 %v1640_v50 }
 0x493   : > { %1644 = vadd.xlane.f32.xlu2 %v1643_v8 }
 0x499   : > { %v1627_v33 = vpop.xlane.xlu0 %1626 }
 0x49a   : > { %v1671_v19 = vmul.f32 %v1627_v33, %v6400_v63 }
 0x49c   : > { %v1687_v57 = vadd.f32 1e-05, %v1671_v19 }
 0x49e   : > { %5149 = vrsqrt.f32 %v1687_v57  ;;  %vm1718_vm7 = vweird.f32 %v1687_v57 }
 0x4a2   : > { %v1482_v9 = vpop.permute.xlu1 %1481 }
 0x4a3   : > { %v6502_v59 = vadd.f32 %v1482_v9, %v5863_v54  ;;  %v1672_v54 = vmul.f32 %v1630_v27, %v6400_v63 }
 0x4a4   : > { %v1633_v23 = vpop.xlane.xlu0 %1632  ;;  %v5150_v32 = vpop.eup %5149 }
 0x4a5   : > { %v1561_v17 = vsel %vm755_vm0, %v6502_v59, 0.0  ;;  %v1673_v51 = vmul.f32 %v1633_v23, %v6400_v63  ;;  %v6514_v38 = vadd.f32 1e-05, %v1672_v54  ;;  %vm1719_vm6 = vweird.f32 %v5150_v32 }
 0x4a6   : > { %1562 = vadd.xlane.f32.xlu2 %v1561_v17  ;;  %vm6541_vm8 = vmor %vm1718_vm7, %vm1719_vm6 }
 0x4a7   : > { %v6516_v62 = vadd.f32 1e-05, %v1673_v51  ;;  %5151 = vrsqrt.f32 %v6514_v38  ;;  %vm1728_vm14 = vweird.f32 %v6514_v38 }
 0x4a9   : > { %5153 = vrsqrt.f32 %v6516_v62  ;;  %vm1738_vm15 = vweird.f32 %v6516_v62 }
 0x4ad   : > { %v6521_v16 = vpop.eup %5151 }
 0x4ae   : > { %v1723_v3 = vmul.f32 %v6521_v16, %v6514_v38  ;;  %vm1729_vm12 = vweird.f32 %v6521_v16 }
 0x4af   : > { %v6523_v28 = vpop.eup %5153  ;;  %vm6593_vm1 = vmor %vm1728_vm14, %vm1729_vm12 }
 0x4b0   : > { %v1733_v60 = vmul.f32 %v6523_v28, %v6516_v62  ;;  %v1724_v14 = vmul.f32 %v6521_v16, %v1723_v3  ;;  %vm1739_vm13 = vweird.f32 %v6523_v28 }
 0x4b1   : > { %vm1740_vm4 = vmor %vm1738_vm15, %vm1739_vm13 }
 0x4b2   : > { %v1734_v4 = vmul.f32 %v6523_v28, %v1733_v60  ;;  %v1725_v9 = vmul.f32 0.5, %v1724_v14 }
 0x4b7   : > { %v1484_v47 = vpop.permute.xlu0 %1483 }
 0x4b8   : > { %v6507_v29 = vadd.f32 %v1484_v47, %v5953_v7  ;;  %v1713_v7 = vmul.f32 %v5150_v32, %v1687_v57  ;;  %v1735_v47 = vmul.f32 0.5, %v1734_v4 }
 0x4ba   : > { %v1564_v24 = vsel %vm755_vm0, %v6507_v29, 0.0  ;;  %v1714_v53 = vmul.f32 %v5150_v32, %v1713_v7  ;;  %v1726_v7 = vsub.f32 1.5, %v1725_v9 }
 0x4bb   : > { %1565 = vadd.xlane.f32.xlu0 %v1564_v24 }
 0x4bc   : > { %v1715_v41 = vmul.f32 0.5, %v1714_v53  ;;  %v1727_v60 = vmul.f32 %v6521_v16, %v1726_v7 }
 0x4be   : > { %v1716_v20 = vsub.f32 1.5, %v1715_v41  ;;  %v1731_v62 = vsel %vm6593_vm1, %v6521_v16, %v1727_v60 }
 0x4c0   : > { %v1717_v45 = vmul.f32 %v5150_v32, %v1716_v20 }
 0x4c2   : > { %v1721_v17 = vsel %vm6541_vm8, %v5150_v32, %v1717_v45 }
 0x4c3   : > { %v1863_v32 = vmul.f32 %v1721_v17, %v6409_v2 }
 0x4d6   : > { %v1624_v1 = vpop.xlane.xlu2 %1623 }
 0x4d7   : > { %v1670_v30 = vmul.f32 %v1624_v1, %v6400_v63  ;;  %v1736_v1 = vsub.f32 1.5, %v1735_v47 }
 0x4d9   : > { %v1686_v21 = vadd.f32 1e-05, %v1670_v30  ;;  %v6564_v30 = vld [vmem:[%s8578_s10] ss:$0 sm:$0xff] }
 0x4db   : > { %5155 = vrsqrt.f32 %v1686_v21  ;;  %vm1708_vm10 = vweird.f32 %v1686_v21 }
 0x4de   : > { %v1554_v5 = vpop.xlane.xlu2 %1553 }
 0x4df   : > { %v1585_v46 = vmul.f32 %v6400_v63, %v1554_v5 }
 0x4e1   : > { %v5156_v37 = vpop.eup %5155  ;;  %v6532_v49 = vsub.f32 %v6438_v44, %v1585_v46 }
 0x4e2   : > { %v1551_v31 = vpop.xlane.xlu0 %1550  ;;  %v1703_v36 = vmul.f32 %v5156_v37, %v1686_v21  ;;  %vm1709_vm9 = vweird.f32 %v5156_v37  ;;  %v1882_v21 = vmul.f32 %v6564_v30, %v1863_v32 }
 0x4e3   : > { %v1584_v48 = vmul.f32 %v6400_v63, %v1551_v31  ;;  %v1617_v39 = vmul.f32 %v6532_v49, %v6532_v49  ;;  %vm1710_vm11 = vmor %vm1708_vm10, %vm1709_vm9 }
 0x4e4   : > { %v1704_v40 = vmul.f32 %v5156_v37, %v1703_v36  ;;  %v6585_v36 = vld [vmem:[%s8579_s11] ss:$0 sm:$0xff] }
 0x4e5   : > { %v6539_v50 = vsub.f32 %v6443_v12, %v1584_v48  ;;  %v1636_v22 = vpop.xlane.xlu1 %1635  ;;  %v1655_v27 = vsel %vm755_vm0, %v1617_v39, 0.0  ;;  %v6605_v38 = vadd.f32 %v6585_v36, %v1882_v21 }
 0x4e6   : > { %v1674_v8 = vmul.f32 %v1636_v22, %v6400_v63  ;;  %v1705_v33 = vmul.f32 0.5, %v1704_v40  ;;  %v1639_v23 = vpop.xlane.xlu2 %1638  ;;  %1656 = vadd.xlane.f32.xlu2 %v1655_v27 }
 0x4e7   : > { %v1616_v12 = vmul.f32 %v6539_v50, %v6539_v50  ;;  %v1675_v19 = vmul.f32 %v1639_v23, %v6400_v63 }
 0x4e8   : > { %v6551_v24 = vadd.f32 1e-05, %v1674_v8  ;;  %v1706_v57 = vsub.f32 1.5, %v1705_v33 }
 0x4e9   : > { %v1652_v54 = vsel %vm755_vm0, %v1616_v12, 0.0  ;;  %v6556_v51 = vadd.f32 1e-05, %v1675_v19  ;;  %v1864_v12 = vmul.f32 %v1731_v62, %v6403_v61 }
 0x4ea   : > { %5157 = vrsqrt.f32 %v6551_v24  ;;  %1653 = vadd.xlane.f32.xlu1 %v1652_v54  ;;  %v1648_v13 = vpop.xlane.xlu0 %1647  ;;  %v1707_v56 = vmul.f32 %v5156_v37, %v1706_v57  ;;  %vm1748_vm12 = vweird.f32 %v6551_v24 }
 0x4eb   : > { %v1678_v53 = vmul.f32 %v1648_v13, %v6400_v63  ;;  %5159 = vrsqrt.f32 %v6556_v51  ;;  %vm1758_vm15 = vweird.f32 %v6556_v51 }
 0x4ec   : > { %v1711_v41 = vsel %vm1710_vm11, %v5156_v37, %v1707_v56  ;;  %v1737_v37 = vmul.f32 %v6523_v28, %v1736_v1  ;;  %v1883_v1 = vmul.f32 %v6564_v30, %v1864_v12 }
 0x4ed   : > { %v6566_v3 = vadd.f32 1e-05, %v1678_v53  ;;  %v1651_v20 = vpop.xlane.xlu1 %1650  ;;  %v1862_v5 = vmul.f32 %v1711_v41, %v6431_v34 }
 0x4ee   : > { %v1679_v2 = vmul.f32 %v1651_v20, %v6400_v63  ;;  %v1557_v46 = vpop.xlane.xlu2 %1556  ;;  %v1741_v8 = vsel %vm1740_vm4, %v6523_v28, %v1737_v37 }
 0x4ef   : > { %5161 = vrsqrt.f32 %v6566_v3  ;;  %v1586_v45 = vmul.f32 %v6400_v63, %v1557_v46  ;;  %v1881_v34 = vmul.f32 %v6564_v30, %v1862_v5  ;;  %v1865_v47 = vmul.f32 %v1741_v8, %v6418_v11 }
 0x4f0   : > { %v6575_v14 = vpop.eup %5157  ;;  %v6578_v31 = vadd.f32 1e-05, %v1679_v2  ;;  %vm1788_vm6 = vweird.f32 %v6566_v3 }
 0x4f1   : > { %v1743_v48 = vmul.f32 %v6575_v14, %v6551_v24  ;;  %v6591_v4 = vpop.eup %5159  ;;  %v6599_v40 = vsub.f32 %v6477_v15, %v1586_v45  ;;  %v6602_v22 = vadd.f32 %v6585_v36, %v1881_v34  ;;  %v1884_v61 = vmul.f32 %v6564_v30, %v1865_v47 }
 0x4f2   : > { %5163 = vrsqrt.f32 %v6578_v31  ;;  %v1753_v44 = vmul.f32 %v6591_v4, %v6556_v51  ;;  %vm1749_vm7 = vweird.f32 %v6575_v14  ;;  %vm1798_vm10 = vweird.f32 %v6578_v31 }
 0x4f3   : > { %v1744_v15 = vmul.f32 %v6575_v14, %v1743_v48  ;;  %v1916_v27 = vpack.c.bf16 %v6605_v38, %v6602_v22  ;;  %v1618_v9 = vmul.f32 %v6599_v40, %v6599_v40  ;;  %v6642_v34 = vadd.f32 %v6585_v36, %v1884_v61  ;;  %vm1750_vm14 = vmor %vm1748_vm12, %vm1749_vm7 }
 0x4f4   : > { %v1754_v33 = vmul.f32 %v6591_v4, %v1753_v44  ;;  %vm1759_vm11 = vweird.f32 %v6591_v4 }
 0x4f5   : > { %v5162_v17 = vpop.eup %5161  ;;  %4811 = vmatmul.msk.bf16.vlgmr.msra.gmra.mxu1 %vm755_vm0, %v1916_v27  ;;  %v1658_v23 = vsel %vm755_vm0, %v1618_v9, 0.0  ;;  %v1745_v57 = vmul.f32 0.5, %v1744_v15  ;;  %vm1760_vm1 = vmor %vm1758_vm15, %vm1759_vm11 }
 0x4f6   : > { %v1783_v16 = vmul.f32 %v5162_v17, %v6566_v3  ;;  %v1560_v28 = vpop.xlane.xlu2 %1559  ;;  %1659 = vadd.xlane.f32.xlu0 %v1658_v23  ;;  %v1755_v32 = vmul.f32 0.5, %v1754_v33  ;;  %vm1789_vm5 = vweird.f32 %v5162_v17 }
 0x4f7   : > { %v1587_v13 = vmul.f32 %v6400_v63, %v1560_v28  ;;  %v1746_v20 = vsub.f32 1.5, %v1745_v57  ;;  %vm1790_vm8 = vmor %vm1788_vm6, %vm1789_vm5 }
 0x4f8   : > { %v5164_v19 = vpop.eup %5163  ;;  %v1784_v54 = vmul.f32 %v5162_v17, %v1783_v16  ;;  %v1756_v5 = vsub.f32 1.5, %v1755_v32 }
 0x4f9   : > { %v1793_v7 = vmul.f32 %v5164_v19, %v6578_v31  ;;  %v6629_v53 = vsub.f32 %v6483_v10, %v1587_v13  ;;  %v6638_v10 = vadd.f32 %v6585_v36, %v1883_v1  ;;  %vm1799_vm9 = vweird.f32 %v5164_v19 }
 0x4fa   : > { %v1785_v56 = vmul.f32 0.5, %v1784_v54  ;;  %v1747_v48 = vmul.f32 %v6575_v14, %v1746_v20  ;;  %v1757_v62 = vmul.f32 %v6591_v4, %v1756_v5  ;;  %vm1800_vm13 = vmor %vm1798_vm10, %vm1799_vm9 }
 0x4fb   : > { %v1794_v41 = vmul.f32 %v5164_v19, %v1793_v7  ;;  %v1619_v11 = vmul.f32 %v6629_v53, %v6629_v53  ;;  %v1917_v31 = vpack.c.bf16 %v6642_v34, %v6638_v10 }
 0x4fc   : > { %v1786_v2 = vsub.f32 1.5, %v1785_v56  ;;  %v1751_v9 = vsel %vm1750_vm14, %v6575_v14, %v1747_v48  ;;  %v1761_v24 = vsel %vm1760_vm1, %v6591_v4, %v1757_v62 }
 0x4fd   : > { %v1795_v21 = vmul.f32 0.5, %v1794_v41  ;;  %v1661_v46 = vsel %vm755_vm0, %v1619_v11, 0.0  ;;  %v1866_v51 = vmul.f32 %v1751_v9, %v6454_v25 }
 0x4fe   : > { %v1787_v60 = vmul.f32 %v5162_v17, %v1786_v2  ;;  %v1642_v45 = vpop.xlane.xlu2 %1641  ;;  %1662 = vadd.xlane.f32.xlu1 %v1661_v46 }
 0x4ff   : > { %v1796_v37 = vsub.f32 1.5, %v1795_v21  ;;  %v1676_v3 = vmul.f32 %v1642_v45, %v6400_v63  ;;  %v1885_v25 = vmul.f32 %v6564_v30, %v1866_v51 }
 0x500   : > { %v1791_v39 = vsel %vm1790_vm8, %v5162_v17, %v1787_v60 }
 0x501   : > { %v1797_v44 = vmul.f32 %v5164_v19, %v1796_v37  ;;  %v1870_v8 = vmul.f32 %v1791_v39, %v6457_v35  ;;  %v1692_v15 = vadd.f32 1e-05, %v1676_v3  ;;  %v6677_v32 = vadd.f32 %v6585_v36, %v1885_v25 }
 0x503   : > { %v1801_v27 = vsel %vm1800_vm13, %v5164_v19, %v1797_v44  ;;  %5165 = vrsqrt.f32 %v1692_v15  ;;  %v1889_v35 = vmul.f32 %v6564_v30, %v1870_v8  ;;  %vm1768_vm5 = vweird.f32 %v1692_v15 }
 0x504   : > { %v1871_v17 = vmul.f32 %v1801_v27, %v6466_v58  ;;  %v1867_v58 = vmul.f32 %v1761_v24, %v6447_v26 }
 0x505   : > { %4812 = vmatmul.msk.bf16.gmra.mxu1 %vm755_vm0, %v1917_v31  ;;  %v6665_v12 = vadd.f32 %v6585_v36, %v1889_v35 }
 0x506   : > { %v1890_v33 = vmul.f32 %v6564_v30, %v1871_v17  ;;  %v1645_v16 = vpop.xlane.xlu2 %1644  ;;  %v1886_v57 = vmul.f32 %v6564_v30, %v1867_v58 }
 0x507   : > { %v1677_v23 = vmul.f32 %v1645_v16, %v6400_v63 }
 0x508   : > { %v6668_v14 = vadd.f32 %v6585_v36, %v1890_v33  ;;  %v6680_v26 = vadd.f32 %v6585_v36, %v1886_v57 }
 0x509   : > { %v5166_v28 = vpop.eup %5165  ;;  %v1693_v47 = vadd.f32 1e-05, %v1677_v23 }
 0x50a   : > { %v1920_v4 = vpack.c.bf16 %v6668_v14, %v6665_v12  ;;  %v1763_v19 = vmul.f32 %v5166_v28, %v1692_v15  ;;  %vm1769_vm4 = vweird.f32 %v5166_v28  ;;  %v1918_v61 = vpack.c.bf16 %v6680_v26, %v6677_v32 }
 0x50b   : > { %5167 = vrsqrt.f32 %v1693_v47  ;;  %vm1770_vm6 = vmor %vm1768_vm5, %vm1769_vm4  ;;  %vm1778_vm8 = vweird.f32 %v1693_v47 }
 0x50c   : > { %4815 = vmatmul.msk.bf16.vlgmr.msra.gmra.mxu2 %vm755_vm0, %v1920_v4  ;;  %v1764_v54 = vmul.f32 %v5166_v28, %v1763_v19 }
 0x50e   : > { %v1765_v13 = vmul.f32 0.5, %v1764_v54 }
 0x510   : > { %v1766_v7 = vsub.f32 1.5, %v1765_v13 }
 0x511   : > { %v5168_v56 = vpop.eup %5167 }
 0x512   : > { %v1767_v1 = vmul.f32 %v5166_v28, %v1766_v7  ;;  %v1773_v41 = vmul.f32 %v5168_v56, %v1693_v47  ;;  %vm1779_vm7 = vweird.f32 %v5168_v56 }
 0x513   : > { %vm1780_vm9 = vmor %vm1778_vm8, %vm1779_vm7 }
 0x514   : > { %v1774_v20 = vmul.f32 %v5168_v56, %v1773_v41  ;;  %v1771_v2 = vsel %vm1770_vm6, %v5166_v28, %v1767_v1 }
 0x515   : > { %4813 = vmatmul.msk.bf16.gmra.mxu1 %vm755_vm0, %v1918_v61  ;;  %v1868_v46 = vmul.f32 %v1771_v2, %v6487_v0 }
 0x516   : > { %v1775_v11 = vmul.f32 0.5, %v1774_v20 }
 0x517   : > { %v1887_v62 = vmul.f32 %v6564_v30, %v1868_v46 }
 0x518   : > { %v1776_v5 = vsub.f32 1.5, %v1775_v11 }
 0x519   : > { %v1563_v21 = vpop.xlane.xlu2 %1562  ;;  %v6697_v0 = vadd.f32 %v6585_v36, %v1887_v62 }
 0x51a   : > { %v1588_v60 = vmul.f32 %v6400_v63, %v1563_v21  ;;  %v1777_v37 = vmul.f32 %v5168_v56, %v1776_v5 }
 0x51c   : > { %v6688_v45 = vsub.f32 %v6502_v59, %v1588_v60  ;;  %v1781_v48 = vsel %vm1780_vm9, %v5168_v56, %v1777_v37 }
 0x51d   : > { %v1869_v3 = vmul.f32 %v1781_v48, %v6495_v52 }
 0x51e   : > { %v1620_v39 = vmul.f32 %v6688_v45, %v6688_v45 }
 0x51f   : > { %v1888_v8 = vmul.f32 %v6564_v30, %v1869_v3 }
 0x520   : > { %v1664_v44 = vsel %vm755_vm0, %v1620_v39, 0.0 }
 0x521   : > { %1665 = vadd.xlane.f32.xlu2 %v1664_v44  ;;  %v6700_v15 = vadd.f32 %v6585_v36, %v1888_v8 }
 0x523   : > { %v1919_v59 = vpack.c.bf16 %v6700_v15, %v6697_v0 }
 0x525   : > { %4814 = vmatmul.msk.bf16.gmra.mxu1 %vm755_vm0, %v1919_v59 }
 0x52e   : > { %v1566_v27 = vpop.xlane.xlu0 %1565 }
 0x52f   : > { %v1589_v52 = vmul.f32 %v6400_v63, %v1566_v27 }
 0x531   : > { %v6707_v31 = vsub.f32 %v6507_v29, %v1589_v52 }
 0x533   : > { %v1621_v9 = vmul.f32 %v6707_v31, %v6707_v31 }
 0x535   : > { %v1667_v17 = vsel %vm755_vm0, %v1621_v9, 0.0 }
 0x536   : > { %1668 = vadd.xlane.f32.xlu0 %v1667_v17 }
 0x559   : > { %v1657_v35 = vpop.xlane.xlu2 %1656 }
 0x55a   : > { %v1681_v24 = vmul.f32 %v1657_v35, %v6400_v63 }
 0x55c   : > { %v1697_v33 = vadd.f32 1e-05, %v1681_v24 }
 0x55d   : > { %v1654_v16 = vpop.xlane.xlu1 %1653 }
 0x55e   : > { %v1680_v51 = vmul.f32 %v1654_v16, %v6400_v63  ;;  %5169 = vrsqrt.f32 %v1697_v33  ;;  %vm1818_vm11 = vweird.f32 %v1697_v33 }
 0x560   : > { %v1696_v23 = vadd.f32 1e-05, %v1680_v51 }
 0x562   : > { %5171 = vrsqrt.f32 %v1696_v23  ;;  %vm1808_vm14 = vweird.f32 %v1696_v23 }
 0x564   : > { %v5170_v58 = vpop.eup %5169 }
 0x565   : > { %v1813_v28 = vmul.f32 %v5170_v58, %v1697_v33  ;;  %vm1819_vm10 = vweird.f32 %v5170_v58 }
 0x566   : > { %vm1820_vm12 = vmor %vm1818_vm11, %vm1819_vm10 }
 0x567   : > { %v1814_v47 = vmul.f32 %v5170_v58, %v1813_v28 }
 0x568   : > { %v5172_v29 = vpop.eup %5171 }
 0x569   : > { %v1803_v4 = vmul.f32 %v5172_v29, %v1696_v23  ;;  %v1815_v19 = vmul.f32 0.5, %v1814_v47  ;;  %v1660_v25 = vpop.xlane.xlu0 %1659  ;;  %vm1809_vm13 = vweird.f32 %v5172_v29 }
 0x56a   : > { %v1682_v54 = vmul.f32 %v1660_v25, %v6400_v63  ;;  %vm1810_vm15 = vmor %vm1808_vm14, %vm1809_vm13  ;;  %v4967_v25 = vld [vmem:[%s8576_s8 + $0x28] sm:$0xff] }
 0x56b   : > { %v1804_v57 = vmul.f32 %v5172_v29, %v1803_v4  ;;  %v1816_v13 = vsub.f32 1.5, %v1815_v19  ;;  %v4968_v4 = vld [vmem:[%s8576_s8 + $0x30] sm:$0xff] }
 0x56c   : > { %v1698_v56 = vadd.f32 1e-05, %v1682_v54 }
 0x56d   : > { %v1805_v7 = vmul.f32 0.5, %v1804_v57  ;;  %v1817_v1 = vmul.f32 %v5170_v58, %v1816_v13 }
 0x56e   : > { %5173 = vrsqrt.f32 %v1698_v56  ;;  %vm1828_vm4 = vweird.f32 %v1698_v56 }
 0x56f   : > { %v1806_v41 = vsub.f32 1.5, %v1805_v7  ;;  %v1821_v61 = vsel %vm1820_vm12, %v5170_v58, %v1817_v1  ;;  %v4966_v7 = vld [vmem:[%s8576_s8 + $0x20] sm:$0xff] }
 0x570   : > { %v1873_v2 = vmul.f32 %v1821_v61, %v6532_v49  ;;  %v4964_v61 = vld [vmem:[%s8576_s8 + $0x10] sm:$0xff] }
 0x571   : > { %v1807_v20 = vmul.f32 %v5172_v29, %v1806_v41  ;;  %v1663_v11 = vpop.xlane.xlu1 %1662 }
 0x572   : > { %v1683_v21 = vmul.f32 %v1663_v11, %v6400_v63  ;;  %v1892_v46 = vmul.f32 %v6564_v30, %v1873_v2  ;;  %v4963_v11 = vld [vmem:[%s8576_s8 + $0x8] sm:$0xff] }
 0x573   : > { %v1811_v5 = vsel %vm1810_vm15, %v5172_v29, %v1807_v20  ;;  %v4969_v29 = vld [vmem:[%s8576_s8 + $0x38] sm:$0xff] }
 0x574   : > { %v1872_v60 = vmul.f32 %v1811_v5, %v6539_v50  ;;  %v5174_v37 = vpop.eup %5173  ;;  %v1699_v48 = vadd.f32 1e-05, %v1683_v21  ;;  %v6724_v49 = vadd.f32 %v6585_v36, %v1892_v46  ;;  %2109 = vmatpush.bf16.msrb.mxu2 %v4969_v29  ;;  %v4962_v46 = vld [vmem:[%s8576_s8] sm:$0xff] }
 0x575   : > { %v1823_v39 = vmul.f32 %v5174_v37, %v1698_v56  ;;  %vm1829_vm1 = vweird.f32 %v5174_v37  ;;  %v4965_v56 = vld [vmem:[%s8576_s8 + $0x18] sm:$0xff] }
 0x576   : > { %v1891_v3 = vmul.f32 %v6564_v30, %v1872_v60  ;;  %5175 = vrsqrt.f32 %v1699_v48  ;;  %vm1830_vm5 = vmor %vm1828_vm4, %vm1829_vm1  ;;  %vm1838_vm7 = vweird.f32 %v1699_v48 }
 0x577   : > { %v1824_v62 = vmul.f32 %v5174_v37, %v1823_v39  ;;  %v1977_v39 = vpop.f32.mrf.mxu1 }
 0x578   : > { %v6721_v44 = vadd.f32 %v6585_v36, %v1891_v3  ;;  %2110 = vmatpush.bf16.msrb.mxu2 %v4968_v4 }
 0x579   : > { %v1825_v8 = vmul.f32 0.5, %v1824_v62 }
 0x57a   : > { %v1921_v59 = vpack.c.bf16 %v6724_v49, %v6721_v44 }
 0x57b   : > { %v1826_v50 = vsub.f32 1.5, %v1825_v8 }
 0x57c   : > { %4816 = vmatmul.msk.bf16.gmra.mxu2 %vm755_vm0, %v1921_v59  ;;  %v5176_v27 = vpop.eup %5175 }
 0x57d   : > { %v1827_v52 = vmul.f32 %v5174_v37, %v1826_v50  ;;  %v1833_v9 = vmul.f32 %v5176_v27, %v1699_v48  ;;  %vm1839_vm6 = vweird.f32 %v5176_v27  ;;  %2111 = vmatpush.bf16.msrb.mxu2 %v4967_v25 }
 0x57e   : > { %vm1840_vm8 = vmor %vm1838_vm7, %vm1839_vm6 }
 0x57f   : > { %v1834_v17 = vmul.f32 %v5176_v27, %v1833_v9  ;;  %v1831_v35 = vsel %vm1830_vm5, %v5174_v37, %v1827_v52 }
 0x580   : > { %v1874_v16 = vmul.f32 %v1831_v35, %v6599_v40 }
 0x581   : > { %v1835_v24 = vmul.f32 0.5, %v1834_v17  ;;  %2112 = vmatpush.bf16.msrb.mxu2 %v4966_v7  ;;  %v1979_v17 = vpop.f32.mrf.mxu1 }
 0x582   : > { %v1893_v28 = vmul.f32 %v6564_v30, %v1874_v16 }
 0x583   : > { %v1836_v33 = vsub.f32 1.5, %v1835_v24 }
 0x584   : > { %v6740_v40 = vadd.f32 %v6585_v36, %v1893_v28 }
 0x585   : > { %v1837_v51 = vmul.f32 %v5176_v27, %v1836_v33  ;;  %2113 = vmatpush.bf16.msrb.mxu2 %v4965_v56 }
 0x587   : > { %v1841_v23 = vsel %vm1840_vm8, %v5176_v27, %v1837_v51 }
 0x588   : > { %v1875_v58 = vmul.f32 %v1841_v23, %v6629_v53 }
 0x589   : > { %2114 = vmatpush.bf16.msrb.mxu2 %v4964_v61 }
 0x58a   : > { %v1894_v47 = vmul.f32 %v6564_v30, %v1875_v58  ;;  %v1982_v58 = vpop.f32.mrf.mxu1 }
 0x58c   : > { %v6743_v19 = vadd.f32 %v6585_v36, %v1894_v47 }
 0x58d   : > { %2115 = vmatpush.bf16.msrb.mxu2 %v4963_v11 }
 0x58e   : > { %v1922_v53 = vpack.c.bf16 %v6743_v19, %v6740_v40 }
 0x590   : > { %4817 = vmatmul.msk.bf16.gmra.mxu2 %vm755_vm0, %v1922_v53 }
 0x591   : > { %2116 = vmatpush.bf16.msrb.mxu2 %v4962_v46 }
 0x594   : > { %v1666_v57 = vpop.xlane.xlu2 %1665 }
 0x595   : > { %v1684_v54 = vmul.f32 %v1666_v57, %v6400_v63 }
 0x597   : > { %v1700_v13 = vadd.f32 1e-05, %v1684_v54 }
 0x599   : > { %5177 = vrsqrt.f32 %v1700_v13  ;;  %vm1848_vm10 = vweird.f32 %v1700_v13 }
 0x59f   : > { %v5178_v1 = vpop.eup %5177 }
 0x5a0   : > { %v1843_v41 = vmul.f32 %v5178_v1, %v1700_v13  ;;  %vm1849_vm9 = vweird.f32 %v5178_v1 }
 0x5a1   : > { %vm1850_vm11 = vmor %vm1848_vm10, %vm1849_vm9 }
 0x5a2   : > { %v1844_v20 = vmul.f32 %v5178_v1, %v1843_v41 }
 0x5a4   : > { %v1845_v60 = vmul.f32 0.5, %v1844_v20 }
 0x5a6   : > { %v1846_v37 = vsub.f32 1.5, %v1845_v60 }
 0x5a8   : > { %v1847_v3 = vmul.f32 %v5178_v1, %v1846_v37 }
 0x5a9   : > { %v1669_v2 = vpop.xlane.xlu0 %1668 }
 0x5aa   : > { %v1685_v5 = vmul.f32 %v1669_v2, %v6400_v63  ;;  %v1851_v59 = vsel %vm1850_vm11, %v5178_v1, %v1847_v3 }
 0x5ab   : > { %v1876_v52 = vmul.f32 %v1851_v59, %v6688_v45 }
 0x5ac   : > { %v1701_v21 = vadd.f32 1e-05, %v1685_v5 }
 0x5ad   : > { %v1895_v33 = vmul.f32 %v6564_v30, %v1876_v52 }
 0x5ae   : > { %5179 = vrsqrt.f32 %v1701_v21  ;;  %vm1858_vm13 = vweird.f32 %v1701_v21 }
 0x5af   : > { %v6773_v51 = vadd.f32 %v6585_v36, %v1895_v33 }
 0x5b4   : > { %v5180_v48 = vpop.eup %5179 }
 0x5b5   : > { %v1853_v62 = vmul.f32 %v5180_v48, %v1701_v21  ;;  %vm1859_vm12 = vweird.f32 %v5180_v48  ;;  %v1997_v21 = vpop.f32.mrf.mxu2 }
 0x5b6   : > { %vm1860_vm14 = vmor %vm1858_vm13, %vm1859_vm12 }
 0x5b7   : > { %v1854_v8 = vmul.f32 %v5180_v48, %v1853_v62 }
 0x5b9   : > { %v1855_v50 = vmul.f32 0.5, %v1854_v8 }
 0x5bb   : > { %v1856_v27 = vsub.f32 1.5, %v1855_v50 }
 0x5bd   : > { %v1857_v9 = vmul.f32 %v5180_v48, %v1856_v27  ;;  %v1999_v3 = vpop.f32.mrf.mxu2 }
 0x5bf   : > { %v1861_v35 = vsel %vm1860_vm14, %v5180_v48, %v1857_v9 }
 0x5c0   : > { %v1877_v24 = vmul.f32 %v1861_v35, %v6707_v31  ;;  %v5107_v31 = vld [vmem:[%s8575_s7] ss:$0 sm:$0xff] }
 0x5c1   : > { %v1980_v28 = vadd.f32 %v5107_v31, %v1979_v17  ;;  %v1978_v29 = vadd.f32 %v5107_v31, %v1977_v39  ;;  %v1983_v57 = vadd.f32 %v5107_v31, %v1982_v58  ;;  %v2000_v62 = vadd.f32 %v5107_v31, %v1999_v3 }
 0x5c2   : > { %v1896_v16 = vmul.f32 %v6564_v30, %v1877_v24  ;;  %v1984_v30 = vpop.f32.mrf.mxu1  ;;  %v1998_v59 = vadd.f32 %v5107_v31, %v1997_v21 }
 0x5c3   : > { %v2018_v47 = vmax.f32 %v1980_v28, 0.0  ;;  %v2017_v4 = vmax.f32 %v1978_v29, 0.0  ;;  %v2019_v13 = vmax.f32 %v1983_v57, 0.0  ;;  %v2026_v50 = vmax.f32 %v2000_v62, 0.0 }
 0x5c4   : > { %v6776_v23 = vadd.f32 %v6585_v36, %v1896_v16  ;;  %v1985_v36 = vadd.f32 %v5107_v31, %v1984_v30  ;;  %v2025_v27 = vmax.f32 %v1998_v59, 0.0 }
 0x5c5   : > { %v2033_v53 = vpack.c.bf16 %v2018_v47, %v2017_v4 }
 0x5c6   : > { %v1923_v45 = vpack.c.bf16 %v6776_v23, %v6773_v51  ;;  %v2020_v54 = vmax.f32 %v1985_v36, 0.0  ;;  %v2037_v52 = vpack.c.bf16 %v2026_v50, %v2025_v27 }
 0x5c8   : > { %4818 = vmatmul.msk.bf16.gmra.mxu2 %vm755_vm0, %v1923_v45  ;;  %v2034_v7 = vpack.c.bf16 %v2020_v54, %v2019_v13 }
 0x5ca   : > { %v1987_v25 = vpop.f32.mrf.mxu1 }
 0x5cb   : > { %v1988_v41 = vadd.f32 %v5107_v31, %v1987_v25 }
 0x5cd   : > { %v2021_v2 = vmax.f32 %v1988_v41, 0.0 }
 0x5d2   : > { %v1989_v56 = vpop.f32.mrf.mxu1 }
 0x5d3   : > { %v1990_v1 = vadd.f32 %v5107_v31, %v1989_v56  ;;  %v6787_v56 = vld [vmem:[%s8577_s9] ss:$0 sm:$0xff] }
 0x5d5   : > { %v2022_v20 = vmax.f32 %v1990_v1, 0.0 }
 0x5d7   : > { %v2035_v11 = vpack.c.bf16 %v2022_v20, %v2021_v2 }
 0x5d8   : > { %2117 = vmatmul.bf16.vlgmr.msrb.gmra.mxu2 %v2033_v53 }
 0x5da   : > { %v1992_v61 = vpop.f32.mrf.mxu1 }
 0x5db   : > { %v1993_v46 = vadd.f32 %v5107_v31, %v1992_v61 }
 0x5dd   : > { %v2023_v48 = vmax.f32 %v1993_v46, 0.0 }
 0x5e2   : > { %v1994_v5 = vpop.f32.mrf.mxu1 }
 0x5e3   : > { %v1995_v60 = vadd.f32 %v5107_v31, %v1994_v5 }
 0x5e5   : > { %v2024_v37 = vmax.f32 %v1995_v60, 0.0 }
 0x5e7   : > { %v2036_v39 = vpack.c.bf16 %v2024_v37, %v2023_v48 }
 0x5e8   : > { %2122 = vmatmul.bf16.gmra.mxu2 %v2034_v7 }
 0x5f8   : > { %2127 = vmatmul.bf16.gmra.mxu2 %v2035_v11 }
 0x5ff   : > { %v2002_v8 = vpop.f32.mrf.mxu2 }
 0x600   : > { %v2003_v35 = vadd.f32 %v5107_v31, %v2002_v8 }
 0x602   : > { %v2027_v16 = vmax.f32 %v2003_v35, 0.0 }
 0x607   : > { %v2004_v9 = vpop.f32.mrf.mxu2 }
 0x608   : > { %2132 = vmatmul.bf16.gmra.mxu2 %v2036_v39  ;;  %v2005_v17 = vadd.f32 %v5107_v31, %v2004_v9 }
 0x60a   : > { %v2028_v33 = vmax.f32 %v2005_v17, 0.0 }
 0x60c   : > { %v2038_v45 = vpack.c.bf16 %v2028_v33, %v2027_v16 }
 0x613   : > { %v2007_v24 = vpop.f32.mrf.mxu2 }
 0x614   : > { %v2008_v29 = vadd.f32 %v5107_v31, %v2007_v24 }
 0x616   : > { %v2029_v30 = vmax.f32 %v2008_v29, 0.0 }
 0x618   : > { %2137 = vmatmul.bf16.gmra.mxu2 %v2037_v52 }
 0x61b   : > { %v2009_v58 = vpop.f32.mrf.mxu2 }
 0x61c   : > { %v2010_v28 = vadd.f32 %v5107_v31, %v2009_v58 }
 0x61e   : > { %v2030_v47 = vmax.f32 %v2010_v28, 0.0 }
 0x620   : > { %v2039_v4 = vpack.c.bf16 %v2030_v47, %v2029_v30 }
 0x628   : > { %2142 = vmatmul.bf16.gmra.mxu2 %v2038_v45 }
 0x638   : > { %2147 = vmatmul.bf16.gmra.mxu2 %v2039_v4 }
 0x64b   : > { %v2012_v53 = vpop.f32.mrf.mxu2 }
 0x64c   : > { %v2013_v25 = vadd.f32 %v5107_v31, %v2012_v53 }
 0x64e   : > { %v2031_v54 = vmax.f32 %v2013_v25, 0.0 }
 0x653   : > { %v2014_v36 = vpop.f32.mrf.mxu2 }
 0x654   : > { %v2015_v57 = vadd.f32 %v5107_v31, %v2014_v36 }
 0x656   : > { %v2032_v13 = vmax.f32 %v2015_v57, 0.0 }
 0x658   : > { %v2040_v7 = vpack.c.bf16 %v2032_v13, %v2031_v54 }
 0x65a   : > { %2152 = vmatmul.bf16.gmra.mxu2 %v2040_v7 }
 0x65b   : > { %v2118_v1 = vpop.f32.mrf.mxu2 }
 0x65c   : > { %v2119_v41 = vadd.f32 %v6787_v56, %v2118_v1 }
 0x65e   : > { %v2158_v61 = vadd.f32 %v2119_v41, %v6602_v22 }
 0x660   : > { %v2174_v20 = vsel %vm755_vm0, %v2158_v61, 0.0 }
 0x661   : > { %2175 = vadd.xlane.f32.xlu1 %v2174_v20 }
 0x663   : > { %v2120_v2 = vpop.f32.mrf.mxu2 }
 0x664   : > { %v2121_v31 = vadd.f32 %v6787_v56, %v2120_v2 }
 0x666   : > { %v2159_v11 = vadd.f32 %v2121_v31, %v6605_v38 }
 0x668   : > { %v2177_v5 = vsel %vm755_vm0, %v2159_v11, 0.0 }
 0x669   : > { %2178 = vadd.xlane.f32.xlu2 %v2177_v5 }
 0x66b   : > { %v2123_v21 = vpop.f32.mrf.mxu2 }
 0x66c   : > { %v2124_v60 = vadd.f32 %v6787_v56, %v2123_v21 }
 0x66e   : > { %v2160_v46 = vadd.f32 %v2124_v60, %v6638_v10 }
 0x670   : > { %v2180_v37 = vsel %vm755_vm0, %v2160_v46, 0.0 }
 0x671   : > { %2181 = vadd.xlane.f32.xlu0 %v2180_v37 }
 0x673   : > { %v2125_v22 = vpop.f32.mrf.mxu2 }
 0x674   : > { %v2126_v48 = vadd.f32 %v6787_v56, %v2125_v22 }
 0x676   : > { %v2161_v39 = vadd.f32 %v2126_v48, %v6642_v34 }
 0x678   : > { %v2183_v3 = vsel %vm755_vm0, %v2161_v39, 0.0 }
 0x679   : > { %2184 = vadd.xlane.f32.xlu1 %v2183_v3 }
 0x67b   : > { %v2128_v38 = vpop.f32.mrf.mxu2 }
 0x67c   : > { %v2129_v62 = vadd.f32 %v6787_v56, %v2128_v38 }
 0x67e   : > { %v2162_v8 = vadd.f32 %v2129_v62, %v6677_v32 }
 0x680   : > { %v2186_v59 = vsel %vm755_vm0, %v2162_v8, 0.0 }
 0x681   : > { %2187 = vadd.xlane.f32.xlu2 %v2186_v59 }
 0x683   : > { %v2130_v10 = vpop.f32.mrf.mxu2 }
 0x684   : > { %v2131_v50 = vadd.f32 %v6787_v56, %v2130_v10 }
 0x686   : > { %v6806_v27 = vadd.f32 %v2131_v50, %v6680_v26 }
 0x688   : > { %v2189_v34 = vsel %vm755_vm0, %v6806_v27, 0.0 }
 0x689   : > { %2190 = vadd.xlane.f32.xlu0 %v2189_v34 }
 0x68b   : > { %v2133_v52 = vpop.f32.mrf.mxu2 }
 0x68c   : > { %v2134_v9 = vadd.f32 %v6787_v56, %v2133_v52 }
 0x68e   : > { %v6812_v17 = vadd.f32 %v2134_v9, %v6697_v0 }
 0x690   : > { %v2192_v32 = vsel %vm755_vm0, %v6812_v17, 0.0 }
 0x691   : > { %2193 = vadd.xlane.f32.xlu0 %v2192_v32 }
 0x693   : > { %v2135_v35 = vpop.f32.mrf.mxu2 }
 0x694   : > { %v2136_v58 = vadd.f32 %v6787_v56, %v2135_v35 }
 0x696   : > { %v6825_v47 = vadd.f32 %v2136_v58, %v6700_v15 }
 0x698   : > { %v2195_v57 = vsel %vm755_vm0, %v6825_v47, 0.0 }
 0x69b   : > { %v2138_v26 = vpop.f32.mrf.mxu2 }
 0x69c   : > { %v2139_v25 = vadd.f32 %v6787_v56, %v2138_v26 }
 0x69e   : > { %v6837_v15 = vadd.f32 %v2139_v25, %v6665_v12 }
 0x6a0   : > { %v2198_v2 = vsel %vm755_vm0, %v6837_v15, 0.0 }
 0x6a3   : > { %v2140_v4 = vpop.f32.mrf.mxu2 }
 0x6ab   : > { %v2143_v41 = vpop.f32.mrf.mxu2 }
 0x6ac   : > { %v2144_v60 = vadd.f32 %v6787_v56, %v2143_v41 }
 0x6b3   : > { %v2145_v22 = vpop.f32.mrf.mxu2 }
 0x6b4   : > { %v2146_v62 = vadd.f32 %v6787_v56, %v2145_v22 }
 0x6bb   : > { %v2148_v52 = vpop.f32.mrf.mxu2 }
 0x6bc   : > { %v2149_v32 = vadd.f32 %v6787_v56, %v2148_v52 }
 0x6d4   : > { %v2176_v24 = vpop.xlane.xlu1 %2175 }
 0x6d5   : > { %v2222_v33 = vmul.f32 %v2176_v24, %v6400_v63 }
 0x6d7   : > { %v6817_v16 = vsub.f32 %v2158_v61, %v2222_v33  ;;  %v2141_v61 = vadd.f32 %v6787_v56, %v2140_v4 }
 0x6d9   : > { %v2254_v45 = vmul.f32 %v6817_v16, %v6817_v16  ;;  %v6849_v12 = vadd.f32 %v2141_v61, %v6668_v14  ;;  %v6861_v14 = vadd.f32 %v2144_v60, %v6721_v44 }
 0x6db   : > { %v2270_v28 = vsel %vm755_vm0, %v2254_v45, 0.0  ;;  %v2204_v59 = vsel %vm755_vm0, %v6861_v14, 0.0  ;;  %v2150_v45 = vpop.f32.mrf.mxu2 }
 0x6dc   : > { %v2179_v0 = vpop.xlane.xlu2 %2178  ;;  %2271 = vadd.xlane.f32.xlu1 %v2270_v28  ;;  %v2151_v28 = vadd.f32 %v6787_v56, %v2150_v45 }
 0x6dd   : > { %v2223_v29 = vmul.f32 %v2179_v0, %v6400_v63 }
 0x6de   : > { %v6898_v4 = vadd.f32 %v2151_v28, %v6743_v19  ;;  %v4971_v19 = vld [vmem:[%s8571_s3 + $0x18] sm:$0xff] }
 0x6df   : > { %v6827_v30 = vsub.f32 %v2159_v11, %v2223_v29  ;;  %2634 = vmatpush.bf16.msrb.mxu3 %v4971_v19 }
 0x6e1   : > { %v2255_v53 = vmul.f32 %v6827_v30, %v6827_v30 }
 0x6e3   : > { %v2273_v36 = vsel %vm755_vm0, %v2255_v53, 0.0  ;;  %v2213_v53 = vsel %vm755_vm0, %v6898_v4, 0.0 }
 0x6e4   : > { %v2182_v54 = vpop.xlane.xlu0 %2181  ;;  %2274 = vadd.xlane.f32.xlu2 %v2273_v36  ;;  %2196 = vadd.xlane.f32.xlu1 %v2195_v57 }
 0x6e5   : > { %v2224_v13 = vmul.f32 %v2182_v54, %v6400_v63 }
 0x6e7   : > { %v6839_v7 = vsub.f32 %v2160_v46, %v2224_v13  ;;  %v2201_v46 = vsel %vm755_vm0, %v6849_v12, 0.0 }
 0x6e9   : > { %v2256_v1 = vmul.f32 %v6839_v7, %v6839_v7 }
 0x6eb   : > { %v2276_v20 = vsel %vm755_vm0, %v2256_v1, 0.0  ;;  %v4970_v1 = vld [vmem:[%s8571_s3 + $0x10] sm:$0xff] }
 0x6ec   : > { %2277 = vadd.xlane.f32.xlu2 %v2276_v20  ;;  %2199 = vadd.xlane.f32.xlu1 %v2198_v2  ;;  %v2185_v31 = vpop.xlane.xlu1 %2184 }
 0x6ed   : > { %v2225_v11 = vmul.f32 %v2185_v31, %v6400_v63  ;;  %2635 = vmatpush.bf16.msrb.mxu3 %v4970_v1 }
 0x6ef   : > { %v6851_v5 = vsub.f32 %v2161_v39, %v2225_v11 }
 0x6f1   : > { %v2257_v21 = vmul.f32 %v6851_v5, %v6851_v5 }
 0x6f3   : > { %v2279_v37 = vsel %vm755_vm0, %v2257_v21, 0.0 }
 0x6f4   : > { %2202 = vadd.xlane.f32.xlu2 %v2201_v46  ;;  %v2188_v48 = vpop.xlane.xlu2 %2187  ;;  %2280 = vadd.xlane.f32.xlu0 %v2279_v37 }
 0x6f5   : > { %v2226_v3 = vmul.f32 %v2188_v48, %v6400_v63 }
 0x6f7   : > { %v6863_v39 = vsub.f32 %v2162_v8, %v2226_v3  ;;  %v6876_v8 = vadd.f32 %v2146_v62, %v6724_v49  ;;  %v6889_v49 = vadd.f32 %v2149_v32, %v6740_v40 }
 0x6f9   : > { %v2258_v38 = vmul.f32 %v6863_v39, %v6863_v39  ;;  %v2207_v24 = vsel %vm755_vm0, %v6876_v8, 0.0  ;;  %v2210_v29 = vsel %vm755_vm0, %v6889_v49, 0.0 }
 0x6fb   : > { %v2282_v10 = vsel %vm755_vm0, %v2258_v38, 0.0 }
 0x6fc   : > { %v2191_v50 = vpop.xlane.xlu0 %2190  ;;  %2205 = vadd.xlane.f32.xlu2 %v2204_v59  ;;  %2283 = vadd.xlane.f32.xlu0 %v2282_v10 }
 0x6fd   : > { %v2227_v34 = vmul.f32 %v2191_v50, %v6400_v63 }
 0x6ff   : > { %v6873_v44 = vsub.f32 %v6806_v27, %v2227_v34 }
 0x701   : > { %v2259_v9 = vmul.f32 %v6873_v44, %v6873_v44 }
 0x703   : > { %v2285_v35 = vsel %vm755_vm0, %v2259_v9, 0.0 }
 0x704   : > { %v2194_v33 = vpop.xlane.xlu0 %2193  ;;  %2286 = vadd.xlane.f32.xlu1 %v2285_v35  ;;  %2208 = vadd.xlane.f32.xlu0 %v2207_v24 }
 0x705   : > { %v2228_v26 = vmul.f32 %v2194_v33, %v6400_v63 }
 0x707   : > { %v6886_v27 = vsub.f32 %v6812_v17, %v2228_v26  ;;  %v2153_v17 = vpop.f32.mrf.mxu2 }
 0x708   : > { %v2154_v40 = vadd.f32 %v6787_v56, %v2153_v17 }
 0x709   : > { %v2260_v58 = vmul.f32 %v6886_v27, %v6886_v27 }
 0x70a   : > { %v6904_v25 = vadd.f32 %v2154_v40, %v6773_v51 }
 0x70b   : > { %v2288_v0 = vsel %vm755_vm0, %v2260_v58, 0.0 }
 0x70c   : > { %2289 = vadd.xlane.f32.xlu1 %v2288_v0  ;;  %2211 = vadd.xlane.f32.xlu0 %v2210_v29  ;;  %v2216_v36 = vsel %vm755_vm0, %v6904_v25, 0.0 }
 0x70f   : > { %v2155_v34 = vpop.f32.mrf.mxu2 }
 0x710   : > { %v2156_v33 = vadd.f32 %v6787_v56, %v2155_v34 }
 0x714   : > { %2214 = vadd.xlane.f32.xlu1 %v2213_v53  ;;  %v6936_v53 = vadd.f32 %v2156_v33, %v6776_v23 }
 0x71c   : > { %2217 = vadd.xlane.f32.xlu1 %v2216_v36 }
 0x74f   : > { %v2272_v57 = vpop.xlane.xlu1 %2271 }
 0x750   : > { %v2318_v54 = vmul.f32 %v2272_v57, %v6400_v63 }
 0x752   : > { %v2334_v13 = vadd.f32 1e-05, %v2318_v54 }
 0x754   : > { %5181 = vrsqrt.f32 %v2334_v13  ;;  %vm2356_vm1 = vweird.f32 %v2334_v13 }
 0x757   : > { %v2275_v51 = vpop.xlane.xlu2 %2274  ;;  %v2197_v41 = vpop.xlane.xlu1 %2196 }
 0x758   : > { %v2319_v61 = vmul.f32 %v2275_v51, %v6400_v63  ;;  %v2229_v20 = vmul.f32 %v2197_v41, %v6400_v63  ;;  %v2219_v41 = vsel %vm755_vm0, %v6936_v53, 0.0 }
 0x75a   : > { %v5182_v2 = vpop.eup %5181  ;;  %v2335_v31 = vadd.f32 1e-05, %v2319_v61  ;;  %v6918_v11 = vsub.f32 %v6825_v47, %v2229_v20 }
 0x75b   : > { %v2351_v21 = vmul.f32 %v5182_v2, %v2334_v13  ;;  %vm2357_vm15 = vweird.f32 %v5182_v2 }
 0x75c   : > { %5183 = vrsqrt.f32 %v2335_v31  ;;  %v2261_v60 = vmul.f32 %v6918_v11, %v6918_v11  ;;  %vm2358_vm4 = vmor %vm2356_vm1, %vm2357_vm15  ;;  %vm2366_vm6 = vweird.f32 %v2335_v31 }
 0x75d   : > { %v2352_v46 = vmul.f32 %v5182_v2, %v2351_v21 }
 0x75e   : > { %v2291_v37 = vsel %vm755_vm0, %v2261_v60, 0.0 }
 0x75f   : > { %v2353_v22 = vmul.f32 0.5, %v2352_v46  ;;  %v2278_v48 = vpop.xlane.xlu2 %2277  ;;  %2292 = vadd.xlane.f32.xlu2 %v2291_v37  ;;  %v2200_v3 = vpop.xlane.xlu1 %2199 }
 0x760   : > { %v2320_v38 = vmul.f32 %v2278_v48, %v6400_v63  ;;  %v2230_v62 = vmul.f32 %v2200_v3, %v6400_v63 }
 0x761   : > { %v2354_v59 = vsub.f32 1.5, %v2353_v22 }
 0x762   : > { %v5184_v47 = vpop.eup %5183  ;;  %v2336_v10 = vadd.f32 1e-05, %v2320_v38  ;;  %v6926_v50 = vsub.f32 %v6837_v15, %v2230_v62 }
 0x763   : > { %v2355_v52 = vmul.f32 %v5182_v2, %v2354_v59  ;;  %v2361_v9 = vmul.f32 %v5184_v47, %v2335_v31  ;;  %vm2367_vm5 = vweird.f32 %v5184_v47 }
 0x764   : > { %5185 = vrsqrt.f32 %v2336_v10  ;;  %v2262_v32 = vmul.f32 %v6926_v50, %v6926_v50  ;;  %vm2368_vm7 = vmor %vm2366_vm6, %vm2367_vm5  ;;  %vm2376_vm9 = vweird.f32 %v2336_v10 }
 0x765   : > { %v2359_v35 = vsel %vm2358_vm4, %v5182_v2, %v2355_v52  ;;  %v2362_v24 = vmul.f32 %v5184_v47, %v2361_v9 }
 0x766   : > { %v2294_v26 = vsel %vm755_vm0, %v2262_v32, 0.0  ;;  %v2510_v15 = vmul.f32 %v2359_v35, %v6817_v16  ;;  %v6944_v16 = vld [vmem:[%s8578_s10] ss:$0 sm:$0xff] }
 0x767   : > { %v2363_v45 = vmul.f32 0.5, %v2362_v24  ;;  %v2203_v58 = vpop.xlane.xlu2 %2202  ;;  %v2281_v28 = vpop.xlane.xlu0 %2280  ;;  %2295 = vadd.xlane.f32.xlu2 %v2294_v26 }
 0x768   : > { %v2231_v0 = vmul.f32 %v2203_v58, %v6400_v63  ;;  %v2321_v29 = vmul.f32 %v2281_v28, %v6400_v63  ;;  %v2526_v13 = vmul.f32 %v6944_v16, %v2510_v15 }
 0x769   : > { %v2364_v17 = vsub.f32 1.5, %v2363_v45 }
 0x76a   : > { %v5186_v40 = vpop.eup %5185  ;;  %v6939_v56 = vsub.f32 %v6849_v12, %v2231_v0  ;;  %v2337_v36 = vadd.f32 1e-05, %v2321_v29 }
 0x76b   : > { %v2365_v57 = vmul.f32 %v5184_v47, %v2364_v17  ;;  %v2371_v54 = vmul.f32 %v5186_v40, %v2336_v10  ;;  %vm2377_vm8 = vweird.f32 %v5186_v40 }
 0x76c   : > { %5187 = vrsqrt.f32 %v2337_v36  ;;  %v2263_v23 = vmul.f32 %v6939_v56, %v6939_v56  ;;  %vm2378_vm10 = vmor %vm2376_vm9, %vm2377_vm8  ;;  %vm2386_vm12 = vweird.f32 %v2337_v36 }
 0x76d   : > { %v2369_v19 = vsel %vm2368_vm7, %v5184_v47, %v2365_v57  ;;  %v2372_v1 = vmul.f32 %v5186_v40, %v2371_v54 }
 0x76e   : > { %v2511_v12 = vmul.f32 %v2369_v19, %v6827_v30  ;;  %v2297_v51 = vsel %vm755_vm0, %v2263_v23, 0.0  ;;  %v6959_v30 = vld [vmem:[%s8579_s11] ss:$0 sm:$0xff] }
 0x76f   : > { %v2373_v61 = vmul.f32 0.5, %v2372_v1  ;;  %v2206_v20 = vpop.xlane.xlu2 %2205  ;;  %2298 = vadd.xlane.f32.xlu0 %v2297_v51  ;;  %v2284_v2 = vpop.xlane.xlu0 %2283  ;;  %2220 = vadd.xlane.f32.xlu2 %v2219_v41  ;;  %v2542_v46 = vadd.f32 %v6959_v30, %v2526_v13 }
 0x770   : > { %v2527_v31 = vmul.f32 %v6944_v16, %v2511_v12  ;;  %v2232_v21 = vmul.f32 %v2206_v20, %v6400_v63  ;;  %v2322_v60 = vmul.f32 %v2284_v2, %v6400_v63 }
 0x771   : > { %v2374_v37 = vsub.f32 1.5, %v2373_v61  ;;  %v6969_v34 = vmul.f32 %v2542_v46, %v5865_v55  ;;  %v8685_v46 = vld [vmem:[#allocation21_spill] sm:$0xff] }
 0x772   : > { %v5188_v22 = vpop.eup %5187  ;;  %v6963_v48 = vsub.f32 %v6861_v14, %v2232_v21  ;;  %v2338_v3 = vadd.f32 1e-05, %v2322_v60  ;;  %v2543_v38 = vadd.f32 %v6959_v30, %v2527_v31 }
 0x773   : > { %v2375_v62 = vmul.f32 %v5186_v40, %v2374_v37  ;;  %v2381_v59 = vmul.f32 %v5188_v22, %v2337_v36  ;;  %vm2387_vm11 = vweird.f32 %v5188_v22 }
 0x774   : > { %5189 = vrsqrt.f32 %v2338_v3  ;;  %v2264_v47 = vmul.f32 %v6963_v48, %v6963_v48  ;;  %v6972_v52 = vmul.f32 %v2543_v38, %v5951_v6  ;;  %vm2388_vm13 = vmor %vm2386_vm12, %vm2387_vm11  ;;  %vm2396_vm15 = vweird.f32 %v2338_v3 }
 0x775   : > { %v2379_v9 = vsel %vm2378_vm10, %v5186_v40, %v2375_v62  ;;  %v2382_v14 = vmul.f32 %v5188_v22, %v2381_v59 }
 0x776   : > { %v2300_v32 = vsel %vm755_vm0, %v2264_v47, 0.0  ;;  %v2574_v35 = vpack.c.bf16 %v6972_v52, %v6969_v34  ;;  %v2512_v26 = vmul.f32 %v2379_v9, %v6839_v7 }
 0x777   : > { %v2383_v10 = vmul.f32 0.5, %v2382_v14  ;;  %2301 = vadd.xlane.f32.xlu0 %v2300_v32  ;;  %v2209_v24 = vpop.xlane.xlu0 %2208  ;;  %v2287_v33 = vpop.xlane.xlu1 %2286 }
 0x778   : > { %v2233_v45 = vmul.f32 %v2209_v24, %v6400_v63  ;;  %v2323_v58 = vmul.f32 %v2287_v33, %v6400_v63  ;;  %4864 = vmatmul.msk.bf16.vlgmr.msrb.gmra.mxu3 %vm755_vm0, %v2574_v35  ;;  %v2528_v57 = vmul.f32 %v6944_v16, %v2512_v26 }
 0x779   : > { %v2384_v28 = vsub.f32 1.5, %v2383_v10 }
 0x77a   : > { %v5190_v15 = vpop.eup %5189  ;;  %v6982_v0 = vsub.f32 %v6876_v8, %v2233_v45  ;;  %v2339_v29 = vadd.f32 1e-05, %v2323_v58  ;;  %v2544_v41 = vadd.f32 %v6959_v30, %v2528_v57  ;;  %v8687_v57 = vld [vmem:[#allocation22_spill] sm:$0xff] }
 0x77b   : > { %v2385_v17 = vmul.f32 %v5188_v22, %v2384_v28  ;;  %v2391_v40 = vmul.f32 %v5190_v15, %v2338_v3  ;;  %vm2397_vm14 = vweird.f32 %v5190_v15 }
 0x77c   : > { %5191 = vrsqrt.f32 %v2339_v29  ;;  %v2265_v7 = vmul.f32 %v6982_v0, %v6982_v0  ;;  %vm2398_vm1 = vmor %vm2396_vm15, %vm2397_vm14  ;;  %v6999_v37 = vmul.f32 %v2544_v41, %v8685_v46  ;;  %vm2406_vm5 = vweird.f32 %v2339_v29 }
 0x77d   : > { %v2389_v54 = vsel %vm2388_vm13, %v5188_v22, %v2385_v17  ;;  %v2392_v13 = vmul.f32 %v5190_v15, %v2391_v40  ;;  %v8686_v22 = vld [vmem:[#allocation29_spill] sm:$0xff] }
 0x77e   : > { %v2513_v23 = vmul.f32 %v2389_v54, %v6851_v5  ;;  %v2303_v19 = vsel %vm755_vm0, %v2265_v7, 0.0  ;;  %v8688_v54 = vld [vmem:[#allocation31_spill] sm:$0xff] }
 0x77f   : > { %v2393_v1 = vmul.f32 0.5, %v2392_v13  ;;  %v2212_v8 = vpop.xlane.xlu0 %2211  ;;  %v2290_v12 = vpop.xlane.xlu1 %2289  ;;  %2304 = vadd.xlane.f32.xlu1 %v2303_v19 }
 0x780   : > { %v2234_v36 = vmul.f32 %v2212_v8, %v6400_v63  ;;  %v2529_v51 = vmul.f32 %v6944_v16, %v2513_v23 }
 0x781   : > { %v2394_v61 = vsub.f32 1.5, %v2393_v1 }
 0x782   : > { %v5192_v20 = vpop.eup %5191  ;;  %v6993_v2 = vsub.f32 %v6889_v49, %v2234_v36  ;;  %v2545_v5 = vadd.f32 %v6959_v30, %v2529_v51 }
 0x783   : > { %v2395_v31 = vmul.f32 %v5190_v15, %v2394_v61  ;;  %v2401_v21 = vmul.f32 %v5192_v20, %v2339_v29  ;;  %vm2407_vm4 = vweird.f32 %v5192_v20 }
 0x784   : > { %v2266_v60 = vmul.f32 %v6993_v2, %v6993_v2  ;;  %v7002_v38 = vmul.f32 %v2545_v5, %v8686_v22  ;;  %vm2408_vm6 = vmor %vm2406_vm5, %vm2407_vm4 }
 0x785   : > { %v2399_v62 = vsel %vm2398_vm1, %v5190_v15, %v2395_v31  ;;  %v2402_v59 = vmul.f32 %v5192_v20, %v2401_v21 }
 0x786   : > { %v2306_v49 = vsel %vm755_vm0, %v2266_v60, 0.0  ;;  %v2575_v47 = vpack.c.bf16 %v7002_v38, %v6999_v37  ;;  %v2514_v14 = vmul.f32 %v2399_v62, %v6863_v39 }
 0x787   : > { %v2403_v9 = vmul.f32 0.5, %v2402_v59  ;;  %v2215_v3 = vpop.xlane.xlu1 %2214  ;;  %2307 = vadd.xlane.f32.xlu2 %v2306_v49 }
 0x788   : > { %v2235_v32 = vmul.f32 %v2215_v3, %v6400_v63  ;;  %4865 = vmatmul.msk.bf16.gmra.mxu3 %vm755_vm0, %v2575_v47  ;;  %v2530_v26 = vmul.f32 %v6944_v16, %v2514_v14 }
 0x789   : > { %v2404_v35 = vsub.f32 1.5, %v2403_v9 }
 0x78a   : > { %v7011_v10 = vsub.f32 %v6898_v4, %v2235_v32  ;;  %v2546_v17 = vadd.f32 %v6959_v30, %v2530_v26 }
 0x78b   : > { %v2405_v24 = vmul.f32 %v5192_v20, %v2404_v35 }
 0x78c   : > { %v2267_v33 = vmul.f32 %v7011_v10, %v7011_v10 }
 0x78d   : > { %v2409_v45 = vsel %vm2408_vm6, %v5192_v20, %v2405_v24 }
 0x78e   : > { %v2515_v39 = vmul.f32 %v2409_v45, %v6873_v44  ;;  %v2309_v58 = vsel %vm755_vm0, %v2267_v33, 0.0  ;;  %v7028_v44 = vmul.f32 %v2546_v17, %v8687_v57 }
 0x78f   : > { %2310 = vadd.xlane.f32.xlu0 %v2309_v58  ;;  %v2218_v28 = vpop.xlane.xlu1 %2217 }
 0x790   : > { %v2236_v15 = vmul.f32 %v2218_v28, %v6400_v63  ;;  %v2531_v4 = vmul.f32 %v6944_v16, %v2515_v39 }
 0x792   : > { %v7022_v29 = vsub.f32 %v6904_v25, %v2236_v15  ;;  %v2547_v40 = vadd.f32 %v6959_v30, %v2531_v4  ;;  %v2324_v25 = vmul.f32 %v2290_v12, %v6400_v63 }
 0x794   : > { %v2268_v7 = vmul.f32 %v7022_v29, %v7022_v29  ;;  %v7031_v13 = vmul.f32 %v2547_v40, %v8688_v54  ;;  %v2340_v1 = vadd.f32 1e-05, %v2324_v25 }
 0x796   : > { %v2312_v23 = vsel %vm755_vm0, %v2268_v7, 0.0  ;;  %v2576_v19 = vpack.c.bf16 %v7031_v13, %v7028_v44  ;;  %5193 = vrsqrt.f32 %v2340_v1  ;;  %vm2416_vm8 = vweird.f32 %v2340_v1 }
 0x797   : > { %2313 = vadd.xlane.f32.xlu1 %v2312_v23 }
 0x798   : > { %4866 = vmatmul.msk.bf16.gmra.mxu3 %vm755_vm0, %v2576_v19 }
 0x79c   : > { %v5194_v8 = vpop.eup %5193 }
 0x79d   : > { %v2411_v36 = vmul.f32 %v5194_v8, %v2340_v1  ;;  %vm2417_vm7 = vweird.f32 %v5194_v8 }
 0x79e   : > { %vm2418_vm9 = vmor %vm2416_vm8, %vm2417_vm7 }
 0x79f   : > { %v2412_v51 = vmul.f32 %v5194_v8, %v2411_v36 }
 0x7a1   : > { %v2413_v20 = vmul.f32 0.5, %v2412_v51 }
 0x7a3   : > { %v2414_v31 = vsub.f32 1.5, %v2413_v20 }
 0x7a5   : > { %v2415_v62 = vmul.f32 %v5194_v8, %v2414_v31 }
 0x7a7   : > { %v2419_v47 = vsel %vm2418_vm9, %v5194_v8, %v2415_v62 }
 0x7a8   : > { %v2516_v35 = vmul.f32 %v2419_v47, %v6886_v27 }
 0x7aa   : > { %v2532_v27 = vmul.f32 %v6944_v16, %v2516_v35 }
 0x7ac   : > { %v2548_v8 = vadd.f32 %v6959_v30, %v2532_v27 }
 0x7d2   : > { %v2293_v41 = vpop.xlane.xlu2 %2292 }
 0x7d3   : > { %v2325_v61 = vmul.f32 %v2293_v41, %v6400_v63 }
 0x7d5   : > { %v2341_v5 = vadd.f32 1e-05, %v2325_v61 }
 0x7d7   : > { %5195 = vrsqrt.f32 %v2341_v5  ;;  %vm2426_vm11 = vweird.f32 %v2341_v5 }
 0x7da   : > { %v2296_v21 = vpop.xlane.xlu2 %2295 }
 0x7db   : > { %v2326_v60 = vmul.f32 %v2296_v21, %v6400_v63  ;;  %v8690_v21 = vld [vmem:[#allocation32_spill] sm:$0xff] }
 0x7dd   : > { %v5196_v59 = vpop.eup %5195  ;;  %v2342_v49 = vadd.f32 1e-05, %v2326_v60 }
 0x7de   : > { %v2421_v12 = vmul.f32 %v5196_v59, %v2341_v5  ;;  %vm2427_vm10 = vweird.f32 %v5196_v59  ;;  %v8689_v5 = vld [vmem:[#allocation23_spill] sm:$0xff] }
 0x7df   : > { %5197 = vrsqrt.f32 %v2342_v49  ;;  %vm2428_vm12 = vmor %vm2426_vm11, %vm2427_vm10  ;;  %vm2436_vm14 = vweird.f32 %v2342_v49  ;;  %v7056_v31 = vmul.f32 %v2548_v8, %v8689_v5 }
 0x7e0   : > { %v2422_v9 = vmul.f32 %v5196_v59, %v2421_v12 }
 0x7e2   : > { %v2423_v3 = vmul.f32 0.5, %v2422_v9  ;;  %v2299_v14 = vpop.xlane.xlu0 %2298  ;;  %v2221_v32 = vpop.xlane.xlu2 %2220 }
 0x7e3   : > { %v2327_v24 = vmul.f32 %v2299_v14, %v6400_v63  ;;  %v2237_v33 = vmul.f32 %v2221_v32, %v6400_v63 }
 0x7e4   : > { %v2424_v26 = vsub.f32 1.5, %v2423_v3 }
 0x7e5   : > { %v5198_v45 = vpop.eup %5197  ;;  %v2343_v39 = vadd.f32 1e-05, %v2327_v24  ;;  %v7044_v58 = vsub.f32 %v6936_v53, %v2237_v33 }
 0x7e6   : > { %v2425_v28 = vmul.f32 %v5196_v59, %v2424_v26  ;;  %v2431_v15 = vmul.f32 %v5198_v45, %v2342_v49  ;;  %vm2437_vm13 = vweird.f32 %v5198_v45 }
 0x7e7   : > { %5199 = vrsqrt.f32 %v2343_v39  ;;  %v2269_v4 = vmul.f32 %v7044_v58, %v7044_v58  ;;  %vm2438_vm15 = vmor %vm2436_vm14, %vm2437_vm13  ;;  %vm2446_vm4 = vweird.f32 %v2343_v39 }
 0x7e8   : > { %v2429_v17 = vsel %vm2428_vm12, %v5196_v59, %v2425_v28  ;;  %v2432_v40 = vmul.f32 %v5198_v45, %v2431_v15 }
 0x7e9   : > { %v2517_v7 = vmul.f32 %v2429_v17, %v6918_v11  ;;  %v2315_v23 = vsel %vm755_vm0, %v2269_v4, 0.0 }
 0x7ea   : > { %v2433_v19 = vmul.f32 0.5, %v2432_v40  ;;  %v2302_v25 = vpop.xlane.xlu0 %2301  ;;  %2316 = vadd.xlane.f32.xlu2 %v2315_v23 }
 0x7eb   : > { %v2328_v53 = vmul.f32 %v2302_v25, %v6400_v63  ;;  %v2533_v1 = vmul.f32 %v6944_v16, %v2517_v7 }
 0x7ec   : > { %v2434_v36 = vsub.f32 1.5, %v2433_v19 }
 0x7ed   : > { %v5200_v51 = vpop.eup %5199  ;;  %v2344_v41 = vadd.f32 1e-05, %v2328_v53  ;;  %v2549_v61 = vadd.f32 %v6959_v30, %v2533_v1 }
 0x7ee   : > { %v2435_v20 = vmul.f32 %v5198_v45, %v2434_v36  ;;  %v2441_v11 = vmul.f32 %v5200_v51, %v2343_v39  ;;  %vm2447_vm1 = vweird.f32 %v5200_v51 }
 0x7ef   : > { %5201 = vrsqrt.f32 %v2344_v41  ;;  %v7059_v60 = vmul.f32 %v2549_v61, %v8690_v21  ;;  %vm2448_vm5 = vmor %vm2446_vm4, %vm2447_vm1  ;;  %vm2456_vm7 = vweird.f32 %v2344_v41 }
 0x7f0   : > { %v2439_v62 = vsel %vm2438_vm15, %v5198_v45, %v2435_v20  ;;  %v2442_v59 = vmul.f32 %v5200_v51, %v2441_v11  ;;  %v8692_v20 = vld [vmem:[#allocation33_spill] sm:$0xff] }
 0x7f1   : > { %v2577_v12 = vpack.c.bf16 %v7059_v60, %v7056_v31  ;;  %v2518_v3 = vmul.f32 %v2439_v62, %v6926_v50  ;;  %v7070_v50 = vld [vmem:[%s8572_s4 + $0x1] ss:$0 sm:$0xff] }
 0x7f2   : > { %v2443_v47 = vmul.f32 0.5, %v2442_v59  ;;  %v2305_v9 = vpop.xlane.xlu1 %2304 }
 0x7f3   : > { %v2329_v49 = vmul.f32 %v2305_v9, %v6400_v63  ;;  %4867 = vmatmul.msk.bf16.gmra.mxu3 %vm755_vm0, %v2577_v12  ;;  %v2534_v26 = vmul.f32 %v6944_v16, %v2518_v3 }
 0x7f4   : > { %v2444_v14 = vsub.f32 1.5, %v2443_v47 }
 0x7f5   : > { %v5202_v32 = vpop.eup %5201  ;;  %v2345_v35 = vadd.f32 1e-05, %v2329_v49  ;;  %v2550_v7 = vadd.f32 %v6959_v30, %v2534_v26 }
 0x7f6   : > { %v2445_v24 = vmul.f32 %v5200_v51, %v2444_v14  ;;  %v2451_v33 = vmul.f32 %v5202_v32, %v2344_v41  ;;  %vm2457_vm6 = vweird.f32 %v5202_v32 }
 0x7f7   : > { %5203 = vrsqrt.f32 %v2345_v35  ;;  %vm2458_vm8 = vmor %vm2456_vm7, %vm2457_vm6  ;;  %vm2466_vm10 = vweird.f32 %v2345_v35 }
 0x7f8   : > { %v2449_v45 = vsel %vm2448_vm5, %v5200_v51, %v2445_v24  ;;  %v2452_v28 = vmul.f32 %v5202_v32, %v2451_v33  ;;  %v8691_v51 = vld [vmem:[#allocation25_spill] sm:$0xff] }
 0x7f9   : > { %v2519_v15 = vmul.f32 %v2449_v45, %v6939_v56  ;;  %v7082_v61 = vmul.f32 %v2550_v7, %v8691_v51 }
 0x7fa   : > { %v2453_v4 = vmul.f32 0.5, %v2452_v28  ;;  %v2308_v27 = vpop.xlane.xlu2 %2307 }
 0x7fb   : > { %v2330_v17 = vmul.f32 %v2308_v27, %v6400_v63  ;;  %v2637_v40 = vpop.f32.mrf.mxu3  ;;  %v2535_v39 = vmul.f32 %v6944_v16, %v2519_v15 }
 0x7fc   : > { %v2454_v23 = vsub.f32 1.5, %v2453_v4  ;;  %v7077_v19 = vadd.f32 %v7070_v50, %v2637_v40 }
 0x7fd   : > { %v5204_v25 = vpop.eup %5203  ;;  %v2346_v53 = vadd.f32 1e-05, %v2330_v17  ;;  %v2551_v1 = vadd.f32 %v6959_v30, %v2535_v39 }
 0x7fe   : > { %v2455_v8 = vmul.f32 %v5202_v32, %v2454_v23  ;;  %v2461_v56 = vmul.f32 %v5204_v25, %v2345_v35  ;;  %v2677_v36 = vmul.f32 0.5, %v7077_v19  ;;  %vm2467_vm9 = vweird.f32 %v5204_v25 }
 0x7ff   : > { %5205 = vrsqrt.f32 %v2346_v53  ;;  %v7085_v11 = vmul.f32 %v2551_v1, %v8692_v20  ;;  %vm2468_vm11 = vmor %vm2466_vm10, %vm2467_vm9  ;;  %vm2476_vm13 = vweird.f32 %v2346_v53 }
 0x800   : > { %v2459_v62 = vsel %vm2458_vm8, %v5202_v32, %v2455_v8  ;;  %v2462_v59 = vmul.f32 %v5204_v25, %v2461_v56  ;;  %5207 = vtanh.f32 %v2677_v36 }
 0x801   : > { %v2578_v12 = vpack.c.bf16 %v7085_v11, %v7082_v61  ;;  %v2520_v41 = vmul.f32 %v2459_v62, %v6963_v48 }
 0x802   : > { %v2463_v47 = vmul.f32 0.5, %v2462_v59  ;;  %v2311_v9 = vpop.xlane.xlu0 %2310 }
 0x803   : > { %v2331_v3 = vmul.f32 %v2311_v9, %v6400_v63  ;;  %v2639_v49 = vpop.f32.mrf.mxu3  ;;  %4868 = vmatmul.msk.bf16.gmra.mxu3 %vm755_vm0, %v2578_v12  ;;  %v2536_v4 = vmul.f32 %v6944_v16, %v2520_v41  ;;  %v8693_v9 = vld [vmem:[#allocation28_spill] sm:$0xff] }
 0x804   : > { %v2464_v14 = vsub.f32 1.5, %v2463_v47  ;;  %v7093_v24 = vadd.f32 %v7070_v50, %v2639_v49 }
 0x805   : > { %v5206_v32 = vpop.eup %5205  ;;  %v2347_v33 = vadd.f32 1e-05, %v2331_v3  ;;  %v2552_v1 = vadd.f32 %v6959_v30, %v2536_v4  ;;  %v8694_v3 = vld [vmem:[#allocation34_spill] sm:$0xff] }
 0x806   : > { %v5208_v26 = vpop.eup %5207  ;;  %v2465_v45 = vmul.f32 %v5204_v25, %v2464_v14  ;;  %v2471_v28 = vmul.f32 %v5206_v32, %v2346_v53  ;;  %v2678_v15 = vmul.f32 0.5, %v7093_v24  ;;  %vm2477_vm12 = vweird.f32 %v5206_v32 }
 0x807   : > { %v2709_v48 = vmul.f32 0.5, %v5208_v26  ;;  %5209 = vrsqrt.f32 %v2347_v33  ;;  %vm2478_vm14 = vmor %vm2476_vm13, %vm2477_vm12  ;;  %v7107_v41 = vmul.f32 %v2552_v1, %v8693_v9  ;;  %vm2486_vm1 = vweird.f32 %v2347_v33 }
 0x808   : > { %v2469_v27 = vsel %vm2468_vm11, %v5204_v25, %v2465_v45  ;;  %v2472_v17 = vmul.f32 %v5206_v32, %v2471_v28  ;;  %5211 = vtanh.f32 %v2678_v15 }
 0x809   : > { %v2521_v40 = vmul.f32 %v2469_v27, %v6982_v0  ;;  %v2725_v39 = vadd.f32 0.5, %v2709_v48 }
 0x80a   : > { %v2473_v7 = vmul.f32 0.5, %v2472_v17 }
 0x80b   : > { %v2642_v23 = vpop.f32.mrf.mxu3  ;;  %2757 = vrot.lane.b32.xlu0 %v2725_v39, %s5584_s6  ;;  %v2537_v35 = vmul.f32 %v6944_v16, %v2521_v40 }
 0x80c   : > { %v2474_v8 = vsub.f32 1.5, %v2473_v7  ;;  %v7102_v56 = vadd.f32 %v7070_v50, %v2642_v23 }
 0x80d   : > { %v5210_v36 = vpop.eup %5209  ;;  %v2553_v25 = vadd.f32 %v6959_v30, %v2537_v35 }
 0x80e   : > { %v5212_v62 = vpop.eup %5211  ;;  %v2475_v59 = vmul.f32 %v5206_v32, %v2474_v8  ;;  %v2481_v0 = vmul.f32 %v5210_v36, %v2347_v33  ;;  %v2679_v12 = vmul.f32 0.5, %v7102_v56  ;;  %vm2487_vm15 = vweird.f32 %v5210_v36 }
 0x80f   : > { %v2710_v47 = vmul.f32 0.5, %v5212_v62  ;;  %v7110_v49 = vmul.f32 %v2553_v25, %v8694_v3  ;;  %vm2488_vm4 = vmor %vm2486_vm1, %vm2487_vm15 }
 0x810   : > { %v2479_v14 = vsel %vm2478_vm14, %v5206_v32, %v2475_v59  ;;  %v2482_v26 = vmul.f32 %v5210_v36, %v2481_v0  ;;  %5213 = vtanh.f32 %v2679_v12  ;;  %v8695_v12 = vld [vmem:[#allocation30_spill] sm:$0xff] }
 0x811   : > { %v2726_v45 = vadd.f32 0.5, %v2710_v47  ;;  %v2579_v28 = vpack.c.bf16 %v7110_v49, %v7107_v41  ;;  %v2522_v53 = vmul.f32 %v2479_v14, %v6993_v2 }
 0x812   : > { %v2483_v15 = vmul.f32 0.5, %v2482_v26 }
 0x813   : > { %v2644_v48 = vpop.f32.mrf.mxu3  ;;  %2759 = vrot.lane.b32.xlu2 %v2726_v45, %s5584_s6  ;;  %4869 = vmatmul.msk.bf16.gmra.mxu3 %vm755_vm0, %v2579_v28  ;;  %v2538_v7 = vmul.f32 %v6944_v16, %v2522_v53 }
 0x814   : > { %v2484_v4 = vsub.f32 1.5, %v2483_v15  ;;  %v7118_v27 = vadd.f32 %v7070_v50, %v2644_v48 }
 0x815   : > { %v2554_v25 = vadd.f32 %v6959_v30, %v2538_v7  ;;  %v2314_v7 = vpop.xlane.xlu1 %2313 }
 0x816   : > { %v5214_v32 = vpop.eup %5213  ;;  %v2485_v17 = vmul.f32 %v5210_v36, %v2484_v4  ;;  %v2680_v40 = vmul.f32 0.5, %v7118_v27 }
 0x817   : > { %v2711_v39 = vmul.f32 0.5, %v5214_v32  ;;  %v7132_v47 = vmul.f32 %v2554_v25, %v8695_v12 }
 0x818   : > { %v2489_v2 = vsel %vm2488_vm4, %v5210_v36, %v2485_v17  ;;  %5215 = vtanh.f32 %v2680_v40 }
 0x819   : > { %v2523_v23 = vmul.f32 %v2489_v2, %v7011_v10  ;;  %v2727_v35 = vadd.f32 0.5, %v2711_v39  ;;  %v8696_v10 = vld [vmem:[#allocation26_spill] sm:$0xff]  ;;  %v2332_v2 = vmul.f32 %v2314_v7, %v6400_v63 }
 0x81b   : > { %v2647_v1 = vpop.f32.mrf.mxu3  ;;  %2761 = vrot.lane.b32.xlu0 %v2727_v35, %s5584_s6  ;;  %v2539_v8 = vmul.f32 %v6944_v16, %v2523_v23  ;;  %v2348_v23 = vadd.f32 1e-05, %v2332_v2 }
 0x81c   : > { %v7127_v33 = vadd.f32 %v7070_v50, %v2647_v1 }
 0x81d   : > { %v2555_v62 = vadd.f32 %v6959_v30, %v2539_v8  ;;  %vm2496_vm6 = vweird.f32 %v2348_v23 }
 0x81e   : > { %v5216_v59 = vpop.eup %5215  ;;  %v2681_v0 = vmul.f32 0.5, %v7127_v33 }
 0x81f   : > { %v2712_v36 = vmul.f32 0.5, %v5216_v59  ;;  %v7135_v14 = vmul.f32 %v2555_v62, %v8696_v10 }
 0x820   : > { %5217 = vtanh.f32 %v2681_v0 }
 0x821   : > { %v2728_v26 = vadd.f32 0.5, %v2712_v36  ;;  %v2580_v45 = vpack.c.bf16 %v7135_v14, %v7132_v47 }
 0x823   : > { %v2649_v28 = vpop.f32.mrf.mxu3  ;;  %2763 = vrot.lane.b32.xlu0 %v2728_v26, %s5584_s6  ;;  %4870 = vmatmul.msk.bf16.gmra.mxu3 %vm755_vm0, %v2580_v45 }
 0x824   : > { %v7142_v15 = vadd.f32 %v7070_v50, %v2649_v28 }
 0x826   : > { %v5218_v53 = vpop.eup %5217  ;;  %v2682_v48 = vmul.f32 0.5, %v7142_v15 }
 0x827   : > { %v2713_v4 = vmul.f32 0.5, %v5218_v53 }
 0x828   : > { %5219 = vtanh.f32 %v2682_v48 }
 0x829   : > { %v2729_v32 = vadd.f32 0.5, %v2713_v4  ;;  %5221 = vrsqrt.f32 %v2348_v23 }
 0x82b   : > { %2765 = vrot.lane.b32.xlu1 %v2729_v32, %s5584_s6 }
 0x82e   : > { %v5220_v17 = vpop.eup %5219 }
 0x82f   : > { %v2714_v40 = vmul.f32 0.5, %v5220_v17  ;;  %v5222_v35 = vpop.eup %5221 }
 0x830   : > { %v2491_v1 = vmul.f32 %v5222_v35, %v2348_v23  ;;  %vm2497_vm5 = vweird.f32 %v5222_v35 }
 0x831   : > { %v2730_v39 = vadd.f32 0.5, %v2714_v40  ;;  %vm2498_vm7 = vmor %vm2496_vm6, %vm2497_vm5 }
 0x832   : > { %v2492_v8 = vmul.f32 %v5222_v35, %v2491_v1 }
 0x833   : > { %2767 = vrot.lane.b32.xlu2 %v2730_v39, %s5584_s6 }
 0x834   : > { %v2493_v59 = vmul.f32 0.5, %v2492_v8 }
 0x836   : > { %v2494_v36 = vsub.f32 1.5, %v2493_v59 }
 0x838   : > { %v2495_v26 = vmul.f32 %v5222_v35, %v2494_v36 }
 0x83a   : > { %v2499_v53 = vsel %vm2498_vm7, %v5222_v35, %v2495_v26  ;;  %v8699_v26 = vld [vmem:[#allocation27_spill] sm:$0xff] }
 0x83b   : > { %v2524_v32 = vmul.f32 %v2499_v53, %v7022_v29 }
 0x83d   : > { %v2540_v39 = vmul.f32 %v6944_v16, %v2524_v32 }
 0x83f   : > { %v2556_v8 = vadd.f32 %v6959_v30, %v2540_v39 }
 0x85d   : > { %v2317_v25 = vpop.xlane.xlu2 %2316 }
 0x85e   : > { %v2333_v62 = vmul.f32 %v2317_v25, %v6400_v63 }
 0x860   : > { %v2349_v0 = vadd.f32 1e-05, %v2333_v62 }
 0x862   : > { %5223 = vrsqrt.f32 %v2349_v0  ;;  %vm2506_vm9 = vweird.f32 %v2349_v0 }
 0x868   : > { %v5224_v45 = vpop.eup %5223 }
 0x869   : > { %v2501_v28 = vmul.f32 %v5224_v45, %v2349_v0  ;;  %vm2507_vm8 = vweird.f32 %v5224_v45  ;;  %v8697_v0 = vld [vmem:[#allocation36_spill] sm:$0xff] }
 0x86a   : > { %vm2508_vm10 = vmor %vm2506_vm9, %vm2507_vm8  ;;  %v7161_v36 = vmul.f32 %v2556_v8, %v8697_v0 }
 0x86b   : > { %v2502_v48 = vmul.f32 %v5224_v45, %v2501_v28  ;;  %v4872_v28 = vld [vmem:[%s8573_s5 + $0x4] sm:$0x7] }
 0x86c   : > { %8698 = vst [vmem:[#allocation23_spill] sm:$0xff] %v7161_v36  ;;  %v7185_v39 = vperm.slane %v4872_v28, 0 }
 0x86d   : > { %v2503_v4 = vmul.f32 0.5, %v2502_v48  ;;  %v2760_v35 = vpop.permute.xlu2 %2759 }
 0x86e   : > { %v2806_v59 = vmul.f32 %v2760_v35, %v7093_v24 }
 0x86f   : > { %v2504_v17 = vsub.f32 1.5, %v2503_v4 }
 0x871   : > { %v2505_v40 = vmul.f32 %v5224_v45, %v2504_v17  ;;  %v7182_v17 = vperm.slane %v4872_v28, 1 }
 0x873   : > { %v2509_v7 = vsel %vm2508_vm10, %v5224_v45, %v2505_v40 }
 0x874   : > { %v2525_v2 = vmul.f32 %v2509_v7, %v7044_v58 }
 0x876   : > { %v2652_v1 = vpop.f32.mrf.mxu3  ;;  %v2541_v23 = vmul.f32 %v6944_v16, %v2525_v2 }
 0x877   : > { %v7155_v25 = vadd.f32 %v7070_v50, %v2652_v1 }
 0x878   : > { %v2557_v29 = vadd.f32 %v6959_v30, %v2541_v23  ;;  %v7172_v30 = vmul.f32 %v2806_v59, %v5951_v6 }
 0x879   : > { %v2683_v62 = vmul.f32 0.5, %v7155_v25 }
 0x87a   : > { %v7164_v58 = vmul.f32 %v2557_v29, %v8699_v26  ;;  %v8630_v7 = vrot.slane %v7172_v30, 7  ;;  %v2841_v8 = vmul.f32 %v7182_v17, %v7172_v30 }
 0x87b   : > { %5225 = vtanh.f32 %v2683_v62 }
 0x87c   : > { %8700 = vst [vmem:[#allocation32_spill] sm:$0xff] %v7164_v58  ;;  %v2581_v16 = vpack.c.bf16 %v7164_v58, %v7161_v36 }
 0x87d   : > { %v2758_v45 = vpop.permute.xlu0 %2757 }
 0x87e   : > { %v2805_v24 = vmul.f32 %v2758_v45, %v7077_v19  ;;  %v2654_v53 = vpop.f32.mrf.mxu3  ;;  %4871 = vmatmul.msk.bf16.gmra.mxu3 %vm755_vm0, %v2581_v16 }
 0x87f   : > { %v7177_v48 = vadd.f32 %v7070_v50, %v2654_v53 }
 0x880   : > { %v7180_v4 = vmul.f32 %v2805_v24, %v5865_v55 }
 0x881   : > { %v5226_v32 = vpop.eup %5225  ;;  %v2684_v40 = vmul.f32 0.5, %v7177_v48 }
 0x882   : > { %v2715_v2 = vmul.f32 0.5, %v5226_v32  ;;  %v8629_v19 = vrot.slane %v7180_v4, 7 }
 0x883   : > { %5227 = vtanh.f32 %v2684_v40 }
 0x884   : > { %v2731_v1 = vadd.f32 0.5, %v2715_v2  ;;  %v2886_v23 = vsel %vm1161_vm3, %v8629_v19, %v8630_v7 }
 0x885   : > { %v2906_v35 = vmul.f32 %v7185_v39, %v2886_v23 }
 0x886   : > { %v2657_v29 = vpop.f32.mrf.mxu3  ;;  %2769 = vrot.lane.b32.xlu0 %v2731_v1, %s5584_s6 }
 0x887   : > { %v7200_v62 = vadd.f32 %v7070_v50, %v2657_v29  ;;  %v2922_v59 = vadd.f32 %v2906_v35, %v2841_v8  ;;  %v8632_v35 = vrot.slane %v7172_v30, 1 }
 0x889   : > { %v5228_v16 = vpop.eup %5227  ;;  %v2685_v45 = vmul.f32 0.5, %v7200_v62 }
 0x88a   : > { %v2716_v24 = vmul.f32 0.5, %v5228_v16 }
 0x88b   : > { %5229 = vtanh.f32 %v2685_v45 }
 0x88c   : > { %v2732_v53 = vadd.f32 0.5, %v2716_v24 }
 0x88d   : > { %v2762_v32 = vpop.permute.xlu0 %2761  ;;  %v2768_v19 = vpop.permute.xlu2 %2767 }
 0x88e   : > { %v2807_v40 = vmul.f32 %v2762_v32, %v7102_v56  ;;  %v2659_v2 = vpop.f32.mrf.mxu3  ;;  %2771 = vrot.lane.b32.xlu1 %v2732_v53, %s5584_s6  ;;  %v7218_v53 = vperm.slane %v4872_v28, 2  ;;  %v2810_v28 = vmul.f32 %v2768_v19, %v7142_v15 }
 0x88f   : > { %v7206_v23 = vadd.f32 %v7070_v50, %v2659_v2 }
 0x890   : > { %v7209_v1 = vmul.f32 %v2807_v40, %v8685_v46 }
 0x891   : > { %v5230_v29 = vpop.eup %5229  ;;  %v2686_v8 = vmul.f32 0.5, %v7206_v23 }
 0x892   : > { %v2717_v16 = vmul.f32 0.5, %v5230_v29  ;;  %v2939_v45 = vrot.slane %v7209_v1, 1 }
 0x893   : > { %5231 = vtanh.f32 %v2686_v8 }
 0x894   : > { %v2733_v24 = vadd.f32 0.5, %v2717_v16  ;;  %v2966_v56 = vsel %vm1307_vm2, %v8632_v35, %v2939_v45 }
 0x895   : > { %v2970_v32 = vmul.f32 %v6129_v43, %v2966_v56 }
 0x896   : > { %2773 = vrot.lane.b32.xlu2 %v2733_v24, %s5584_s6  ;;  %v2662_v40 = vpop.f32.mrf.mxu3 }
 0x897   : > { %v7223_v2 = vadd.f32 %v7070_v50, %v2662_v40  ;;  %v2987_v29 = vmul.f32 %v7218_v53, %v2970_v32  ;;  %v7235_v32 = vmul.f32 %v2810_v28, %v8688_v54 }
 0x899   : > { %v5232_v8 = vpop.eup %5231  ;;  %v2687_v16 = vmul.f32 0.5, %v7223_v2  ;;  %v7227_v7 = vadd.f32 %v2987_v29, %v2922_v59  ;;  %v2942_v36 = vrot.slane %v7235_v32, 1 }
 0x89a   : > { %v2718_v46 = vmul.f32 0.5, %v5232_v8  ;;  %v8635_v8 = vrot.slane %v7235_v32, 7 }
 0x89b   : > { %5233 = vtanh.f32 %v2687_v16 }
 0x89c   : > { %v2734_v35 = vadd.f32 0.5, %v2718_v46 }
 0x89d   : > { %v2766_v56 = vpop.permute.xlu1 %2765 }
 0x89e   : > { %v2809_v24 = vmul.f32 %v2766_v56, %v7127_v33  ;;  %2775 = vrot.lane.b32.xlu2 %v2734_v35, %s5584_s6  ;;  %v7232_v40 = vpop.f32.mrf.mxu3  ;;  %v2845_v33 = vmul.f32 %v7182_v17, %v7235_v32  ;;  %v2764_v56 = vpop.permute.xlu0 %2763 }
 0x8a0   : > { %v2825_v6 = vmul.f32 %v2809_v24, %v8687_v57  ;;  %v2858_v57 = vrot.slane %v7209_v1, 7 }
 0x8a1   : > { %v5234_v55 = vpop.eup %5233 }
 0x8a2   : > { %v2719_v59 = vmul.f32 0.5, %v5234_v55  ;;  %v2860_v29 = vrot.slane %v2825_v6, 7 }
 0x8a4   : > { %v2735_v15 = vadd.f32 0.5, %v2719_v59  ;;  %v2882_v46 = vsel %vm1161_vm3, %v2860_v29, %v8635_v8  ;;  %v2808_v8 = vmul.f32 %v2764_v56, %v7118_v27 }
 0x8a5   : > { %v2910_v35 = vmul.f32 %v7185_v39, %v2882_v46  ;;  %v8701_v46 = vrot.slane %v7172_v30, 7 }
 0x8a6   : > { %v2667_v19 = vpop.f32.mrf.mxu3  ;;  %2777 = vrot.lane.b32.xlu2 %v2735_v15, %s5584_s6  ;;  %v2824_v15 = vmul.f32 %v2808_v8, %v8686_v22  ;;  %v2941_v22 = vrot.slane %v2825_v6, 1 }
 0x8a7   : > { %v7248_v16 = vadd.f32 %v7070_v50, %v2667_v19  ;;  %v7250_v55 = vadd.f32 %v2910_v35, %v2845_v33  ;;  %v2885_v33 = vsel %vm1161_vm3, %v8701_v46, %v2858_v57 }
 0x8a8   : > { %v2940_v19 = vrot.slane %v2824_v15, 1  ;;  %v2890_v35 = vmul.f32 %v6147_v18, %v2885_v33 }
 0x8a9   : > { %v2689_v28 = vmul.f32 0.5, %v7248_v16 }
 0x8aa   : > { %v2965_v27 = vsel %vm1307_vm2, %v2939_v45, %v2940_v19  ;;  %v2907_v56 = vmul.f32 %v7185_v39, %v2890_v35  ;;  %v2963_v45 = vsel %vm1307_vm2, %v2941_v22, %v2942_v36 }
 0x8ab   : > { %5235 = vtanh.f32 %v2689_v28  ;;  %v2859_v28 = vrot.slane %v2824_v15, 7  ;;  %v2988_v8 = vmul.f32 %v7218_v53, %v2965_v27  ;;  %v2964_v27 = vsel %vm1307_vm2, %v2940_v19, %v2941_v22 }
 0x8ae   : > { %v2669_v22 = vpop.f32.mrf.mxu3 }
 0x8b1   : > { %v5236_v24 = vpop.eup %5235 }
 0x8b2   : > { %v2721_v59 = vmul.f32 0.5, %v5236_v24  ;;  %v2883_v24 = vsel %vm1161_vm3, %v2859_v28, %v2860_v29  ;;  %v2844_v29 = vmul.f32 %v7182_v17, %v2825_v6  ;;  %v2884_v6 = vsel %vm1161_vm3, %v2858_v57, %v2859_v28 }
 0x8b3   : > { %v7298_v57 = vadd.f32 %v7070_v50, %v2669_v22 }
 0x8b4   : > { %v2737_v54 = vadd.f32 0.5, %v2721_v59  ;;  %v2892_v59 = vmul.f32 %v6147_v18, %v2883_v24  ;;  %v2990_v24 = vmul.f32 %v7218_v53, %v2963_v45 }
 0x8b6   : > { %2781 = vrot.lane.b32.xlu0 %v2737_v54, %s5584_s6  ;;  %v2842_v54 = vmul.f32 %v7182_v17, %v7209_v1  ;;  %v2909_v33 = vmul.f32 %v7185_v39, %v2892_v59  ;;  %v2908_v59 = vmul.f32 %v7185_v39, %v2884_v6 }
 0x8b8   : > { %v2923_v46 = vadd.f32 %v2907_v56, %v2842_v54  ;;  %v2925_v35 = vadd.f32 %v2909_v33, %v2844_v29 }
 0x8ba   : > { %v3004_v58 = vadd.f32 %v2988_v8, %v2923_v46  ;;  %v3006_v54 = vadd.f32 %v2990_v24, %v2925_v35  ;;  %v2972_v8 = vmul.f32 %v6129_v43, %v2964_v27 }
 0x8bc   : > { %v7279_v1 = vadd.f32 %v3004_v58, %v6999_v37  ;;  %v7291_v37 = vadd.f32 %v3006_v54, %v7028_v44  ;;  %v2843_v58 = vmul.f32 %v7182_v17, %v2824_v15  ;;  %v2989_v46 = vmul.f32 %v7218_v53, %v2972_v8 }
 0x8bd   : > { %v2690_v44 = vmul.f32 0.5, %v7298_v57 }
 0x8be   : > { %v3044_v56 = vsel %vm755_vm0, %v7279_v1, 0.0  ;;  %v2924_v19 = vadd.f32 %v2908_v59, %v2843_v58  ;;  %v3050_v33 = vsel %vm755_vm0, %v7291_v37, 0.0 }
 0x8bf   : > { %5237 = vtanh.f32 %v2690_v44 }
 0x8c0   : > { %v3005_v29 = vadd.f32 %v2989_v46, %v2924_v19 }
 0x8c2   : > { %v7301_v28 = vadd.f32 %v3005_v29, %v7002_v38 }
 0x8c4   : > { %v3047_v15 = vsel %vm755_vm0, %v7301_v28, 0.0 }
 0x8c5   : > { %v5238_v45 = vpop.eup %5237 }
 0x8c6   : > { %v2722_v35 = vmul.f32 0.5, %v5238_v45 }
 0x8c8   : > { %v2738_v24 = vadd.f32 0.5, %v2722_v35 }
 0x8cf   : > { %3045 = vadd.xlane.f32.xlu2 %v3044_v56 }
 0x8d7   : > { %3051 = vadd.xlane.f32.xlu2 %v3050_v33 }
 0x8e0   : > { %3048 = vadd.xlane.f32.xlu0 %v3047_v15 }
 0x8ef   : > { %2783 = vrot.lane.b32.xlu2 %v2738_v24, %s5584_s6 }
 0x8f0   : > { %v2774_v27 = vpop.permute.xlu2 %2773 }
 0x8f1   : > { %v2813_v56 = vmul.f32 %v2774_v27, %v7200_v62 }
 0x8f3   : > { %v7310_v38 = vmul.f32 %v2813_v56, %v8691_v51 }
 0x8f5   : > { %v2945_v59 = vrot.slane %v7310_v38, 1  ;;  %v8641_v33 = vrot.slane %v7310_v38, 7 }
 0x8f8   : > { %v2776_v54 = vpop.permute.xlu2 %2775 }
 0x8f9   : > { %v2814_v6 = vmul.f32 %v2776_v54, %v7206_v23 }
 0x8fb   : > { %v7313_v8 = vmul.f32 %v2814_v6, %v8692_v20 }
 0x8fd   : > { %v2946_v58 = vrot.slane %v7313_v8, 1 }
 0x8ff   : > { %v2959_v22 = vsel %vm1307_vm2, %v2945_v59, %v2946_v58 }
 0x900   : > { %v2772_v46 = vpop.permute.xlu1 %2771  ;;  %v2994_v54 = vmul.f32 %v7218_v53, %v2959_v22 }
 0x901   : > { %v2812_v62 = vmul.f32 %v2772_v46, %v7177_v48  ;;  %v7322_v19 = vpop.f32.mrf.mxu3  ;;  %v2848_v48 = vmul.f32 %v7182_v17, %v7310_v38 }
 0x903   : > { %v2828_v23 = vmul.f32 %v2812_v62, %v8690_v21 }
 0x905   : > { %v2863_v29 = vrot.slane %v2828_v23, 7 }
 0x907   : > { %v2879_v44 = vsel %vm1161_vm3, %v2863_v29, %v8641_v33 }
 0x908   : > { %v2896_v35 = vmul.f32 %v6147_v18, %v2879_v44  ;;  %v7341_v44 = vadd.f32 %v7227_v7, %v6972_v52 }
 0x909   : > { %v2674_v15 = vpop.f32.mrf.mxu3 }
 0x90a   : > { %v2675_v45 = vadd.f32 %v7070_v50, %v2674_v15  ;;  %v2913_v27 = vmul.f32 %v7185_v39, %v2896_v35  ;;  %v3041_v15 = vsel %vm755_vm0, %v7341_v44, 0.0  ;;  %v7347_v35 = vadd.f32 %v7070_v50, %v7232_v40 }
 0x90c   : > { %v2692_v24 = vmul.f32 0.5, %v2675_v45  ;;  %v2929_v56 = vadd.f32 %v2913_v27, %v2848_v48  ;;  %v2688_v22 = vmul.f32 0.5, %v7347_v35 }
 0x90e   : > { %5239 = vtanh.f32 %v2692_v24  ;;  %v7336_v6 = vadd.f32 %v2994_v54, %v2929_v56 }
 0x90f   : > { %5241 = vtanh.f32 %v2688_v22 }
 0x914   : > { %v5240_v46 = vpop.eup %5239 }
 0x915   : > { %v2724_v62 = vmul.f32 0.5, %v5240_v46  ;;  %v5242_v48 = vpop.eup %5241 }
 0x916   : > { %v2720_v24 = vmul.f32 0.5, %v5242_v48  ;;  %v2944_v48 = vrot.slane %v2828_v23, 1 }
 0x917   : > { %v2740_v33 = vadd.f32 0.5, %v2724_v62  ;;  %v8702_v62 = vrot.slane %v7235_v32, 7 }
 0x918   : > { %v2736_v27 = vadd.f32 0.5, %v2720_v24 }
 0x919   : > { %2787 = vrot.lane.b32.xlu1 %v2740_v33, %s5584_s6  ;;  %v2770_v33 = vpop.permute.xlu0 %2769 }
 0x91a   : > { %v2811_v52 = vmul.f32 %v2770_v33, %v7155_v25 }
 0x91c   : > { %v2827_v7 = vmul.f32 %v2811_v52, %v8689_v5 }
 0x91e   : > { %v2943_v56 = vrot.slane %v2827_v7, 1  ;;  %v2862_v54 = vrot.slane %v2827_v7, 7  ;;  %v2846_v33 = vmul.f32 %v7182_v17, %v2827_v7 }
 0x920   : > { %v2962_v40 = vsel %vm1307_vm2, %v2942_v36, %v2943_v56 }
 0x921   : > { %v2974_v46 = vmul.f32 %v6129_v43, %v2962_v40  ;;  %v2880_v40 = vsel %vm1161_vm3, %v2862_v54, %v2863_v29 }
 0x923   : > { %v2991_v22 = vmul.f32 %v7218_v53, %v2974_v46  ;;  %v2960_v46 = vsel %vm1307_vm2, %v2944_v48, %v2945_v59 }
 0x924   : > { %v2976_v7 = vmul.f32 %v6129_v43, %v2960_v46 }
 0x925   : > { %v3007_v24 = vadd.f32 %v2991_v22, %v7250_v55  ;;  %v2778_v55 = vpop.permute.xlu2 %2777  ;;  %v2912_v22 = vmul.f32 %v7185_v39, %v2880_v40 }
 0x926   : > { %v2993_v59 = vmul.f32 %v7218_v53, %v2976_v7 }
 0x927   : > { %v7370_v52 = vadd.f32 %v3007_v24, %v7031_v13 }
 0x928   : > { %v7381_v13 = vpop.permute.xlu0 %2781 }
 0x942   : > { %v7388_v24 = vpop.xlane.xlu2 %3045 }
 0x943   : > { %3042 = vadd.xlane.f32.xlu1 %v3041_v15  ;;  %v2881_v15 = vsel %vm1161_vm3, %v8702_v62, %v2862_v54 }
 0x944   : > { %v2894_v25 = vmul.f32 %v6147_v18, %v2881_v15 }
 0x946   : > { %v2911_v36 = vmul.f32 %v7185_v39, %v2894_v25  ;;  %v2847_v25 = vmul.f32 %v7182_v17, %v2828_v23  ;;  %v2937_v23 = vrot.slane %v7180_v4, 1 }
 0x948   : > { %v2927_v62 = vadd.f32 %v2911_v36, %v2846_v33  ;;  %v2928_v54 = vadd.f32 %v2912_v22, %v2847_v25  ;;  %v8704_v22 = vrot.slane %v7172_v30, 1 }
 0x94a   : > { %v3009_v33 = vadd.f32 %v2993_v59, %v2928_v54  ;;  %v2967_v7 = vsel %vm1307_vm2, %v2937_v23, %v8704_v22 }
 0x94b   : > { %v2986_v30 = vmul.f32 %v7218_v53, %v2967_v7 }
 0x95c   : > { %2779 = vrot.lane.b32.xlu1 %v2736_v27, %s5584_s6  ;;  %v2961_v27 = vsel %vm1307_vm2, %v2943_v56, %v2944_v48  ;;  %v3053_v56 = vsel %vm755_vm0, %v7370_v52, 0.0 }
 0x95d   : > { %v2992_v32 = vmul.f32 %v7218_v53, %v2961_v27 }
 0x95f   : > { %v3008_v15 = vadd.f32 %v2992_v32, %v2927_v62  ;;  %v3049_v32 = vpop.xlane.xlu0 %3048  ;;  %v7399_v62 = vadd.f32 %v3009_v33, %v7059_v60  ;;  %v2840_v60 = vmul.f32 %v7182_v17, %v7180_v4 }
 0x960   : > { %v3089_v46 = vmul.f32 %v3049_v32, %v6400_v63 }
 0x961   : > { %v7385_v29 = vadd.f32 %v3008_v15, %v7056_v31  ;;  %v3059_v54 = vsel %vm755_vm0, %v7399_v62, 0.0 }
 0x962   : > { %v7417_v25 = vsub.f32 %v7301_v28, %v3089_v46  ;;  %v7428_v28 = vadd.f32 %v7070_v50, %v7322_v19 }
 0x963   : > { %v3056_v36 = vsel %vm755_vm0, %v7385_v29, 0.0 }
 0x964   : > { %v3121_v33 = vmul.f32 %v7417_v25, %v7417_v25  ;;  %v2691_v22 = vmul.f32 0.5, %v7428_v28 }
 0x966   : > { %5243 = vtanh.f32 %v2691_v22 }
 0x986   : > { %3054 = vadd.xlane.f32.xlu1 %v3053_v56 }
 0x98b   : > { %v2788_v48 = vpop.permute.xlu1 %2787 }
 0x98c   : > { %v2820_v27 = vmul.f32 %v2788_v48, %v2675_v45  ;;  %v8703_v45 = vrot.slane %v7180_v4, 7  ;;  %v3052_v48 = vpop.xlane.xlu2 %3051 }
 0x98e   : > { %v7393_v40 = vmul.f32 %v2820_v27, %v8699_v26  ;;  %3057 = vadd.xlane.f32.xlu1 %v3056_v36  ;;  %v3090_v36 = vmul.f32 %v3052_v48, %v6400_v63 }
 0x990   : > { %v2871_v31 = vrot.slane %v7393_v40, 7 }
 0x992   : > { %v2887_v56 = vsel %vm1161_vm3, %v2871_v31, %v8703_v45  ;;  %v7434_v45 = vsub.f32 %v7291_v37, %v3090_v36  ;;  %v5244_v37 = vpop.eup %5243 }
 0x993   : > { %v2888_v15 = vmul.f32 %v6147_v18, %v2887_v56  ;;  %v3143_v56 = vsel %vm755_vm0, %v3121_v33, 0.0 }
 0x994   : > { %v3122_v7 = vmul.f32 %v7434_v45, %v7434_v45 }
 0x995   : > { %v2905_v59 = vmul.f32 %v7185_v39, %v2888_v15 }
 0x996   : > { %3060 = vadd.xlane.f32.xlu1 %v3059_v54  ;;  %v3146_v50 = vsel %vm755_vm0, %v3122_v7, 0.0 }
 0x997   : > { %v2921_v27 = vadd.f32 %v2905_v59, %v2840_v60  ;;  %v2723_v60 = vmul.f32 0.5, %v5244_v37  ;;  %v2865_v59 = vrot.slane %v7313_v8, 7 }
 0x999   : > { %v3002_v32 = vadd.f32 %v2986_v30, %v2921_v27  ;;  %v2739_v48 = vadd.f32 0.5, %v2723_v60  ;;  %v8705_v30 = vrot.slane %v7310_v38, 7  ;;  %v2784_v60 = vpop.permute.xlu2 %2783 }
 0x99b   : > { %v7431_v46 = vadd.f32 %v3002_v32, %v6969_v34  ;;  %v2815_v34 = vmul.f32 %v2778_v55, %v7223_v2  ;;  %v2878_v2 = vsel %vm1161_vm3, %v8705_v30, %v2865_v59 }
 0x99c   : > { %v2914_v32 = vmul.f32 %v7185_v39, %v2878_v2 }
 0x99d   : > { %v3038_v15 = vsel %vm755_vm0, %v7431_v46, 0.0  ;;  %v2831_v19 = vmul.f32 %v2815_v34, %v8693_v9 }
 0x99e   : > { %3144 = vadd.xlane.f32.xlu1 %v3143_v56  ;;  %3039 = vadd.xlane.f32.xlu0 %v3038_v15  ;;  %v2849_v56 = vmul.f32 %v7182_v17, %v7313_v8 }
 0x99f   : > { %v2947_v54 = vrot.slane %v2831_v19, 1  ;;  %v2866_v37 = vrot.slane %v2831_v19, 7 }
 0x9a0   : > { %v2930_v22 = vadd.f32 %v2914_v32, %v2849_v56  ;;  %v2850_v32 = vmul.f32 %v7182_v17, %v2831_v19 }
 0x9a1   : > { %v2958_v27 = vsel %vm1307_vm2, %v2946_v58, %v2947_v54 }
 0x9a2   : > { %v2978_v55 = vmul.f32 %v6129_v43, %v2958_v27  ;;  %v2818_v27 = vmul.f32 %v2784_v60, %v7298_v57 }
 0x9a4   : > { %v2995_v58 = vmul.f32 %v7218_v53, %v2978_v55 }
 0x9a6   : > { %3147 = vadd.xlane.f32.xlu1 %v3146_v50  ;;  %v3011_v50 = vadd.f32 %v2995_v58, %v2930_v22 }
 0x9a8   : > { %v7468_v34 = vadd.f32 %v3011_v50, %v7085_v11 }
 0x9aa   : > { %v3065_v8 = vsel %vm755_vm0, %v7468_v34, 0.0 }
 0x9b2   : > { %2785 = vrot.lane.b32.xlu0 %v2739_v48, %s5584_s6  ;;  %v2817_v48 = vmul.f32 %v7381_v13, %v7248_v16  ;;  %s4570_s6 = scalar_lea.sflag [#allocation10], %s5764_s23 }
 0x9b4   : > { %v7479_v11 = vmul.f32 %v2817_v48, %v8695_v12 }
 0x9b6   : > { %v3043_v36 = vpop.xlane.xlu1 %3042  ;;  %v2868_v16 = vrot.slane %v7479_v11, 7  ;;  %v2949_v57 = vrot.slane %v7479_v11, 1 }
 0x9b7   : > { %v3087_v33 = vmul.f32 %v3043_v36, %v6400_v63  ;;  %v7483_v36 = vmul.f32 %v2818_v27, %v8696_v10  ;;  %v2852_v27 = vmul.f32 %v7182_v17, %v7479_v11 }
 0x9b9   : > { %v7461_v15 = vsub.f32 %v7341_v44, %v3087_v33  ;;  %v2877_v44 = vsel %vm1161_vm3, %v2865_v59, %v2866_v37  ;;  %v2950_v58 = vrot.slane %v7483_v36, 1  ;;  %v2853_v11 = vmul.f32 %v7182_v17, %v7483_v36 }
 0x9ba   : > { %v2898_v30 = vmul.f32 %v6147_v18, %v2877_v44 }
 0x9bb   : > { %v3119_v38 = vmul.f32 %v7461_v15, %v7461_v15 }
 0x9bc   : > { %v2915_v33 = vmul.f32 %v7185_v39, %v2898_v30 }
 0x9bd   : > { %v3137_v7 = vsel %vm755_vm0, %v3119_v38, 0.0 }
 0x9be   : > { %3138 = vadd.xlane.f32.xlu2 %v3137_v7 }
 0x9c6   : > { %3066 = vadd.xlane.f32.xlu2 %v3065_v8 }
 0x9ce   : > { %v2780_v2 = vpop.permute.xlu1 %2779 }
 0x9cf   : > { %v2816_v55 = vmul.f32 %v2780_v2, %v7347_v35  ;;  %v2931_v35 = vadd.f32 %v2915_v33, %v2850_v32 }
 0x9d1   : > { %v2832_v59 = vmul.f32 %v2816_v55, %v8694_v3  ;;  %v2955_v55 = vsel %vm1307_vm2, %v2949_v57, %v2950_v58 }
 0x9d3   : > { %v2867_v13 = vrot.slane %v2832_v59, 7  ;;  %v2948_v56 = vrot.slane %v2832_v59, 1  ;;  %v2851_v38 = vmul.f32 %v7182_v17, %v2832_v59 }
 0x9d5   : > { %v2875_v22 = vsel %vm1161_vm3, %v2867_v13, %v2868_v16  ;;  %v2957_v7 = vsel %vm1307_vm2, %v2947_v54, %v2948_v56  ;;  %v2876_v19 = vsel %vm1161_vm3, %v2866_v37, %v2867_v13  ;;  %v2956_v50 = vsel %vm1307_vm2, %v2948_v56, %v2949_v57 }
 0x9d6   : > { %v2996_v8 = vmul.f32 %v7218_v53, %v2957_v7  ;;  %v2916_v44 = vmul.f32 %v7185_v39, %v2876_v19  ;;  %v2980_v60 = vmul.f32 %v6129_v43, %v2956_v50  ;;  %v2900_v48 = vmul.f32 %v6147_v18, %v2875_v22 }
 0x9d8   : > { %v3012_v30 = vadd.f32 %v2996_v8, %v2931_v35  ;;  %v2932_v2 = vadd.f32 %v2916_v44, %v2851_v38  ;;  %v2997_v54 = vmul.f32 %v7218_v53, %v2980_v60  ;;  %v2917_v37 = vmul.f32 %v7185_v39, %v2900_v48 }
 0x9d9   : > { %v2998_v38 = vmul.f32 %v7218_v53, %v2955_v55 }
 0x9da   : > { %v7515_v33 = vadd.f32 %v3012_v30, %v7107_v41  ;;  %v3013_v59 = vadd.f32 %v2997_v54, %v2932_v2  ;;  %v2933_v32 = vadd.f32 %v2917_v37, %v2852_v27  ;;  %v3088_v27 = vmul.f32 %v7388_v24, %v6400_v63 }
 0x9dc   : > { %v3068_v13 = vsel %vm755_vm0, %v7515_v33, 0.0  ;;  %v7520_v56 = vadd.f32 %v3013_v59, %v7110_v49  ;;  %v3014_v22 = vadd.f32 %v2998_v38, %v2933_v32 }
 0x9dd   : > { %3069 = vadd.xlane.f32.xlu2 %v3068_v13 }
 0x9de   : > { %v3071_v35 = vsel %vm755_vm0, %v7520_v56, 0.0  ;;  %v7526_v57 = vadd.f32 %v3014_v22, %v7132_v47 }
 0x9df   : > { %3072 = vadd.xlane.f32.xlu1 %v3071_v35 }
 0x9e0   : > { %v3074_v41 = vsel %vm755_vm0, %v7526_v57, 0.0 }
 0x9e7   : > { %3075 = vadd.xlane.f32.xlu1 %v3074_v41  ;;  %v2869_v41 = vrot.slane %v7483_v36, 7 }
 0x9f9   : > { %v3055_v7 = vpop.xlane.xlu1 %3054 }
 0x9fa   : > { %v3091_v24 = vmul.f32 %v3055_v7, %v6400_v63 }
 0x9fc   : > { %v7560_v13 = vsub.f32 %v7370_v52, %v3091_v24  ;;  %v2855_v52 = vmul.f32 %v7182_v17, %v7393_v40  ;;  %v2952_v24 = vrot.slane %v7393_v40, 1 }
 0xa01   : > { %v3058_v19 = vpop.xlane.xlu1 %3057 }
 0xa02   : > { %v3092_v7 = vmul.f32 %v3058_v19, %v6400_v63  ;;  %v2874_v19 = vsel %vm1161_vm3, %v2868_v16, %v2869_v41 }
 0xa09   : > { %v3061_v50 = vpop.xlane.xlu1 %3060 }
 0xa0a   : > { %v3093_v49 = vmul.f32 %v3061_v50, %v6400_v63 }
 0xa0c   : > { %v7532_v8 = vsub.f32 %v7399_v62, %v3093_v49  ;;  %v7546_v62 = vsub.f32 %v7279_v1, %v3088_v27 }
 0xa0e   : > { %v3125_v44 = vmul.f32 %v7532_v8, %v7532_v8  ;;  %v3120_v37 = vmul.f32 %v7546_v62, %v7546_v62 }
 0xa10   : > { %v3155_v60 = vsel %vm755_vm0, %v3125_v44, 0.0  ;;  %v3140_v55 = vsel %vm755_vm0, %v3120_v37, 0.0  ;;  %v7586_v44 = vsub.f32 %v7385_v29, %v3092_v7 }
 0xa11   : > { %v3040_v48 = vpop.xlane.xlu0 %3039  ;;  %3156 = vadd.xlane.f32.xlu2 %v3155_v60 }
 0xa12   : > { %v3086_v47 = vmul.f32 %v3040_v48, %v6400_v63  ;;  %v3124_v16 = vmul.f32 %v7586_v44, %v7586_v44 }
 0xa14   : > { %v7541_v30 = vsub.f32 %v7431_v46, %v3086_v47  ;;  %v7555_v46 = vadd.f32 %v7336_v6, %v7082_v61  ;;  %v3123_v61 = vmul.f32 %v7560_v13, %v7560_v13  ;;  %v2918_v47 = vmul.f32 %v7185_v39, %v2874_v19 }
 0xa16   : > { %v3118_v2 = vmul.f32 %v7541_v30, %v7541_v30  ;;  %v3062_v38 = vsel %vm755_vm0, %v7555_v46, 0.0 }
 0xa18   : > { %v3134_v54 = vsel %vm755_vm0, %v3118_v2, 0.0  ;;  %v2934_v2 = vadd.f32 %v2918_v47, %v2853_v11 }
 0xa19   : > { %3135 = vadd.xlane.f32.xlu0 %v3134_v54  ;;  %v3152_v54 = vsel %vm755_vm0, %v3124_v16, 0.0 }
 0xa21   : > { %3141 = vadd.xlane.f32.xlu0 %v3140_v55 }
 0xa24   : > { %v2786_v59 = vpop.permute.xlu0 %2785 }
 0xa25   : > { %v2819_v32 = vmul.f32 %v2786_v59, %v7428_v28 }
 0xa27   : > { %v2835_v1 = vmul.f32 %v2819_v32, %v8697_v0 }
 0xa29   : > { %v2870_v35 = vrot.slane %v2835_v1, 7  ;;  %v2951_v22 = vrot.slane %v2835_v1, 1  ;;  %3063 = vadd.xlane.f32.xlu0 %v3062_v38  ;;  %v2854_v32 = vmul.f32 %v7182_v17, %v2835_v1  ;;  %v3145_v17 = vpop.xlane.xlu1 %3144 }
 0xa2b   : > { %v2872_v6 = vsel %vm1161_vm3, %v2870_v35, %v2871_v31  ;;  %v2954_v28 = vsel %vm1307_vm2, %v2950_v58, %v2951_v22  ;;  %v3149_v31 = vsel %vm755_vm0, %v3123_v61, 0.0  ;;  %v2873_v48 = vsel %vm1161_vm3, %v2869_v41, %v2870_v35 }
 0xa2c   : > { %v2920_v50 = vmul.f32 %v7185_v39, %v2872_v6  ;;  %v2982_v60 = vmul.f32 %v6129_v43, %v2954_v28  ;;  %v2902_v27 = vmul.f32 %v6147_v18, %v2873_v48  ;;  %v2953_v38 = vsel %vm1307_vm2, %v2951_v22, %v2952_v24 }
 0xa2d   : > { %v3000_v7 = vmul.f32 %v7218_v53, %v2953_v38 }
 0xa2e   : > { %v7583_v49 = vadd.f32 %v2920_v50, %v2855_v52  ;;  %v2999_v29 = vmul.f32 %v7218_v53, %v2982_v60  ;;  %v2919_v55 = vmul.f32 %v7185_v39, %v2902_v27 }
 0xa30   : > { %v3015_v37 = vadd.f32 %v2999_v29, %v2934_v2  ;;  %v2935_v39 = vadd.f32 %v2919_v55, %v2854_v32 }
 0xa31   : > { %v3139_v58 = vpop.xlane.xlu2 %3138  ;;  %3150 = vadd.xlane.f32.xlu0 %v3149_v31  ;;  %v3148_v52 = vpop.xlane.xlu1 %3147 }
 0xa32   : > { %v7612_v35 = vadd.f32 %v3015_v37, %v7135_v14  ;;  %v3016_v6 = vadd.f32 %v3000_v7, %v2935_v39 }
 0xa34   : > { %v3077_v61 = vsel %vm755_vm0, %v7612_v35, 0.0 }
 0xa39   : > { %v3067_v59 = vpop.xlane.xlu2 %3066  ;;  %3153 = vadd.xlane.f32.xlu0 %v3152_v54  ;;  %v4973_v54 = vld [vmem:[#allocation7 + $0x18] sm:$0xff] }
 0xa3a   : > { %v3095_v36 = vmul.f32 %v3067_v59, %v6400_v63  ;;  %3488 = vmatpush.bf16.msrb.mxu0 %v4973_v54  ;;  %v4972_v59 = vld [vmem:[#allocation7 + $0x10] sm:$0xff] }
 0xa3c   : > { %v7609_v18 = vsub.f32 %v7468_v34, %v3095_v36  ;;  %v8706_v34 = vld [vmem:[#allocation23_spill] sm:$0xff] }
 0xa3d   : > { %v7621_v22 = vadd.f32 %v3016_v6, %v8706_v34 }
 0xa3e   : > { %v3127_v41 = vmul.f32 %v7609_v18, %v7609_v18  ;;  %3489 = vmatpush.bf16.msrb.mxu0 %v4972_v59 }
 0xa3f   : > { %v3080_v14 = vsel %vm755_vm0, %v7621_v22, 0.0 }
 0xa40   : > { %v3161_v1 = vsel %vm755_vm0, %v3127_v41, 0.0 }
 0xa41   : > { %3162 = vadd.xlane.f32.xlu1 %v3161_v1  ;;  %3078 = vadd.xlane.f32.xlu0 %v3077_v61 }
 0xa49   : > { %3081 = vadd.xlane.f32.xlu0 %v3080_v14 }
 0xa50   : > { %v3070_v28 = vpop.xlane.xlu2 %3069 }
 0xa51   : > { %v3096_v50 = vmul.f32 %v3070_v28, %v6400_v63 }
 0xa52   : > { %v3073_v19 = vpop.xlane.xlu1 %3072 }
 0xa53   : > { %v7627_v31 = vsub.f32 %v7515_v33, %v3096_v50  ;;  %v3097_v60 = vmul.f32 %v3073_v19, %v6400_v63  ;;  %v3183_v33 = vmul.f32 %v3139_v58, %v6400_v63 }
 0xa55   : > { %v7631_v48 = vsub.f32 %v7520_v56, %v3097_v60  ;;  %v3128_v47 = vmul.f32 %v7627_v31, %v7627_v31  ;;  %v3199_v27 = vadd.f32 1e-05, %v3183_v33  ;;  %v3185_v56 = vmul.f32 %v3145_v17, %v6400_v63 }
 0xa56   : > { %v3186_v17 = vmul.f32 %v3148_v52, %v6400_v63  ;;  %v2968_v52 = vsel %vm1307_vm2, %v2952_v24, %v2937_v23 }
 0xa57   : > { %v3164_v11 = vsel %vm755_vm0, %v3128_v47, 0.0  ;;  %v3129_v16 = vmul.f32 %v7631_v48, %v7631_v48  ;;  %5245 = vrsqrt.f32 %v3199_v27  ;;  %v7641_v55 = vadd.f32 1e-05, %v3185_v56 }
 0xa58   : > { %3165 = vadd.xlane.f32.xlu1 %v3164_v11  ;;  %v7651_v50 = vadd.f32 1e-05, %v3186_v17  ;;  %vm3230_vm11 = vweird.f32 %v3199_v27  ;;  %v2984_v33 = vmul.f32 %v6129_v43, %v2968_v52  ;;  %v8707_v52 = vld [vmem:[#allocation32_spill] sm:$0xff] }
 0xa59   : > { %v3167_v29 = vsel %vm755_vm0, %v3129_v16, 0.0  ;;  %5247 = vrsqrt.f32 %v7641_v55  ;;  %vm3250_vm15 = vweird.f32 %v7641_v55 }
 0xa5a   : > { %3168 = vadd.xlane.f32.xlu0 %v3167_v29  ;;  %v3001_v43 = vmul.f32 %v7218_v53, %v2984_v33 }
 0xa5d   : > { %v5246_v2 = vpop.eup %5245 }
 0xa5e   : > { %v3225_v37 = vmul.f32 %v5246_v2, %v3199_v27  ;;  %vm3231_vm3 = vweird.f32 %v5246_v2 }
 0xa5f   : > { %v7645_v41 = vpop.eup %5247  ;;  %vm3232_vm12 = vmor %vm3230_vm11, %vm3231_vm3  ;;  %vm3260_vm11 = vweird.f32 %v7651_v50 }
 0xa60   : > { %v3226_v32 = vmul.f32 %v5246_v2, %v3225_v37  ;;  %v3245_v61 = vmul.f32 %v7645_v41, %v7641_v55  ;;  %vm3251_vm1 = vweird.f32 %v7645_v41 }
 0xa61   : > { %vm7708_vm5 = vmor %vm3250_vm15, %vm3251_vm1 }
 0xa62   : > { %v3227_v39 = vmul.f32 0.5, %v3226_v32  ;;  %v3246_v60 = vmul.f32 %v7645_v41, %v3245_v61 }
 0xa64   : > { %v3228_v7 = vsub.f32 1.5, %v3227_v39  ;;  %v3247_v56 = vmul.f32 0.5, %v3246_v60  ;;  %v3017_v39 = vadd.f32 %v3001_v43, %v7583_v49 }
 0xa66   : > { %v3229_v14 = vmul.f32 %v5246_v2, %v3228_v7  ;;  %v3248_v59 = vsub.f32 1.5, %v3247_v56 }
 0xa68   : > { %v3233_v11 = vsel %vm3232_vm12, %v5246_v2, %v3229_v14  ;;  %v7670_v2 = vld [vmem:[%s8578_s10 + $0x1] ss:$0 sm:$0xff]  ;;  %v3249_v49 = vmul.f32 %v7645_v41, %v3248_v59 }
 0xa69   : > { %v3375_v54 = vmul.f32 %v3233_v11, %v7461_v15 }
 0xa84   : > { %v3157_v53 = vpop.xlane.xlu2 %3156 }
 0xa8c   : > { %v3136_v36 = vpop.xlane.xlu0 %3135 }
 0xa8d   : > { %v3182_v38 = vmul.f32 %v3136_v36, %v6400_v63 }
 0xa8f   : > { %v3198_v58 = vadd.f32 1e-05, %v3182_v38  ;;  %v3394_v38 = vmul.f32 %v7670_v2, %v3375_v54 }
 0xa91   : > { %5249 = vrsqrt.f32 %v3198_v58  ;;  %vm3220_vm2 = vweird.f32 %v3198_v58 }
 0xa94   : > { %v3142_v1 = vpop.xlane.xlu0 %3141 }
 0xa95   : > { %v3184_v6 = vmul.f32 %v3142_v1, %v6400_v63 }
 0xa97   : > { %v5250_v34 = vpop.eup %5249  ;;  %v3200_v28 = vadd.f32 1e-05, %v3184_v6  ;;  %v7686_v6 = vld [vmem:[%s8579_s11 + $0x1] ss:$0 sm:$0xff] }
 0xa98   : > { %v3215_v19 = vmul.f32 %v5250_v34, %v3198_v58  ;;  %vm3221_vm13 = vweird.f32 %v5250_v34  ;;  %v3076_v58 = vpop.xlane.xlu1 %3075  ;;  %v7694_v60 = vadd.f32 %v7686_v6, %v3394_v38 }
 0xa99   : > { %5251 = vrsqrt.f32 %v3200_v28  ;;  %vm3222_vm14 = vmor %vm3220_vm2, %vm3221_vm13  ;;  %v3098_v11 = vmul.f32 %v3076_v58, %v6400_v63  ;;  %vm3240_vm6 = vweird.f32 %v3200_v28 }
 0xa9a   : > { %v3216_v47 = vmul.f32 %v5250_v34, %v3215_v19  ;;  %5253 = vrsqrt.f32 %v7651_v50 }
 0xa9b   : > { %v7719_v55 = vsub.f32 %v7526_v57, %v3098_v11 }
 0xa9c   : > { %v3217_v16 = vmul.f32 0.5, %v3216_v47  ;;  %v3064_v29 = vpop.xlane.xlu0 %3063  ;;  %v7697_v47 = vadd.f32 %v3017_v39, %v8707_v52 }
 0xa9d   : > { %v3094_v27 = vmul.f32 %v3064_v29, %v6400_v63  ;;  %v3130_v38 = vmul.f32 %v7719_v55, %v7719_v55 }
 0xa9e   : > { %v3218_v4 = vsub.f32 1.5, %v3217_v16  ;;  %v3189_v16 = vmul.f32 %v3157_v53, %v6400_v63 }
 0xa9f   : > { %v5252_v40 = vpop.eup %5251  ;;  %v7665_v37 = vsub.f32 %v7555_v46, %v3094_v27 }
 0xaa0   : > { %v3219_v23 = vmul.f32 %v5250_v34, %v3218_v4  ;;  %v3235_v24 = vmul.f32 %v5252_v40, %v3200_v28  ;;  %v7675_v32 = vpop.eup %5253  ;;  %vm3241_vm4 = vweird.f32 %v5252_v40  ;;  %v3253_v4 = vsel %vm7708_vm5, %v7645_v41, %v3249_v49 }
 0xaa1   : > { %v3126_v15 = vmul.f32 %v7665_v37, %v7665_v37  ;;  %vm3242_vm7 = vmor %vm3240_vm6, %vm3241_vm4  ;;  %v7721_v43 = vadd.f32 1e-05, %v3189_v16  ;;  %v3083_v28 = vsel %vm755_vm0, %v7697_v47, 0.0  ;;  %v3377_v41 = vmul.f32 %v3253_v4, %v7417_v25 }
 0xaa2   : > { %v3223_v36 = vsel %vm3222_vm14, %v5250_v34, %v3219_v23  ;;  %v3236_v46 = vmul.f32 %v5252_v40, %v3235_v24  ;;  %vm3261_vm9 = vweird.f32 %v7675_v32 }
 0xaa3   : > { %v3374_v7 = vmul.f32 %v3223_v36, %v7541_v30  ;;  %v3158_v17 = vsel %vm755_vm0, %v3126_v15, 0.0  ;;  %v3255_v30 = vmul.f32 %v7675_v32, %v7651_v50  ;;  %v3396_v53 = vmul.f32 %v7670_v2, %v3377_v41  ;;  %vm3262_vm12 = vmor %vm3260_vm11, %vm3261_vm9 }
 0xaa4   : > { %v3237_v1 = vmul.f32 0.5, %v3236_v46  ;;  %v3151_v61 = vpop.xlane.xlu0 %3150  ;;  %3159 = vadd.xlane.f32.xlu2 %v3158_v17  ;;  %vm3290_vm1 = vweird.f32 %v7721_v43 }
 0xaa5   : > { %v3187_v34 = vmul.f32 %v3151_v61, %v6400_v63  ;;  %v3393_v14 = vmul.f32 %v7670_v2, %v3374_v7  ;;  %v3256_v24 = vmul.f32 %v7675_v32, %v3255_v30  ;;  %v7745_v11 = vadd.f32 %v7686_v6, %v3396_v53 }
 0xaa6   : > { %v3238_v19 = vsub.f32 1.5, %v3237_v1 }
 0xaa7   : > { %v3203_v29 = vadd.f32 1e-05, %v3187_v34  ;;  %v7702_v33 = vadd.f32 %v7686_v6, %v3393_v14  ;;  %v3257_v46 = vmul.f32 0.5, %v3256_v24 }
 0xaa8   : > { %v3239_v27 = vmul.f32 %v5252_v40, %v3238_v19 }
 0xaa9   : > { %5255 = vrsqrt.f32 %v3203_v29  ;;  %v3428_v54 = vpack.c.bf16 %v7694_v60, %v7702_v33  ;;  %v3258_v17 = vsub.f32 1.5, %v3257_v46  ;;  %vm3270_vm10 = vweird.f32 %v3203_v29 }
 0xaaa   : > { %v3243_v23 = vsel %vm3242_vm7, %v5252_v40, %v3239_v27  ;;  %5257 = vrsqrt.f32 %v7721_v43 }
 0xaab   : > { %4884 = vmatmul.msk.bf16.vlgmr.msrb.gmra.mxu0 %vm755_vm0, %v3428_v54  ;;  %v3376_v15 = vmul.f32 %v3243_v23, %v7546_v62  ;;  %v3170_v62 = vsel %vm755_vm0, %v3130_v38, 0.0  ;;  %v3259_v19 = vmul.f32 %v7675_v32, %v3258_v17 }
 0xaac   : > { %v3154_v59 = vpop.xlane.xlu0 %3153  ;;  %3084 = vadd.xlane.f32.xlu2 %v3083_v28 }
 0xaad   : > { %v3188_v36 = vmul.f32 %v3154_v59, %v6400_v63  ;;  %v3395_v58 = vmul.f32 %v7670_v2, %v3376_v15  ;;  %v3263_v28 = vsel %vm3262_vm12, %v7675_v32, %v3259_v19 }
 0xaae   : > { %v3378_v46 = vmul.f32 %v3263_v28, %v7434_v45 }
 0xaaf   : > { %v5256_v40 = vpop.eup %5255  ;;  %v3204_v57 = vadd.f32 1e-05, %v3188_v36  ;;  %v7737_v30 = vadd.f32 %v7686_v6, %v3395_v58 }
 0xab0   : > { %v3265_v39 = vmul.f32 %v5256_v40, %v3203_v29  ;;  %v5258_v61 = vpop.eup %5257  ;;  %vm3271_vm8 = vweird.f32 %v5256_v40 }
 0xab1   : > { %5259 = vrsqrt.f32 %v3204_v57  ;;  %v3285_v16 = vmul.f32 %v5258_v61, %v7721_v43  ;;  %vm3272_vm3 = vmor %vm3270_vm10, %vm3271_vm8  ;;  %v3429_v54 = vpack.c.bf16 %v7745_v11, %v7737_v30  ;;  %vm3291_vm2 = vweird.f32 %v5258_v61 }
 0xab2   : > { %v3266_v7 = vmul.f32 %v5256_v40, %v3265_v39  ;;  %vm3280_vm14 = vweird.f32 %v3204_v57  ;;  %vm3292_vm4 = vmor %vm3290_vm1, %vm3291_vm2 }
 0xab3   : > { %v3286_v29 = vmul.f32 %v5258_v61, %v3285_v16 }
 0xab4   : > { %v3267_v1 = vmul.f32 0.5, %v3266_v7  ;;  %v3079_v25 = vpop.xlane.xlu0 %3078  ;;  %3171 = vadd.xlane.f32.xlu2 %v3170_v62  ;;  %v3397_v7 = vmul.f32 %v7670_v2, %v3378_v46 }
 0xab5   : > { %v3099_v49 = vmul.f32 %v3079_v25, %v6400_v63 }
 0xab6   : > { %v3268_v34 = vsub.f32 1.5, %v3267_v1 }
 0xab7   : > { %v5260_v14 = vpop.eup %5259  ;;  %v7742_v52 = vsub.f32 %v7612_v35, %v3099_v49 }
 0xab8   : > { %v3269_v56 = vmul.f32 %v5256_v40, %v3268_v34  ;;  %v3275_v27 = vmul.f32 %v5260_v14, %v3204_v57  ;;  %vm3281_vm13 = vweird.f32 %v5260_v14 }
 0xab9   : > { %v3131_v4 = vmul.f32 %v7742_v52, %v7742_v52  ;;  %vm3282_vm15 = vmor %vm3280_vm14, %vm3281_vm13 }
 0xaba   : > { %v3273_v23 = vsel %vm3272_vm3, %v5256_v40, %v3269_v56  ;;  %v3276_v35 = vmul.f32 %v5260_v14, %v3275_v27  ;;  %v3287_v40 = vmul.f32 0.5, %v3286_v29  ;;  %v4979_v27 = vld [vmem:[%s8576_s8 + $0x68] sm:$0xff] }
 0xabb   : > { %4885 = vmatmul.msk.bf16.gmra.mxu0 %vm755_vm0, %v3429_v54  ;;  %v3173_v24 = vsel %vm755_vm0, %v3131_v4, 0.0  ;;  %v3379_v15 = vmul.f32 %v3273_v23, %v7560_v13  ;;  %v4978_v4 = vld [vmem:[%s8576_s8 + $0x60] sm:$0xff]  ;;  %v4977_v23 = vld [vmem:[%s8576_s8 + $0x58] sm:$0xff] }
 0xabc   : > { %3174 = vadd.xlane.f32.xlu1 %v3173_v24  ;;  %v3082_v59 = vpop.xlane.xlu0 %3081  ;;  %v3277_v41 = vmul.f32 0.5, %v3276_v35  ;;  %v3288_v13 = vsub.f32 1.5, %v3287_v40  ;;  %v4976_v24 = vld [vmem:[%s8576_s8 + $0x50] sm:$0xff]  ;;  %v4974_v40 = vld [vmem:[%s8576_s8 + $0x40] sm:$0xff] }
 0xabd   : > { %v3100_v36 = vmul.f32 %v3082_v59, %v6400_v63  ;;  %v3398_v39 = vmul.f32 %v7670_v2, %v3379_v15  ;;  %v4975_v15 = vld [vmem:[%s8576_s8 + $0x48] sm:$0xff] }
 0xabe   : > { %v3278_v32 = vsub.f32 1.5, %v3277_v41  ;;  %v3289_v62 = vmul.f32 %v5258_v61, %v3288_v13 }
 0xabf   : > { %v7760_v50 = vsub.f32 %v7621_v22, %v3100_v36  ;;  %v7768_v17 = vadd.f32 %v7686_v6, %v3398_v39  ;;  %v7771_v22 = vadd.f32 %v7686_v6, %v3397_v7 }
 0xac0   : > { %v3279_v45 = vmul.f32 %v5260_v14, %v3278_v32  ;;  %v3293_v25 = vsel %vm3292_vm4, %v5258_v61, %v3289_v62  ;;  %v3163_v61 = vpop.xlane.xlu1 %3162 }
 0xac1   : > { %v3132_v38 = vmul.f32 %v7760_v50, %v7760_v50  ;;  %v3430_v53 = vpack.c.bf16 %v7768_v17, %v7771_v22  ;;  %v3381_v34 = vmul.f32 %v3293_v25, %v7532_v8  ;;  %v4980_v8 = vld [vmem:[%s8576_s8 + $0x70] sm:$0xff] }
 0xac2   : > { %v3283_v1 = vsel %vm3282_vm15, %v5260_v14, %v3279_v45  ;;  %v3191_v14 = vmul.f32 %v3163_v61, %v6400_v63 }
 0xac3   : > { %v3176_v58 = vsel %vm755_vm0, %v3132_v38, 0.0  ;;  %v3380_v49 = vmul.f32 %v3283_v1, %v7586_v44  ;;  %v3400_v16 = vmul.f32 %v7670_v2, %v3381_v34  ;;  %v4981_v44 = vld [vmem:[%s8576_s8 + $0x78] sm:$0xff] }
 0xac4   : > { %3177 = vadd.xlane.f32.xlu0 %v3176_v58  ;;  %3625 = vmatpush.bf16.msrb.mxu1 %v4981_v44  ;;  %v3207_v54 = vadd.f32 1e-05, %v3191_v14 }
 0xac5   : > { %v3399_v19 = vmul.f32 %v7670_v2, %v3380_v49  ;;  %v7785_v56 = vadd.f32 %v7686_v6, %v3400_v16 }
 0xac6   : > { %5261 = vrsqrt.f32 %v3207_v54  ;;  %vm3310_vm6 = vweird.f32 %v3207_v54 }
 0xac7   : > { %v7782_v57 = vadd.f32 %v7686_v6, %v3399_v19 }
 0xac8   : > { %3626 = vmatpush.bf16.msrb.mxu1 %v4980_v8 }
 0xac9   : > { %v3431_v43 = vpack.c.bf16 %v7785_v56, %v7782_v57 }
 0xacb   : > { %4886 = vmatmul.msk.bf16.gmra.mxu0 %vm755_vm0, %v3430_v53  ;;  %v3166_v29 = vpop.xlane.xlu1 %3165 }
 0xacc   : > { %3627 = vmatpush.bf16.msrb.mxu1 %v4979_v27  ;;  %v5262_v28 = vpop.eup %5261  ;;  %v3192_v41 = vmul.f32 %v3166_v29, %v6400_v63 }
 0xacd   : > { %v3169_v35 = vpop.xlane.xlu0 %3168  ;;  %v3305_v36 = vmul.f32 %v5262_v28, %v3207_v54  ;;  %vm3311_vm5 = vweird.f32 %v5262_v28 }
 0xace   : > { %v3193_v59 = vmul.f32 %v3169_v35, %v6400_v63  ;;  %v7819_v39 = vadd.f32 1e-05, %v3192_v41  ;;  %vm3312_vm7 = vmor %vm3310_vm6, %vm3311_vm5 }
 0xacf   : > { %v3306_v38 = vmul.f32 %v5262_v28, %v3305_v36 }
 0xad0   : > { %3628 = vmatpush.bf16.msrb.mxu1 %v4978_v4  ;;  %v7814_v46 = vadd.f32 1e-05, %v3193_v59  ;;  %vm3320_vm2 = vweird.f32 %v7819_v39 }
 0xad1   : > { %v3307_v7 = vmul.f32 0.5, %v3306_v38 }
 0xad2   : > { %5263 = vrsqrt.f32 %v7814_v46  ;;  %vm3330_vm12 = vweird.f32 %v7814_v46 }
 0xad3   : > { %5265 = vrsqrt.f32 %v7819_v39  ;;  %v3308_v62 = vsub.f32 1.5, %v3307_v7 }
 0xad4   : > { %3629 = vmatpush.bf16.msrb.mxu1 %v4977_v23 }
 0xad5   : > { %v3309_v19 = vmul.f32 %v5262_v28, %v3308_v62 }
 0xad7   : > { %v3313_v27 = vsel %vm3312_vm7, %v5262_v28, %v3309_v19  ;;  %v7848_v28 = vld [vmem:[%s8575_s7 + $0x1] ss:$0 sm:$0xff] }
 0xad8   : > { %3630 = vmatpush.bf16.msrb.mxu1 %v4976_v24  ;;  %v7824_v45 = vpop.eup %5263  ;;  %v3383_v54 = vmul.f32 %v3313_v27, %v7609_v18 }
 0xad9   : > { %v7826_v1 = vpop.eup %5265  ;;  %v3325_v49 = vmul.f32 %v7824_v45, %v7814_v46  ;;  %vm3331_vm3 = vweird.f32 %v7824_v45 }
 0xada   : > { %v3402_v18 = vmul.f32 %v7670_v2, %v3383_v54  ;;  %vm3321_vm11 = vweird.f32 %v7826_v1  ;;  %vm3332_vm13 = vmor %vm3330_vm12, %vm3331_vm3 }
 0xadb   : > { %4887 = vmatmul.msk.bf16.gmra.mxu0 %vm755_vm0, %v3431_v43  ;;  %v3315_v43 = vmul.f32 %v7826_v1, %v7819_v39  ;;  %v3326_v61 = vmul.f32 %v7824_v45, %v3325_v49  ;;  %vm3322_vm14 = vmor %vm3320_vm2, %vm3321_vm11 }
 0xadc   : > { %3631 = vmatpush.bf16.msrb.mxu1 %v4975_v15 }
 0xadd   : > { %v3316_v23 = vmul.f32 %v7826_v1, %v3315_v43  ;;  %v3327_v59 = vmul.f32 0.5, %v3326_v61 }
 0xadf   : > { %v3317_v41 = vmul.f32 0.5, %v3316_v23  ;;  %v3328_v38 = vsub.f32 1.5, %v3327_v59 }
 0xae0   : > { %3632 = vmatpush.bf16.msrb.mxu1 %v4974_v40 }
 0xae1   : > { %v3318_v7 = vsub.f32 1.5, %v3317_v41  ;;  %v3329_v19 = vmul.f32 %v7824_v45, %v3328_v38 }
 0xae3   : > { %v3319_v61 = vmul.f32 %v7826_v1, %v3318_v7 }
 0xb17   : > { %v3160_v32 = vpop.xlane.xlu2 %3159 }
 0xb18   : > { %v3190_v58 = vmul.f32 %v3160_v32, %v6400_v63 }
 0xb1a   : > { %v3206_v13 = vadd.f32 1e-05, %v3190_v58 }
 0xb1c   : > { %5267 = vrsqrt.f32 %v3206_v13  ;;  %vm3300_vm9 = vweird.f32 %v3206_v13 }
 0xb1f   : > { %v3085_v53 = vpop.xlane.xlu2 %3084 }
 0xb20   : > { %v3101_v25 = vmul.f32 %v3085_v53, %v6400_v63 }
 0xb22   : > { %v5268_v34 = vpop.eup %5267  ;;  %v7832_v16 = vsub.f32 %v7697_v47, %v3101_v25 }
 0xb23   : > { %v3295_v44 = vmul.f32 %v5268_v34, %v3206_v13  ;;  %vm3301_vm8 = vweird.f32 %v5268_v34 }
 0xb24   : > { %v3133_v8 = vmul.f32 %v7832_v16, %v7832_v16  ;;  %vm3302_vm10 = vmor %vm3300_vm9, %vm3301_vm8 }
 0xb25   : > { %v3296_v14 = vmul.f32 %v5268_v34, %v3295_v44 }
 0xb26   : > { %v3179_v4 = vsel %vm755_vm0, %v3133_v8, 0.0 }
 0xb27   : > { %v3297_v35 = vmul.f32 0.5, %v3296_v14  ;;  %3180 = vadd.xlane.f32.xlu2 %v3179_v4  ;;  %v3172_v47 = vpop.xlane.xlu2 %3171 }
 0xb28   : > { %v3194_v24 = vmul.f32 %v3172_v47, %v6400_v63  ;;  %v3491_v29 = vpop.f32.mrf.mxu0  ;;  %v3323_v47 = vsel %vm3322_vm14, %v7826_v1, %v3319_v61 }
 0xb29   : > { %v3298_v15 = vsub.f32 1.5, %v3297_v35  ;;  %v3492_v62 = vadd.f32 %v7848_v28, %v3491_v29  ;;  %v3333_v35 = vsel %vm3332_vm13, %v7824_v45, %v3329_v19 }
 0xb2a   : > { %v7843_v36 = vadd.f32 1e-05, %v3194_v24  ;;  %v3385_v29 = vmul.f32 %v3333_v35, %v7631_v48 }
 0xb2b   : > { %v3299_v40 = vmul.f32 %v5268_v34, %v3298_v15  ;;  %v3531_v27 = vmax.f32 %v3492_v62, 0.0  ;;  %v3384_v15 = vmul.f32 %v3323_v47, %v7627_v31 }
 0xb2c   : > { %5269 = vrsqrt.f32 %v7843_v36  ;;  %v3404_v39 = vmul.f32 %v7670_v2, %v3385_v29  ;;  %vm3340_vm6 = vweird.f32 %v7843_v36 }
 0xb2d   : > { %v3303_v32 = vsel %vm3302_vm10, %v5268_v34, %v3299_v40  ;;  %v7860_v34 = vadd.f32 %v7686_v6, %v3402_v18  ;;  %v3403_v45 = vmul.f32 %v7670_v2, %v3384_v15  ;;  %v8711_v15 = vld [vmem:[#allocation37_spill] sm:$0xff] }
 0xb2e   : > { %v3382_v58 = vmul.f32 %v3303_v32, %v7665_v37  ;;  %v7881_v7 = vadd.f32 %v7686_v6, %v3404_v39 }
 0xb2f   : > { %v3175_v53 = vpop.xlane.xlu1 %3174  ;;  %v7885_v31 = vadd.f32 %v7686_v6, %v3403_v45 }
 0xb30   : > { %v3195_v13 = vmul.f32 %v3175_v53, %v6400_v63  ;;  %v3493_v25 = vpop.f32.mrf.mxu0  ;;  %v3401_v49 = vmul.f32 %v7670_v2, %v3382_v58 }
 0xb31   : > { %v3494_v43 = vadd.f32 %v7848_v28, %v3493_v25  ;;  %v3433_v19 = vpack.c.bf16 %v7881_v7, %v7885_v31 }
 0xb32   : > { %v5270_v44 = vpop.eup %5269  ;;  %v3211_v37 = vadd.f32 1e-05, %v3195_v13  ;;  %v7865_v8 = vadd.f32 %v7686_v6, %v3401_v49 }
 0xb33   : > { %v3335_v14 = vmul.f32 %v5270_v44, %v7843_v36  ;;  %v3532_v4 = vmax.f32 %v3494_v43, 0.0  ;;  %vm3341_vm1 = vweird.f32 %v5270_v44 }
 0xb34   : > { %5271 = vrsqrt.f32 %v3211_v37  ;;  %v3432_v23 = vpack.c.bf16 %v7860_v34, %v7865_v8  ;;  %vm3350_vm4 = vweird.f32 %v3211_v37  ;;  %vm3342_vm7 = vmor %vm3340_vm6, %vm3341_vm1 }
 0xb35   : > { %v3547_v46 = vpack.c.bf16 %v3532_v4, %v3531_v27  ;;  %v3336_v24 = vmul.f32 %v5270_v44, %v3335_v14 }
 0xb36   : > { %4888 = vmatmul.msk.bf16.gmra.mxu0 %vm755_vm0, %v3432_v23 }
 0xb37   : > { %3633 = vmatmul.bf16.vlgmr.msrb.gmra.mxu1 %v3547_v46  ;;  %v3337_v41 = vmul.f32 0.5, %v3336_v24 }
 0xb38   : > { %v3496_v54 = vpop.f32.mrf.mxu0 }
 0xb39   : > { %v3338_v32 = vsub.f32 1.5, %v3337_v41  ;;  %v3497_v58 = vadd.f32 %v7848_v28, %v3496_v54 }
 0xb3a   : > { %v5272_v59 = vpop.eup %5271 }
 0xb3b   : > { %v3345_v40 = vmul.f32 %v5272_v59, %v3211_v37  ;;  %vm3351_vm15 = vweird.f32 %v5272_v59  ;;  %v3339_v53 = vmul.f32 %v5270_v44, %v3338_v32  ;;  %v3533_v25 = vmax.f32 %v3497_v58, 0.0  ;;  %v8710_v37 = vld [vmem:[#allocation20_spill] sm:$0xff] }
 0xb3c   : > { %vm3352_vm5 = vmor %vm3350_vm4, %vm3351_vm15  ;;  %v4319_v27 = vperm.slane %v8710_v37, 0  ;;  %v4332_v4 = vperm.slane %v8710_v37, 1  ;;  %v4371_v36 = vperm.slane %v8710_v37, 4  ;;  %v4358_v45 = vperm.slane %v8710_v37, 3 }
 0xb3d   : > { %v3346_v38 = vmul.f32 %v5272_v59, %v3345_v40  ;;  %v3343_v14 = vsel %vm3342_vm7, %v5270_v44, %v3339_v53 }
 0xb3e   : > { %4324 = vperm.xlu1 %5092, %v4319_v27   ;;  %v3386_v46 = vmul.f32 %v3343_v14, %v7719_v55  ;;  %4376 = vperm.xlu0 %5095, %v4371_v36  }
 0xb3f   : > { %v3347_v18 = vmul.f32 0.5, %v3346_v38  ;;  %4337 = vperm.xlu2 %5093, %v4332_v4  }
 0xb40   : > { %v3498_v1 = vpop.f32.mrf.mxu0  ;;  %v3405_v47 = vmul.f32 %v7670_v2, %v3386_v46 }
 0xb41   : > { %v3348_v48 = vsub.f32 1.5, %v3347_v18  ;;  %v3499_v62 = vadd.f32 %v7848_v28, %v3498_v1 }
 0xb42   : > { %v7910_v55 = vadd.f32 %v7686_v6, %v3405_v47 }
 0xb43   : > { %v3349_v13 = vmul.f32 %v5272_v59, %v3348_v48  ;;  %v3534_v49 = vmax.f32 %v3499_v62, 0.0 }
 0xb45   : > { %v3353_v43 = vsel %vm3352_vm5, %v5272_v59, %v3349_v13  ;;  %v3548_v61 = vpack.c.bf16 %v3534_v49, %v3533_v25  ;;  %v3178_v13 = vpop.xlane.xlu0 %3177 }
 0xb46   : > { %4889 = vmatmul.msk.bf16.gmra.mxu0 %vm755_vm0, %v3433_v19  ;;  %v3387_v23 = vmul.f32 %v3353_v43, %v7742_v52  ;;  %v4345_v52 = vperm.slane %v8710_v37, 2  ;;  %5094 = vset.pattern.permute.xlu1 %v8711_v15  ;;  %v3196_v25 = vmul.f32 %v3178_v13, %v6400_v63 }
 0xb47   : > { %3638 = vmatmul.bf16.gmra.mxu1 %v3548_v61  ;;  %5096 = vset.pattern.permute.xlu0 %v8711_v15 }
 0xb48   : > { %v3501_v35 = vpop.f32.mrf.mxu0  ;;  %v3406_v44 = vmul.f32 %v7670_v2, %v3387_v23  ;;  %4350 = vperm.xlu2 %5093, %v4345_v52   ;;  %v3212_v49 = vadd.f32 1e-05, %v3196_v25 }
 0xb49   : > { %v3502_v24 = vadd.f32 %v7848_v28, %v3501_v35 }
 0xb4a   : > { %v7905_v54 = vadd.f32 %v7686_v6, %v3406_v44  ;;  %5273 = vrsqrt.f32 %v3212_v49  ;;  %vm3360_vm9 = vweird.f32 %v3212_v49 }
 0xb4b   : > { %v3535_v41 = vmax.f32 %v3502_v24, 0.0 }
 0xb4c   : > { %v3434_v39 = vpack.c.bf16 %v7905_v54, %v7910_v55 }
 0xb4e   : > { %4343 = vperm.xlu1 %5094, %v4332_v4  }
 0xb50   : > { %v3503_v29 = vpop.f32.mrf.mxu0  ;;  %4363 = vperm.xlu2 %5093, %v4358_v45   ;;  %v5274_v19 = vpop.eup %5273 }
 0xb51   : > { %v3504_v59 = vadd.f32 %v7848_v28, %v3503_v29  ;;  %v3355_v43 = vmul.f32 %v5274_v19, %v3212_v49  ;;  %vm3361_vm8 = vweird.f32 %v5274_v19 }
 0xb52   : > { %vm3362_vm10 = vmor %vm3360_vm9, %vm3361_vm8 }
 0xb53   : > { %v3536_v40 = vmax.f32 %v3504_v59, 0.0  ;;  %v3356_v61 = vmul.f32 %v5274_v19, %v3355_v43 }
 0xb55   : > { %v3549_v38 = vpack.c.bf16 %v3536_v40, %v3535_v41  ;;  %v3357_v35 = vmul.f32 0.5, %v3356_v61 }
 0xb56   : > { %4890 = vmatmul.msk.bf16.gmra.mxu0 %vm755_vm0, %v3434_v39  ;;  %4356 = vperm.xlu1 %5094, %v4345_v52  }
 0xb57   : > { %3643 = vmatmul.bf16.gmra.mxu1 %v3549_v38  ;;  %v3358_v46 = vsub.f32 1.5, %v3357_v35 }
 0xb58   : > { %v3506_v32 = vpop.f32.mrf.mxu0  ;;  %5097 = vset.pattern.permute.xlu2 %v8711_v15 }
 0xb59   : > { %v3507_v18 = vadd.f32 %v7848_v28, %v3506_v32  ;;  %v3359_v47 = vmul.f32 %v5274_v19, %v3358_v46  ;;  %v7928_v32 = vld [vmem:[%s8577_s9 + $0x1] ss:$0 sm:$0xff] }
 0xb5b   : > { %v3537_v48 = vmax.f32 %v3507_v18, 0.0  ;;  %v3363_v29 = vsel %vm3362_vm10, %v5274_v19, %v3359_v47 }
 0xb5c   : > { %v3388_v40 = vmul.f32 %v3363_v29, %v7760_v50 }
 0xb5e   : > { %4369 = vperm.xlu1 %5094, %v4358_v45   ;;  %v3407_v18 = vmul.f32 %v7670_v2, %v3388_v40 }
 0xb60   : > { %v3508_v58 = vpop.f32.mrf.mxu0  ;;  %v7934_v50 = vadd.f32 %v7686_v6, %v3407_v18 }
 0xb61   : > { %v3509_v1 = vadd.f32 %v7848_v28, %v3508_v58 }
 0xb63   : > { %v3538_v62 = vmax.f32 %v3509_v1, 0.0 }
 0xb65   : > { %v3550_v53 = vpack.c.bf16 %v3538_v62, %v3537_v48 }
 0xb66   : > { %5098 = vset.pattern.permute.xlu1 %v6097_v42 }
 0xb67   : > { %3648 = vmatmul.bf16.gmra.mxu1 %v3550_v53 }
 0xb9a   : > { %v3181_v14 = vpop.xlane.xlu2 %3180 }
 0xb9b   : > { %v3197_v4 = vmul.f32 %v3181_v14, %v6400_v63 }
 0xb9d   : > { %v3213_v23 = vadd.f32 1e-05, %v3197_v4 }
 0xb9f   : > { %5275 = vrsqrt.f32 %v3213_v23  ;;  %vm3370_vm11 = vweird.f32 %v3213_v23 }
 0xba5   : > { %v5276_v44 = vpop.eup %5275 }
 0xba6   : > { %v3365_v24 = vmul.f32 %v5276_v44, %v3213_v23  ;;  %vm3371_vm3 = vweird.f32 %v5276_v44 }
 0xba7   : > { %vm3372_vm12 = vmor %vm3370_vm11, %vm3371_vm3 }
 0xba8   : > { %v3366_v52 = vmul.f32 %v5276_v44, %v3365_v24 }
 0xbaa   : > { %v3367_v59 = vmul.f32 0.5, %v3366_v52 }
 0xbac   : > { %v3368_v41 = vsub.f32 1.5, %v3367_v59 }
 0xbae   : > { %v3369_v39 = vmul.f32 %v5276_v44, %v3368_v41 }
 0xbb0   : > { %v3373_v38 = vsel %vm3372_vm12, %v5276_v44, %v3369_v39 }
 0xbb1   : > { %v3389_v45 = vmul.f32 %v3373_v38, %v7832_v16 }
 0xbb3   : > { %v3511_v58 = vpop.f32.mrf.mxu0  ;;  %v3408_v1 = vmul.f32 %v7670_v2, %v3389_v45 }
 0xbb4   : > { %v3634_v48 = vpop.f32.mrf.mxu1  ;;  %v3512_v25 = vadd.f32 %v7848_v28, %v3511_v58 }
 0xbb5   : > { %v3635_v62 = vadd.f32 %v7928_v32, %v3634_v48  ;;  %v7937_v53 = vadd.f32 %v7686_v6, %v3408_v1 }
 0xbb6   : > { %v3539_v61 = vmax.f32 %v3512_v25, 0.0 }
 0xbb7   : > { %v7940_v16 = vadd.f32 %v3635_v62, %v7702_v33  ;;  %v3435_v13 = vpack.c.bf16 %v7937_v53, %v7934_v50 }
 0xbb9   : > { %4891 = vmatmul.msk.bf16.gmra.mxu0 %vm755_vm0, %v3435_v13  ;;  %v3690_v2 = vsel %vm755_vm0, %v7940_v16, 0.0 }
 0xbba   : > { %3691 = vadd.xlane.f32.xlu1 %v3690_v2 }
 0xbbb   : > { %v3513_v49 = vpop.f32.mrf.mxu0 }
 0xbbc   : > { %v3514_v19 = vadd.f32 %v7848_v28, %v3513_v49  ;;  %v3636_v43 = vpop.f32.mrf.mxu1 }
 0xbbd   : > { %v3637_v6 = vadd.f32 %v7928_v32, %v3636_v43 }
 0xbbe   : > { %v3540_v33 = vmax.f32 %v3514_v19, 0.0 }
 0xbbf   : > { %v7951_v14 = vadd.f32 %v3637_v6, %v7694_v60 }
 0xbc0   : > { %v3551_v4 = vpack.c.bf16 %v3540_v33, %v3539_v61 }
 0xbc1   : > { %v3693_v23 = vsel %vm755_vm0, %v7951_v14, 0.0 }
 0xbc2   : > { %3653 = vmatmul.bf16.gmra.mxu1 %v3551_v4  ;;  %3694 = vadd.xlane.f32.xlu0 %v3693_v23 }
 0xbc3   : > { %v3516_v35 = vpop.f32.mrf.mxu0 }
 0xbc4   : > { %v3639_v46 = vpop.f32.mrf.mxu1  ;;  %v3517_v52 = vadd.f32 %v7848_v28, %v3516_v35 }
 0xbc5   : > { %v3640_v44 = vadd.f32 %v7928_v32, %v3639_v46 }
 0xbc6   : > { %v3541_v40 = vmax.f32 %v3517_v52, 0.0 }
 0xbc7   : > { %v7957_v47 = vadd.f32 %v3640_v44, %v7737_v30 }
 0xbc9   : > { %v3696_v24 = vsel %vm755_vm0, %v7957_v47, 0.0 }
 0xbca   : > { %3697 = vadd.xlane.f32.xlu2 %v3696_v24 }
 0xbcb   : > { %v3518_v60 = vpop.f32.mrf.mxu0 }
 0xbcc   : > { %v3519_v29 = vadd.f32 %v7848_v28, %v3518_v60  ;;  %v3641_v59 = vpop.f32.mrf.mxu1  ;;  %v7992_v60 = vpop.permute.xlu1 %4324 }
 0xbcd   : > { %v3642_v41 = vadd.f32 %v7928_v32, %v3641_v59 }
 0xbce   : > { %v3542_v39 = vmax.f32 %v3519_v29, 0.0 }
 0xbcf   : > { %v7965_v38 = vadd.f32 %v3642_v41, %v7745_v11 }
 0xbd0   : > { %v3552_v45 = vpack.c.bf16 %v3542_v39, %v3541_v40 }
 0xbd1   : > { %v3699_v30 = vsel %vm755_vm0, %v7965_v38, 0.0 }
 0xbd2   : > { %3658 = vmatmul.bf16.gmra.mxu1 %v3552_v45  ;;  %3700 = vadd.xlane.f32.xlu1 %v3699_v30 }
 0xbd3   : > { %v3521_v18 = vpop.f32.mrf.mxu0 }
 0xbd4   : > { %v3644_v58 = vpop.f32.mrf.mxu1  ;;  %v3522_v13 = vadd.f32 %v7848_v28, %v3521_v18 }
 0xbd5   : > { %v3645_v1 = vadd.f32 %v7928_v32, %v3644_v58  ;;  %v8002_v58 = vpop.permute.xlu1 %4343 }
 0xbd6   : > { %v3543_v19 = vmax.f32 %v3522_v13, 0.0 }
 0xbd7   : > { %v7971_v48 = vadd.f32 %v3645_v1, %v7771_v22 }
 0xbd9   : > { %v3702_v62 = vsel %vm755_vm0, %v7971_v48, 0.0 }
 0xbda   : > { %3703 = vadd.xlane.f32.xlu0 %v3702_v62 }
 0xbdb   : > { %v3523_v11 = vpop.f32.mrf.mxu0 }
 0xbdc   : > { %v3524_v2 = vadd.f32 %v7848_v28, %v3523_v11  ;;  %v3646_v25 = vpop.f32.mrf.mxu1 }
 0xbdd   : > { %v3647_v49 = vadd.f32 %v7928_v32, %v3646_v25 }
 0xbde   : > { %v3544_v43 = vmax.f32 %v3524_v2, 0.0  ;;  %v8008_v2 = vpop.permute.xlu1 %4356 }
 0xbdf   : > { %v7979_v6 = vadd.f32 %v3647_v49, %v7768_v17 }
 0xbe0   : > { %v3553_v61 = vpack.c.bf16 %v3544_v43, %v3543_v19 }
 0xbe1   : > { %v3705_v22 = vsel %vm755_vm0, %v7979_v6, 0.0 }
 0xbe2   : > { %3663 = vmatmul.bf16.gmra.mxu1 %v3553_v61  ;;  %3706 = vadd.xlane.f32.xlu2 %v3705_v22 }
 0xbe4   : > { %v3649_v33 = vpop.f32.mrf.mxu1 }
 0xbe5   : > { %v3650_v4 = vadd.f32 %v7928_v32, %v3649_v33 }
 0xbe6   : > { %v8019_v61 = vpop.permute.xlu1 %4369 }
 0xbe7   : > { %v3680_v23 = vadd.f32 %v3650_v4, %v7782_v57 }
 0xbe9   : > { %v3708_v35 = vsel %vm755_vm0, %v3680_v23, 0.0 }
 0xbea   : > { %3709 = vadd.xlane.f32.xlu1 %v3708_v35 }
 0xbec   : > { %v3651_v46 = vpop.f32.mrf.mxu1 }
 0xbed   : > { %v3652_v44 = vadd.f32 %v7928_v32, %v3651_v46 }
 0xbef   : > { %v7988_v17 = vadd.f32 %v3652_v44, %v7785_v56 }
 0xbf1   : > { %v3711_v24 = vsel %vm755_vm0, %v7988_v17, 0.0 }
 0xbf2   : > { %3712 = vadd.xlane.f32.xlu0 %v3711_v24 }
 0xc2d   : > { %v3692_v46 = vpop.xlane.xlu1 %3691 }
 0xc36   : > { %v3526_v52 = vpop.f32.mrf.mxu0 }
 0xc37   : > { %v3527_v29 = vadd.f32 %v7848_v28, %v3526_v52 }
 0xc39   : > { %v3545_v39 = vmax.f32 %v3527_v29, 0.0 }
 0xc3e   : > { %v3528_v59 = vpop.f32.mrf.mxu0 }
 0xc3f   : > { %v3529_v57 = vadd.f32 %v7848_v28, %v3528_v59  ;;  %v3654_v41 = vpop.f32.mrf.mxu1 }
 0xc40   : > { %v3655_v40 = vadd.f32 %v7928_v32, %v3654_v41 }
 0xc41   : > { %v3546_v45 = vmax.f32 %v3529_v57, 0.0 }
 0xc42   : > { %v7998_v56 = vadd.f32 %v3655_v40, %v7865_v8 }
 0xc43   : > { %v3554_v30 = vpack.c.bf16 %v3546_v45, %v3545_v39 }
 0xc44   : > { %v3714_v18 = vsel %vm755_vm0, %v7998_v56, 0.0 }
 0xc45   : > { %3668 = vmatmul.bf16.gmra.mxu1 %v3554_v30  ;;  %3715 = vadd.xlane.f32.xlu2 %v3714_v18  ;;  %v3701_v59 = vpop.xlane.xlu1 %3700 }
 0xc46   : > { %v3741_v57 = vmul.f32 %v3701_v59, %v6400_v63 }
 0xc47   : > { %v3656_v1 = vpop.f32.mrf.mxu1 }
 0xc48   : > { %v3657_v62 = vadd.f32 %v7928_v32, %v3656_v1  ;;  %v8043_v40 = vsub.f32 %v7965_v38, %v3741_v57 }
 0xc4a   : > { %v3683_v28 = vadd.f32 %v3657_v62, %v7860_v34  ;;  %v3773_v45 = vmul.f32 %v8043_v40, %v8043_v40  ;;  %v8055_v62 = vpop.permute.xlu2 %4337 }
 0xc4c   : > { %v3717_v13 = vsel %vm755_vm0, %v3683_v28, 0.0  ;;  %v3795_v18 = vsel %vm755_vm0, %v3773_v45, 0.0 }
 0xc4d   : > { %3718 = vadd.xlane.f32.xlu1 %v3717_v13 }
 0xc4f   : > { %v3659_v11 = vpop.f32.mrf.mxu1 }
 0xc50   : > { %v3660_v8 = vadd.f32 %v7928_v32, %v3659_v11  ;;  %v8059_v11 = vpop.permute.xlu0 %4376 }
 0xc52   : > { %v8011_v25 = vadd.f32 %v3660_v8, %v7885_v31  ;;  %v8057_v13 = vpop.permute.xlu2 %4350 }
 0xc54   : > { %v3720_v49 = vsel %vm755_vm0, %v8011_v25, 0.0 }
 0xc55   : > { %3721 = vadd.xlane.f32.xlu0 %v3720_v49 }
 0xc57   : > { %v3661_v19 = vpop.f32.mrf.mxu1 }
 0xc58   : > { %v3662_v43 = vadd.f32 %v7928_v32, %v3661_v19  ;;  %v3695_v49 = vpop.xlane.xlu0 %3694 }
 0xc5a   : > { %v8017_v34 = vadd.f32 %v3662_v43, %v7881_v7  ;;  %v3738_v7 = vmul.f32 %v3692_v46, %v6400_v63  ;;  %v8061_v8 = vpop.permute.xlu2 %4363 }
 0xc5c   : > { %v3723_v22 = vsel %vm755_vm0, %v8017_v34, 0.0  ;;  %v8035_v29 = vsub.f32 %v7940_v16, %v3738_v7 }
 0xc5d   : > { %3724 = vadd.xlane.f32.xlu2 %v3723_v22  ;;  %v3739_v22 = vmul.f32 %v3695_v49, %v6400_v63 }
 0xc5e   : > { %v3770_v41 = vmul.f32 %v8035_v29, %v8035_v29 }
 0xc5f   : > { %v3664_v33 = vpop.f32.mrf.mxu1 }
 0xc60   : > { %v3665_v31 = vadd.f32 %v7928_v32, %v3664_v33  ;;  %v3786_v39 = vsel %vm755_vm0, %v3770_v41, 0.0  ;;  %v3704_v59 = vpop.xlane.xlu0 %3703 }
 0xc62   : > { %v8025_v4 = vadd.f32 %v3665_v31, %v7910_v55  ;;  %v3698_v7 = vpop.xlane.xlu2 %3697 }
 0xc63   : > { %v3740_v57 = vmul.f32 %v3698_v7, %v6400_v63 }
 0xc64   : > { %v3726_v35 = vsel %vm755_vm0, %v8025_v4, 0.0 }
 0xc65   : > { %3727 = vadd.xlane.f32.xlu1 %v3726_v35 }
 0xc67   : > { %v3666_v44 = vpop.f32.mrf.mxu1 }
 0xc68   : > { %v3667_v24 = vadd.f32 %v7928_v32, %v3666_v44  ;;  %v8074_v44 = vsub.f32 %v7951_v14, %v3739_v22 }
 0xc6a   : > { %v8032_v52 = vadd.f32 %v3667_v24, %v7905_v54  ;;  %v3710_v54 = vpop.xlane.xlu1 %3709  ;;  %v3771_v14 = vmul.f32 %v8074_v44, %v8074_v44  ;;  %v3707_v45 = vpop.xlane.xlu2 %3706 }
 0xc6b   : > { %v3744_v16 = vmul.f32 %v3710_v54, %v6400_v63  ;;  %v8088_v54 = vsub.f32 %v7957_v47, %v3740_v57 }
 0xc6c   : > { %v3729_v55 = vsel %vm755_vm0, %v8032_v52, 0.0 }
 0xc6d   : > { %3730 = vadd.xlane.f32.xlu0 %v3729_v55  ;;  %v8049_v30 = vsub.f32 %v3680_v23, %v3744_v16 }
 0xc6f   : > { %v3776_v1 = vmul.f32 %v8049_v30, %v8049_v30 }
 0xc71   : > { %v3804_v38 = vsel %vm755_vm0, %v3776_v1, 0.0 }
 0xc75   : > { %3787 = vadd.xlane.f32.xlu0 %v3786_v39 }
 0xc7d   : > { %3796 = vadd.xlane.f32.xlu0 %v3795_v18  ;;  %v3789_v18 = vsel %vm755_vm0, %v3771_v14, 0.0 }
 0xc85   : > { %3805 = vadd.xlane.f32.xlu0 %v3804_v38  ;;  %v3713_v38 = vpop.xlane.xlu0 %3712 }
 0xcc0   : > { %v3719_v23 = vpop.xlane.xlu1 %3718 }
 0xcc1   : > { %v3747_v19 = vmul.f32 %v3719_v23, %v6400_v63 }
 0xcc2   : > { %v3669_v43 = vpop.f32.mrf.mxu1 }
 0xcc3   : > { %v8065_v33 = vsub.f32 %v3683_v28, %v3747_v19  ;;  %v3670_v31 = vadd.f32 %v7928_v32, %v3669_v43  ;;  %v3716_v19 = vpop.xlane.xlu2 %3715 }
 0xcc5   : > { %v8069_v35 = vadd.f32 %v3670_v31, %v7934_v50  ;;  %v3779_v46 = vmul.f32 %v8065_v33, %v8065_v33  ;;  %v3742_v50 = vmul.f32 %v3704_v59, %v6400_v63 }
 0xcc7   : > { %v3732_v24 = vsel %vm755_vm0, %v8069_v35, 0.0  ;;  %v3813_v55 = vsel %vm755_vm0, %v3779_v46, 0.0  ;;  %v8091_v16 = vsub.f32 %v7971_v48, %v3742_v50  ;;  %v3772_v48 = vmul.f32 %v8088_v54, %v8088_v54 }
 0xcc8   : > { %3733 = vadd.xlane.f32.xlu2 %v3732_v24  ;;  %3814 = vadd.xlane.f32.xlu0 %v3813_v55  ;;  %v3722_v31 = vpop.xlane.xlu0 %3721 }
 0xcc9   : > { %v3774_v47 = vmul.f32 %v8091_v16, %v8091_v16  ;;  %v3792_v22 = vsel %vm755_vm0, %v3772_v48, 0.0  ;;  %v3748_v55 = vmul.f32 %v3722_v31, %v6400_v63 }
 0xcca   : > { %v3671_v28 = vpop.f32.mrf.mxu1 }
 0xccb   : > { %v3672_v41 = vadd.f32 %v7928_v32, %v3671_v28  ;;  %v3743_v32 = vmul.f32 %v3707_v45, %v6400_v63  ;;  %v3798_v43 = vsel %vm755_vm0, %v3774_v47, 0.0 }
 0xccd   : > { %v8085_v39 = vadd.f32 %v3672_v41, %v7937_v53  ;;  %v3745_v53 = vmul.f32 %v3713_v38, %v6400_v63  ;;  %v8103_v49 = vsub.f32 %v7979_v6, %v3743_v32  ;;  %v3746_v6 = vmul.f32 %v3716_v19, %v6400_v63 }
 0xcce   : > { %v8127_v41 = vsub.f32 %v8011_v25, %v3748_v55 }
 0xccf   : > { %v3735_v1 = vsel %vm755_vm0, %v8085_v39, 0.0  ;;  %v8106_v23 = vsub.f32 %v7988_v17, %v3745_v53  ;;  %v3775_v24 = vmul.f32 %v8103_v49, %v8103_v49  ;;  %v8124_v50 = vsub.f32 %v7998_v56, %v3746_v6 }
 0xcd0   : > { %3790 = vadd.xlane.f32.xlu2 %v3789_v18  ;;  %3736 = vadd.xlane.f32.xlu1 %v3735_v1  ;;  %v3780_v56 = vmul.f32 %v8127_v41, %v8127_v41 }
 0xcd1   : > { %v3777_v59 = vmul.f32 %v8106_v23, %v8106_v23  ;;  %v3801_v57 = vsel %vm755_vm0, %v3775_v24, 0.0  ;;  %v3778_v25 = vmul.f32 %v8124_v50, %v8124_v50 }
 0xcd2   : > { %v3816_v47 = vsel %vm755_vm0, %v3780_v56, 0.0 }
 0xcd3   : > { %v3807_v14 = vsel %vm755_vm0, %v3777_v59, 0.0  ;;  %v3810_v48 = vsel %vm755_vm0, %v3778_v25, 0.0 }
 0xcd8   : > { %3799 = vadd.xlane.f32.xlu2 %v3798_v43  ;;  %3793 = vadd.xlane.f32.xlu1 %v3792_v22  ;;  %v3728_v46 = vpop.xlane.xlu1 %3727 }
 0xcd9   : > { %v3750_v7 = vmul.f32 %v3728_v46, %v6400_v63 }
 0xcdb   : > { %v8116_v17 = vsub.f32 %v8025_v4, %v3750_v7  ;;  %v3725_v4 = vpop.xlane.xlu2 %3724 }
 0xcdc   : > { %v3749_v1 = vmul.f32 %v3725_v4, %v6400_v63 }
 0xcdd   : > { %v3782_v28 = vmul.f32 %v8116_v17, %v8116_v17 }
 0xcde   : > { %v8138_v32 = vsub.f32 %v8017_v34, %v3749_v1 }
 0xcdf   : > { %v3822_v45 = vsel %vm755_vm0, %v3782_v28, 0.0 }
 0xce0   : > { %v3731_v18 = vpop.xlane.xlu0 %3730  ;;  %3808 = vadd.xlane.f32.xlu2 %v3807_v14  ;;  %3802 = vadd.xlane.f32.xlu1 %v3801_v57  ;;  %v3781_v34 = vmul.f32 %v8138_v32, %v8138_v32 }
 0xce1   : > { %3823 = vadd.xlane.f32.xlu0 %v3822_v45  ;;  %v3751_v38 = vmul.f32 %v3731_v18, %v6400_v63 }
 0xce2   : > { %v3819_v46 = vsel %vm755_vm0, %v3781_v34, 0.0 }
 0xce3   : > { %v8141_v53 = vsub.f32 %v8032_v52, %v3751_v38 }
 0xce5   : > { %v3783_v31 = vmul.f32 %v8141_v53, %v8141_v53 }
 0xce7   : > { %v3825_v52 = vsel %vm755_vm0, %v3783_v31, 0.0 }
 0xce8   : > { %3817 = vadd.xlane.f32.xlu2 %v3816_v47  ;;  %3811 = vadd.xlane.f32.xlu1 %v3810_v48  ;;  %v3788_v19 = vpop.xlane.xlu0 %3787 }
 0xce9   : > { %v3834_v43 = vmul.f32 %v3788_v19, %v6400_v63 }
 0xceb   : > { %v3850_v22 = vadd.f32 1e-05, %v3834_v43  ;;  %v8159_v43 = vld [vmem:[%s8578_s10 + $0x1] ss:$0 sm:$0xff] }
 0xced   : > { %5277 = vrsqrt.f32 %v3850_v22  ;;  %vm3872_vm2 = vweird.f32 %v3850_v22 }
 0xcf0   : > { %3826 = vadd.xlane.f32.xlu2 %v3825_v52  ;;  %3820 = vadd.xlane.f32.xlu1 %v3819_v46  ;;  %v3797_v7 = vpop.xlane.xlu0 %3796 }
 0xcf1   : > { %v3837_v24 = vmul.f32 %v3797_v7, %v6400_v63 }
 0xcf3   : > { %v5278_v6 = vpop.eup %5277  ;;  %v3853_v55 = vadd.f32 1e-05, %v3837_v24  ;;  %v8712_v24 = vld [vmem:[#allocation24_spill] sm:$0xff] }
 0xcf4   : > { %v3867_v59 = vmul.f32 %v5278_v6, %v3850_v22  ;;  %vm3873_vm13 = vweird.f32 %v5278_v6  ;;  %v8165_v22 = vld [vmem:[%s8579_s11 + $0x1] ss:$0 sm:$0xff] }
 0xcf5   : > { %5279 = vrsqrt.f32 %v3853_v55  ;;  %vm3874_vm14 = vmor %vm3872_vm2, %vm3873_vm13  ;;  %vm3902_vm1 = vweird.f32 %v3853_v55 }
 0xcf6   : > { %v3868_v28 = vmul.f32 %v5278_v6, %v3867_v59 }
 0xcf8   : > { %v3869_v57 = vmul.f32 0.5, %v3868_v28  ;;  %v3806_v14 = vpop.xlane.xlu0 %3805 }
 0xcf9   : > { %v3840_v45 = vmul.f32 %v3806_v14, %v6400_v63 }
 0xcfa   : > { %v3870_v4 = vsub.f32 1.5, %v3869_v57 }
 0xcfb   : > { %v5280_v18 = vpop.eup %5279  ;;  %v3856_v1 = vadd.f32 1e-05, %v3840_v45 }
 0xcfc   : > { %v3871_v38 = vmul.f32 %v5278_v6, %v3870_v4  ;;  %v3897_v56 = vmul.f32 %v5280_v18, %v3853_v55  ;;  %vm3903_vm15 = vweird.f32 %v5280_v18 }
 0xcfd   : > { %5281 = vrsqrt.f32 %v3856_v1  ;;  %vm3904_vm4 = vmor %vm3902_vm1, %vm3903_vm15  ;;  %vm3932_vm6 = vweird.f32 %v3856_v1 }
 0xcfe   : > { %v3875_v25 = vsel %vm3874_vm14, %v5278_v6, %v3871_v38  ;;  %v3898_v47 = vmul.f32 %v5280_v18, %v3897_v56  ;;  %v8713_v38 = vld [vmem:[#allocation29_spill] sm:$0xff] }
 0xcff   : > { %v4026_v48 = vmul.f32 %v3875_v25, %v8035_v29 }
 0xd00   : > { %v3899_v19 = vmul.f32 0.5, %v3898_v47 }
 0xd01   : > { %v4042_v31 = vmul.f32 %v8159_v43, %v4026_v48 }
 0xd02   : > { %v3900_v34 = vsub.f32 1.5, %v3899_v19 }
 0xd03   : > { %v5282_v52 = vpop.eup %5281  ;;  %v4058_v46 = vadd.f32 %v8165_v22, %v4042_v31 }
 0xd04   : > { %v3901_v29 = vmul.f32 %v5280_v18, %v3900_v34  ;;  %v3927_v7 = vmul.f32 %v5282_v52, %v3856_v1  ;;  %vm3933_vm5 = vweird.f32 %v5282_v52  ;;  %v8194_v1 = vld [vmem:[%s8580_s12] ss:$0 sm:$0xff] }
 0xd05   : > { %v4074_v6 = vmul.f32 %v4058_v46, %v8712_v24  ;;  %vm3934_vm7 = vmor %vm3932_vm6, %vm3933_vm5 }
 0xd06   : > { %v3905_v59 = vsel %vm3904_vm4, %v5280_v18, %v3901_v29  ;;  %v3928_v28 = vmul.f32 %v5282_v52, %v3927_v7 }
 0xd07   : > { %v4029_v57 = vmul.f32 %v3905_v59, %v8043_v40  ;;  %4090 = vst.msk [vmem:[%s8170_s29] sm:$0xff] %vm755_vm0, %v4074_v6  ;;  %v4384_v40 = vperm.slane %v8710_v37, 5 }
 0xd08   : > { %v3929_v14 = vmul.f32 0.5, %v3928_v28  ;;  %4382 = vperm.xlu2 %5097, %v4371_v36  }
 0xd09   : > { %v4045_v55 = vmul.f32 %v8159_v43, %v4029_v57 }
 0xd0a   : > { %v3930_v45 = vsub.f32 1.5, %v3929_v14 }
 0xd0b   : > { %v4061_v4 = vadd.f32 %v8165_v22, %v4045_v55 }
 0xd0c   : > { %v3931_v18 = vmul.f32 %v5282_v52, %v3930_v45 }
 0xd0d   : > { %v4077_v56 = vmul.f32 %v4061_v4, %v8713_v38 }
 0xd0e   : > { %v3935_v25 = vsel %vm3934_vm7, %v5282_v52, %v3931_v18 }
 0xd0f   : > { %v4032_v47 = vmul.f32 %v3935_v25, %v8049_v30  ;;  %4093 = vst.msk [vmem:[%s8170_s29 + $0x18] sm:$0xff] %vm755_vm0, %v4077_v56  ;;  %v4110_v30 = vmul.f32 %v8194_v1, %v4074_v6  ;;  %v4113_v29 = vmul.f32 %v8194_v1, %v4077_v56 }
 0xd10   : > { %4395 = vperm.xlu2 %5097, %v4384_v40  }
 0xd11   : > { %v4048_v36 = vmul.f32 %v8159_v43, %v4032_v47  ;;  %v4126_v31 = vsel %vm755_vm0, %v4110_v30, 0.0  ;;  %v4135_v24 = vsel %vm755_vm0, %v4113_v29, 0.0 }
 0xd13   : > { %v4064_v48 = vadd.f32 %v8165_v22, %v4048_v36 }
 0xd15   : > { %v4080_v19 = vmul.f32 %v4064_v48, %v8689_v5 }
 0xd17   : > { %4096 = vst.msk [vmem:[%s8170_s29 + $0x30] sm:$0xff] %vm755_vm0, %v4080_v19 }
 0xd18   : > { %5099 = vset.pattern.permute.xlu2 %v6097_v42 }
 0xd39   : > { %4127 = vadd.xlane.f32.xlu2 %v4126_v31 }
 0xd3b   : > { %v3734_v34 = vpop.xlane.xlu2 %3733  ;;  %v3815_v52 = vpop.xlane.xlu0 %3814 }
 0xd3c   : > { %v3752_v46 = vmul.f32 %v3734_v34, %v6400_v63  ;;  %v3843_v5 = vmul.f32 %v3815_v52, %v6400_v63 }
 0xd3e   : > { %v8202_v42 = vsub.f32 %v8069_v35, %v3752_v46  ;;  %v3859_v7 = vadd.f32 1e-05, %v3843_v5  ;;  %v4116_v35 = vmul.f32 %v8194_v1, %v4080_v19 }
 0xd40   : > { %5283 = vrsqrt.f32 %v3859_v7  ;;  %v3784_v6 = vmul.f32 %v8202_v42, %v8202_v42  ;;  %v4144_v56 = vsel %vm755_vm0, %v4116_v35, 0.0  ;;  %vm3962_vm9 = vweird.f32 %v3859_v7 }
 0xd41   : > { %4136 = vadd.xlane.f32.xlu2 %v4135_v24 }
 0xd42   : > { %v3828_v59 = vsel %vm755_vm0, %v3784_v6, 0.0 }
 0xd43   : > { %v3791_v28 = vpop.xlane.xlu2 %3790  ;;  %3829 = vadd.xlane.f32.xlu1 %v3828_v59  ;;  %v3737_v57 = vpop.xlane.xlu1 %3736 }
 0xd44   : > { %v3835_v14 = vmul.f32 %v3791_v28, %v6400_v63  ;;  %v3753_v55 = vmul.f32 %v3737_v57, %v6400_v63 }
 0xd46   : > { %v5284_v45 = vpop.eup %5283  ;;  %v3851_v4 = vadd.f32 1e-05, %v3835_v14  ;;  %v8212_v18 = vsub.f32 %v8085_v39, %v3753_v55 }
 0xd47   : > { %v3957_v38 = vmul.f32 %v5284_v45, %v3859_v7  ;;  %vm3963_vm8 = vweird.f32 %v5284_v45 }
 0xd48   : > { %5285 = vrsqrt.f32 %v3851_v4  ;;  %v3785_v25 = vmul.f32 %v8212_v18, %v8212_v18  ;;  %vm3964_vm10 = vmor %vm3962_vm9, %vm3963_vm8  ;;  %vm3882_vm11 = vweird.f32 %v3851_v4 }
 0xd49   : > { %v3958_v47 = vmul.f32 %v5284_v45, %v3957_v38  ;;  %4145 = vadd.xlane.f32.xlu2 %v4144_v56 }
 0xd4a   : > { %v3831_v36 = vsel %vm755_vm0, %v3785_v25, 0.0 }
 0xd4b   : > { %v3959_v48 = vmul.f32 0.5, %v3958_v47  ;;  %v3800_v30 = vpop.xlane.xlu2 %3799  ;;  %3832 = vadd.xlane.f32.xlu0 %v3831_v36  ;;  %v3794_v19 = vpop.xlane.xlu1 %3793 }
 0xd4c   : > { %v3838_v31 = vmul.f32 %v3800_v30, %v6400_v63  ;;  %v3836_v39 = vmul.f32 %v3794_v19, %v6400_v63 }
 0xd4d   : > { %v3960_v34 = vsub.f32 1.5, %v3959_v48 }
 0xd4e   : > { %v5286_v52 = vpop.eup %5285  ;;  %v8220_v46 = vadd.f32 1e-05, %v3838_v31  ;;  %v8222_v5 = vadd.f32 1e-05, %v3836_v39 }
 0xd4f   : > { %v3961_v29 = vmul.f32 %v5284_v45, %v3960_v34  ;;  %v3877_v24 = vmul.f32 %v5286_v52, %v3851_v4  ;;  %vm3883_vm3 = vweird.f32 %v5286_v52 }
 0xd50   : > { %5287 = vrsqrt.f32 %v8220_v46  ;;  %vm3884_vm12 = vmor %vm3882_vm11, %vm3883_vm3  ;;  %vm3912_vm13 = vweird.f32 %v8220_v46  ;;  %vm3892_vm14 = vweird.f32 %v8222_v5 }
 0xd51   : > { %v3965_v6 = vsel %vm3964_vm10, %v5284_v45, %v3961_v29  ;;  %v3878_v59 = vmul.f32 %v5286_v52, %v3877_v24  ;;  %5289 = vrsqrt.f32 %v8222_v5 }
 0xd52   : > { %v4035_v28 = vmul.f32 %v3965_v6, %v8065_v33 }
 0xd53   : > { %v3879_v57 = vmul.f32 0.5, %v3878_v59  ;;  %v3809_v14 = vpop.xlane.xlu2 %3808  ;;  %v3803_v55 = vpop.xlane.xlu1 %3802 }
 0xd54   : > { %v3841_v35 = vmul.f32 %v3809_v14, %v6400_v63  ;;  %v3824_v38 = vpop.xlane.xlu0 %3823  ;;  %v3839_v56 = vmul.f32 %v3803_v55, %v6400_v63  ;;  %v4051_v7 = vmul.f32 %v8159_v43, %v4035_v28  ;;  %v4397_v55 = vperm.slane %v8710_v37, 6 }
 0xd55   : > { %v3880_v25 = vsub.f32 1.5, %v3879_v57  ;;  %v3846_v47 = vmul.f32 %v3824_v38, %v6400_v63 }
 0xd56   : > { %v8231_v45 = vpop.eup %5287  ;;  %v8233_v36 = vadd.f32 1e-05, %v3841_v35  ;;  %v8235_v33 = vadd.f32 1e-05, %v3839_v56  ;;  %v4067_v39 = vadd.f32 %v8165_v22, %v4051_v7 }
 0xd57   : > { %v5290_v48 = vpop.eup %5289  ;;  %v3881_v30 = vmul.f32 %v5286_v52, %v3880_v25  ;;  %v3907_v19 = vmul.f32 %v8231_v45, %v8220_v46  ;;  %v8239_v31 = vadd.f32 1e-05, %v3846_v47  ;;  %vm3913_vm2 = vweird.f32 %v8231_v45 }
 0xd58   : > { %v3887_v34 = vmul.f32 %v5290_v48, %v8222_v5  ;;  %5291 = vrsqrt.f32 %v8233_v36  ;;  %v4083_v14 = vmul.f32 %v4067_v39, %v8692_v20  ;;  %vm3893_vm15 = vweird.f32 %v5290_v48  ;;  %vm8277_vm1 = vmor %vm3912_vm13, %vm3913_vm2 }
 0xd59   : > { %v3885_v29 = vsel %vm3884_vm12, %v5286_v52, %v3881_v30  ;;  %v3908_v4 = vmul.f32 %v8231_v45, %v3907_v19  ;;  %5293 = vrsqrt.f32 %v8239_v31  ;;  %vm3942_vm4 = vweird.f32 %v8233_v36  ;;  %vm3894_vm5 = vmor %vm3892_vm14, %vm3893_vm15 }
 0xd5a   : > { %v4027_v24 = vmul.f32 %v3885_v29, %v8074_v44  ;;  %v3888_v6 = vmul.f32 %v5290_v48, %v3887_v34  ;;  %5295 = vrsqrt.f32 %v8235_v33  ;;  %v4119_v56 = vmul.f32 %v8194_v1, %v4083_v14  ;;  %4099 = vst.msk [vmem:[%s8170_s29 + $0x48] sm:$0xff] %vm755_vm0, %v4083_v14 }
 0xd5b   : > { %v3909_v59 = vmul.f32 0.5, %v3908_v4  ;;  %v3818_v28 = vpop.xlane.xlu2 %3817  ;;  %v3812_v57 = vpop.xlane.xlu1 %3811  ;;  %vm3992_vm7 = vweird.f32 %v8239_v31  ;;  %vm3922_vm3 = vweird.f32 %v8235_v33 }
 0xd5c   : > { %v3889_v52 = vmul.f32 0.5, %v3888_v6  ;;  %v3844_v35 = vmul.f32 %v3818_v28, %v6400_v63  ;;  %v3842_v38 = vmul.f32 %v3812_v57, %v6400_v63  ;;  %4389 = vperm.xlu1 %5098, %v4384_v40   ;;  %v4043_v20 = vmul.f32 %v8159_v43, %v4027_v24 }
 0xd5d   : > { %v3910_v44 = vsub.f32 1.5, %v3909_v59  ;;  %v4153_v34 = vsel %vm755_vm0, %v4119_v56, 0.0 }
 0xd5e   : > { %v8260_v7 = vpop.eup %5291  ;;  %v3890_v25 = vsub.f32 1.5, %v3889_v52  ;;  %v8263_v47 = vadd.f32 1e-05, %v3844_v35  ;;  %v8268_v39 = vadd.f32 1e-05, %v3842_v38  ;;  %4154 = vadd.xlane.f32.xlu2 %v4153_v34  ;;  %v4059_v28 = vadd.f32 %v8165_v22, %v4043_v20 }
 0xd5f   : > { %v5294_v30 = vpop.eup %5293  ;;  %v3911_v40 = vmul.f32 %v8231_v45, %v3910_v44  ;;  %v3937_v19 = vmul.f32 %v8260_v7, %v8233_v36  ;;  %4330 = vperm.xlu0 %5096, %v4319_v27   ;;  %vm3943_vm6 = vweird.f32 %v8260_v7 }
 0xd60   : > { %v5296_v29 = vpop.eup %5295  ;;  %v3891_v24 = vmul.f32 %v5290_v48, %v3890_v25  ;;  %v3987_v6 = vmul.f32 %v5294_v30, %v8239_v31  ;;  %5297 = vrsqrt.f32 %v8263_v47  ;;  %vm3993_vm8 = vweird.f32 %v5294_v30  ;;  %vm8319_vm10 = vmor %vm3942_vm4, %vm3943_vm6 }
 0xd61   : > { %v3915_v27 = vsel %vm8277_vm1, %v8231_v45, %v3911_v40  ;;  %v3938_v46 = vmul.f32 %v8260_v7, %v3937_v19  ;;  %v3917_v59 = vmul.f32 %v5296_v29, %v8235_v33  ;;  %5299 = vrsqrt.f32 %v8268_v39  ;;  %v8716_v40 = vld [vmem:[#allocation35_spill] sm:$0xff]  ;;  %vm3994_vm11 = vmor %vm3992_vm7, %vm3993_vm8 }
 0xd62   : > { %v3895_v57 = vsel %vm3894_vm5, %v5290_v48, %v3891_v24  ;;  %v3988_v14 = vmul.f32 %v5294_v30, %v3987_v6  ;;  %v4030_v44 = vmul.f32 %v3915_v27, %v8091_v16  ;;  %v8303_v19 = vmul.f32 %v4059_v28, %v8716_v40  ;;  %v8719_v40 = vld [vmem:[#allocation21_spill] sm:$0xff] }
 0xd63   : > { %v4028_v52 = vmul.f32 %v3895_v57, %v8088_v54  ;;  %v3939_v35 = vmul.f32 0.5, %v3938_v46  ;;  %v3918_v45 = vmul.f32 %v5296_v29, %v3917_v59  ;;  %v3827_v5 = vpop.xlane.xlu2 %3826  ;;  %v3821_v38 = vpop.xlane.xlu1 %3820  ;;  %vm3923_vm9 = vweird.f32 %v5296_v29 }
 0xd64   : > { %v3989_v56 = vmul.f32 0.5, %v3988_v14  ;;  %v3847_v25 = vmul.f32 %v3827_v5, %v6400_v63  ;;  %v3845_v48 = vmul.f32 %v3821_v38, %v6400_v63  ;;  %4402 = vperm.xlu1 %5098, %v4397_v55   ;;  %4091 = vst.msk [vmem:[%s8170_s29 + $0x8] sm:$0xff] %vm755_vm0, %v8303_v19  ;;  %v4046_v14 = vmul.f32 %v8159_v43, %v4030_v44  ;;  %vm3924_vm12 = vmor %vm3922_vm3, %vm3923_vm9 }
 0xd65   : > { %v3940_v20 = vsub.f32 1.5, %v3939_v35  ;;  %v3919_v54 = vmul.f32 0.5, %v3918_v45  ;;  %v4044_v59 = vmul.f32 %v8159_v43, %v4028_v52  ;;  %vm3972_vm2 = vweird.f32 %v8263_v47 }
 0xd66   : > { %v5298_v34 = vpop.eup %5297  ;;  %v3990_v4 = vsub.f32 1.5, %v3989_v56  ;;  %v8305_v24 = vadd.f32 1e-05, %v3847_v25  ;;  %v8307_v16 = vadd.f32 1e-05, %v3845_v48  ;;  %vm3952_vm1 = vweird.f32 %v8268_v39 }
 0xd67   : > { %v3941_v6 = vmul.f32 %v8260_v7, %v3940_v20  ;;  %v3920_v27 = vsub.f32 1.5, %v3919_v54  ;;  %v3967_v46 = vmul.f32 %v5298_v34, %v8263_v47  ;;  %v5300_v35 = vpop.eup %5299  ;;  %v4060_v25 = vadd.f32 %v8165_v22, %v4044_v59 }
 0xd68   : > { %v3991_v57 = vmul.f32 %v5294_v30, %v3990_v4  ;;  %5301 = vrsqrt.f32 %v8305_v24  ;;  %v3947_v33 = vmul.f32 %v5300_v35, %v8268_v39  ;;  %v4062_v20 = vadd.f32 %v8165_v22, %v4046_v14 }
 0xd69   : > { %v3945_v52 = vsel %vm8319_vm10, %v8260_v7, %v3941_v6  ;;  %v3921_v36 = vmul.f32 %v5296_v29, %v3920_v27  ;;  %v3968_v45 = vmul.f32 %v5298_v34, %v3967_v46  ;;  %5303 = vrsqrt.f32 %v8307_v16  ;;  %v8720_v6 = vld [vmem:[#allocation22_spill] sm:$0xff] }
 0xd6a   : > { %v3995_v5 = vsel %vm3994_vm11, %v5294_v30, %v3991_v57  ;;  %v4033_v7 = vmul.f32 %v3945_v52, %v8106_v23  ;;  %v3948_v48 = vmul.f32 %v5300_v35, %v3947_v33  ;;  %vm3973_vm13 = vweird.f32 %v5298_v34 }
 0xd6b   : > { %v4038_v38 = vmul.f32 %v3995_v5, %v8116_v17  ;;  %v3925_v44 = vsel %vm3924_vm12, %v5296_v29, %v3921_v36  ;;  %v3969_v56 = vmul.f32 0.5, %v3968_v45  ;;  %v8343_v17 = vmul.f32 %v4060_v25, %v8719_v40  ;;  %vm3974_vm14 = vmor %vm3972_vm2, %vm3973_vm13  ;;  %v8721_v25 = vld [vmem:[#allocation31_spill] sm:$0xff] }
 0xd6c   : > { %v4031_v31 = vmul.f32 %v3925_v44, %v8103_v49  ;;  %5100 = vset.pattern.permute.xlu1 %v8711_v15  ;;  %v3949_v4 = vmul.f32 0.5, %v3948_v48  ;;  %v8347_v49 = vmul.f32 %v4062_v20, %v8720_v6  ;;  %vm3953_vm15 = vweird.f32 %v5300_v35 }
 0xd6d   : > { %v3970_v30 = vsub.f32 1.5, %v3969_v56  ;;  %v4054_v54 = vmul.f32 %v8159_v43, %v4038_v38  ;;  %4092 = vst.msk [vmem:[%s8170_s29 + $0x10] sm:$0xff] %vm755_vm0, %v8343_v17  ;;  %v4049_v14 = vmul.f32 %v8159_v43, %v4033_v7  ;;  %vm3954_vm4 = vmor %vm3952_vm1, %vm3953_vm15  ;;  %vm4002_vm7 = vweird.f32 %v8305_v24 }
 0xd6e   : > { %v5302_v29 = vpop.eup %5301  ;;  %v4047_v23 = vmul.f32 %v8159_v43, %v4031_v31  ;;  %v3950_v28 = vsub.f32 1.5, %v3949_v4  ;;  %4094 = vst.msk [vmem:[%s8170_s29 + $0x20] sm:$0xff] %vm755_vm0, %v8347_v49  ;;  %vm3982_vm9 = vweird.f32 %v8307_v16 }
 0xd6f   : > { %v5304_v27 = vpop.eup %5303  ;;  %v3971_v46 = vmul.f32 %v5298_v34, %v3970_v30  ;;  %v3997_v15 = vmul.f32 %v5302_v29, %v8305_v24  ;;  %v4070_v59 = vadd.f32 %v8165_v22, %v4054_v54  ;;  %vm4003_vm5 = vweird.f32 %v5302_v29 }
 0xd70   : > { %v3977_v57 = vmul.f32 %v5304_v27, %v8307_v16  ;;  %v4063_v45 = vadd.f32 %v8165_v22, %v4047_v23  ;;  %v3951_v33 = vmul.f32 %v5300_v35, %v3950_v28  ;;  %vm3983_vm6 = vweird.f32 %v5304_v27  ;;  %vm4004_vm8 = vmor %vm4002_vm7, %vm4003_vm5 }
 0xd71   : > { %v3975_v52 = vsel %vm3974_vm14, %v5298_v34, %v3971_v46  ;;  %v3998_v47 = vmul.f32 %v5302_v29, %v3997_v15  ;;  %v4086_v36 = vmul.f32 %v4070_v59, %v8695_v12  ;;  %v4065_v12 = vadd.f32 %v8165_v22, %v4049_v14  ;;  %vm3984_vm10 = vmor %vm3982_vm9, %vm3983_vm6 }
 0xd72   : > { %v4036_v5 = vmul.f32 %v3975_v52, %v8127_v41  ;;  %v3978_v38 = vmul.f32 %v5304_v27, %v3977_v57  ;;  %v4079_v34 = vmul.f32 %v4063_v45, %v8721_v25  ;;  %v3955_v7 = vsel %vm3954_vm4, %v5300_v35, %v3951_v33 }
 0xd73   : > { %v3999_v44 = vmul.f32 0.5, %v3998_v47  ;;  %v4122_v56 = vmul.f32 %v8194_v1, %v4086_v36  ;;  %4102 = vst.msk [vmem:[%s8170_s29 + $0x60] sm:$0xff] %vm755_vm0, %v4086_v36  ;;  %v4034_v41 = vmul.f32 %v3955_v7, %v8124_v50  ;;  %v4081_v35 = vmul.f32 %v4065_v12, %v8690_v21  ;;  %v8423_v7 = vpop.permute.xlu2 %4382 }
 0xd74   : > { %v3979_v31 = vmul.f32 0.5, %v3978_v38  ;;  %v4052_v48 = vmul.f32 %v8159_v43, %v4036_v5  ;;  %4095 = vst.msk [vmem:[%s8170_s29 + $0x28] sm:$0xff] %vm755_vm0, %v4079_v34  ;;  %v4115_v14 = vmul.f32 %v8194_v1, %v4079_v34  ;;  %v4410_v33 = vperm.slane %v8710_v37, 7 }
 0xd75   : > { %v4000_v20 = vsub.f32 1.5, %v3999_v44  ;;  %v4162_v39 = vsel %vm755_vm0, %v4122_v56, 0.0  ;;  %v4050_v50 = vmul.f32 %v8159_v43, %v4034_v41  ;;  %4097 = vst.msk [vmem:[%s8170_s29 + $0x38] sm:$0xff] %vm755_vm0, %v4081_v35  ;;  %v8722_v25 = vmov 0  }
 0xd76   : > { %v3980_v30 = vsub.f32 1.5, %v3979_v31  ;;  %4163 = vadd.xlane.f32.xlu2 %v4162_v39  ;;  %v4068_v54 = vadd.f32 %v8165_v22, %v4052_v48 }
 0xd77   : > { %v4001_v40 = vmul.f32 %v5302_v29, %v4000_v20  ;;  %v4066_v21 = vadd.f32 %v8165_v22, %v4050_v50 }
 0xd78   : > { %v3981_v4 = vmul.f32 %v5304_v27, %v3980_v30  ;;  %v4084_v23 = vmul.f32 %v4068_v54, %v8693_v9 }
 0xd79   : > { %v4005_v6 = vsel %vm4004_vm8, %v5302_v29, %v4001_v40  ;;  %v4082_v59 = vmul.f32 %v4066_v21, %v8691_v51  ;;  %v4112_v51 = vmul.f32 %v8194_v1, %v8343_v17 }
 0xd7a   : > { %v4039_v46 = vmul.f32 %v4005_v6, %v8141_v53  ;;  %v3985_v24 = vsel %vm3984_vm10, %v5304_v27, %v3981_v4  ;;  %4100 = vst.msk [vmem:[%s8170_s29 + $0x50] sm:$0xff] %vm755_vm0, %v4084_v23  ;;  %v4111_v27 = vmul.f32 %v8194_v1, %v8303_v19  ;;  %v4117_v19 = vmul.f32 %v8194_v1, %v4081_v35 }
 0xd7b   : > { %v4037_v15 = vmul.f32 %v3985_v24, %v8138_v32  ;;  %4098 = vst.msk [vmem:[%s8170_s29 + $0x40] sm:$0xff] %vm755_vm0, %v4082_v59  ;;  %v4132_v32 = vsel %vm755_vm0, %v4112_v51, 0.0  ;;  %v4118_v47 = vmul.f32 %v8194_v1, %v4082_v59  ;;  %v8426_v20 = vpop.permute.xlu2 %4395 }
 0xd7c   : > { %v4055_v16 = vmul.f32 %v8159_v43, %v4039_v46  ;;  %v4129_v52 = vsel %vm755_vm0, %v4111_v27, 0.0  ;;  %v4147_v5 = vsel %vm755_vm0, %v4117_v19, 0.0 }
 0xd7d   : > { %v4053_v9 = vmul.f32 %v8159_v43, %v4037_v15  ;;  %v4150_v36 = vsel %vm755_vm0, %v4118_v47, 0.0 }
 0xd7e   : > { %v4071_v29 = vadd.f32 %v8165_v22, %v4055_v16 }
 0xd7f   : > { %v4069_v28 = vadd.f32 %v8165_v22, %v4053_v9 }
 0xd80   : > { %v4087_v57 = vmul.f32 %v4071_v29, %v8696_v10  ;;  %v4114_v10 = vmul.f32 %v8194_v1, %v8347_v49  ;;  %v4120_v49 = vmul.f32 %v8194_v1, %v4084_v23 }
 0xd81   : > { %v4085_v53 = vmul.f32 %v4069_v28, %v8694_v3  ;;  %v4141_v3 = vsel %vm755_vm0, %v4115_v14, 0.0 }
 0xd82   : > { %4103 = vst.msk [vmem:[%s8170_s29 + $0x68] sm:$0xff] %vm755_vm0, %v4087_v57  ;;  %v4138_v17 = vsel %vm755_vm0, %v4114_v10, 0.0  ;;  %v4156_v44 = vsel %vm755_vm0, %v4120_v49, 0.0  ;;  %v4123_v56 = vmul.f32 %v8194_v1, %v4087_v57 }
 0xd83   : > { %4101 = vst.msk [vmem:[%s8170_s29 + $0x58] sm:$0xff] %vm755_vm0, %v4085_v53  ;;  %v4121_v45 = vmul.f32 %v8194_v1, %v4085_v53 }
 0xd84   : > { %v4165_v34 = vsel %vm755_vm0, %v4123_v56, 0.0 }
 0xd85   : > { %v4159_v38 = vsel %vm755_vm0, %v4121_v45, 0.0 }
 0xd89   : > { %4133 = vadd.xlane.f32.xlu0 %v4132_v32 }
 0xd8e   : > { %4130 = vadd.xlane.f32.xlu1 %v4129_v52  ;;  %4415 = vperm.xlu2 %5099, %v4410_v33  }
 0xd91   : > { %4142 = vadd.xlane.f32.xlu0 %v4141_v3 }
 0xd96   : > { %4139 = vadd.xlane.f32.xlu1 %v4138_v17  ;;  %5101 = vset.pattern.permute.xlu2 %v8722_v25 }
 0xd99   : > { %4151 = vadd.xlane.f32.xlu0 %v4150_v36 }
 0xd9e   : > { %4148 = vadd.xlane.f32.xlu1 %v4147_v5 }
 0xda1   : > { %4160 = vadd.xlane.f32.xlu0 %v4159_v38 }
 0xda6   : > { %4157 = vadd.xlane.f32.xlu1 %v4156_v44 }
 0xdac   : > { %v4128_v4 = vpop.xlane.xlu2 %4127 }
 0xdad   : > { %v4190_v24 = vand.u32 2147483647, %v4128_v4 }
 0xdae   : > { %4166 = vadd.xlane.f32.xlu1 %v4165_v34 }
 0xdaf   : > { %v4206_v29 = vsub.f32 0.0, %v4190_v24 }
 0xdb1   : > { %v4222_v27 = vmul.f32 1.442695, %v4206_v29 }
 0xdb4   : > { %v4137_v57 = vpop.xlane.xlu2 %4136 }
 0xdb6   : > { %v3830_v31 = vpop.xlane.xlu1 %3829 }
 0xdb7   : > { %v3848_v12 = vmul.f32 %v3830_v31, %v6400_v63 }
 0xdb9   : > { %v3864_v48 = vadd.f32 1e-05, %v3848_v12 }
 0xdbb   : > { %5305 = vrsqrt.f32 %v3864_v48  ;;  %vm4012_vm11 = vweird.f32 %v3864_v48 }
 0xdbe   : > { %v3833_v41 = vpop.xlane.xlu0 %3832 }
 0xdbf   : > { %v3849_v39 = vmul.f32 %v3833_v41, %v6400_v63  ;;  %v4177_v41 = vmax.f32 %v4137_v57, 0.0 }
 0xdc1   : > { %v3865_v30 = vadd.f32 1e-05, %v3849_v39  ;;  %v5306_v35 = vpop.eup %5305  ;;  %v8456_v39 = vpop.xlane.xlu2 %4145 }
 0xdc2   : > { %v4007_v54 = vmul.f32 %v5306_v35, %v3864_v48  ;;  %vm4013_vm3 = vweird.f32 %v5306_v35 }
 0xdc3   : > { %5307 = vrsqrt.f32 %v3865_v30  ;;  %vm4014_vm12 = vmor %vm4012_vm11, %vm4013_vm3  ;;  %vm4022_vm2 = vweird.f32 %v3865_v30 }
 0xdc4   : > { %v4008_v40 = vmul.f32 %v5306_v35, %v4007_v54  ;;  %5309 = vpow2.f32 %v4222_v27 }
 0xdc6   : > { %v4009_v50 = vmul.f32 0.5, %v4008_v40 }
 0xdc7   : > { %4421 = vperm.xlu1 %5100, %v4410_v33  }
 0xdc8   : > { %v4010_v23 = vsub.f32 1.5, %v4009_v50 }
 0xdc9   : > { %v5308_v6 = vpop.eup %5307 }
 0xdca   : > { %v4011_v21 = vmul.f32 %v5306_v35, %v4010_v23  ;;  %v4017_v46 = vmul.f32 %v5308_v6, %v3865_v30  ;;  %vm4023_vm13 = vweird.f32 %v5308_v6 }
 0xdcb   : > { %vm4024_vm14 = vmor %vm4022_vm2, %vm4023_vm13 }
 0xdcc   : > { %v4015_v15 = vsel %vm4014_vm12, %v5306_v35, %v4011_v21  ;;  %v4018_v59 = vmul.f32 %v5308_v6, %v4017_v46  ;;  %v4196_v35 = vand.u32 2147483647, %v8456_v39 }
 0xdcd   : > { %v4040_v63 = vmul.f32 %v4015_v15, %v8202_v42  ;;  %v4193_v42 = vand.u32 2147483647, %v4137_v57 }
 0xdce   : > { %v4019_v16 = vmul.f32 0.5, %v4018_v59  ;;  %v8446_v44 = vpop.permute.xlu1 %4389 }
 0xdcf   : > { %5102 = vset.pattern.permute.xlu1 %v8722_v25  ;;  %v4056_v9 = vmul.f32 %v8159_v43, %v4040_v63  ;;  %v4209_v17 = vsub.f32 0.0, %v4193_v42 }
 0xdd0   : > { %v4020_v28 = vsub.f32 1.5, %v4019_v16 }
 0xdd1   : > { %v4072_v53 = vadd.f32 %v8165_v22, %v4056_v9  ;;  %v4228_v19 = vmul.f32 1.442695, %v4209_v17  ;;  %v8466_v24 = vpop.xlane.xlu2 %4154 }
 0xdd2   : > { %v4021_v51 = vmul.f32 %v5308_v6, %v4020_v28  ;;  %v4199_v63 = vand.u32 2147483647, %v8466_v24 }
 0xdd3   : > { %v4088_v32 = vmul.f32 %v4072_v53, %v8697_v0  ;;  %5311 = vpow2.f32 %v4228_v19 }
 0xdd4   : > { %v4025_v14 = vsel %vm4024_vm14, %v5308_v6, %v4021_v51  ;;  %v4215_v51 = vsub.f32 0.0, %v4199_v63 }
 0xdd5   : > { %v4041_v52 = vmul.f32 %v4025_v14, %v8212_v18  ;;  %v4124_v3 = vmul.f32 %v8194_v1, %v4088_v32  ;;  %4104 = vst.msk [vmem:[%s8170_s29 + $0x70] sm:$0xff] %vm755_vm0, %v4088_v32  ;;  %v5310_v18 = vpop.eup %5309 }
 0xdd6   : > { %v4254_v33 = vadd.f32 1.0, %v5310_v18  ;;  %v8453_v31 = vpop.permute.xlu1 %4402  ;;  %v4240_v17 = vmul.f32 1.442695, %v4215_v51 }
 0xdd7   : > { %v4168_v10 = vsel %vm755_vm0, %v4124_v3, 0.0  ;;  %v4057_v47 = vmul.f32 %v8159_v43, %v4041_v52 }
 0xdd8   : > { %4169 = vadd.xlane.f32.xlu0 %v4168_v10  ;;  %5313 = vlog2.f32 %v4254_v33 }
 0xdd9   : > { %v4073_v36 = vadd.f32 %v8165_v22, %v4057_v47  ;;  %v5312_v43 = vpop.eup %5311  ;;  %v4174_v22 = vmax.f32 %v4128_v4, 0.0 }
 0xdda   : > { %v4257_v38 = vadd.f32 1.0, %v5312_v43 }
 0xddb   : > { %v4089_v0 = vmul.f32 %v4073_v36, %v8699_v26 }
 0xddc   : > { %5315 = vlog2.f32 %v4257_v38 }
 0xddd   : > { %v4125_v45 = vmul.f32 %v8194_v1, %v4089_v0  ;;  %4105 = vst.msk [vmem:[%s8170_s29 + $0x78] sm:$0xff] %vm755_vm0, %v4089_v0  ;;  %v8450_v1 = vpop.permute.xlu0 %4330 }
 0xdde   : > { %v5314_v49 = vpop.eup %5313 }
 0xddf   : > { %v4171_v5 = vsel %vm755_vm0, %v4125_v45, 0.0  ;;  %v4271_v26 = vmul.f32 0.6931472, %v5314_v49 }
 0xde0   : > { %4172 = vadd.xlane.f32.xlu2 %v4171_v5 }
 0xde1   : > { %v4302_v56 = vadd.f32 %v4271_v26, %v4174_v22 }
 0xde2   : > { %v5316_v34 = vpop.eup %5315 }
 0xde3   : > { %v4439_v12 = vmul.f32 %v7992_v60, %v4302_v56  ;;  %v4277_v48 = vmul.f32 0.6931472, %v5316_v34 }
 0xde5   : > { %v4305_v37 = vadd.f32 %v4277_v48, %v4177_v41 }
 0xde7   : > { %v4442_v40 = vmul.f32 %v8002_v58, %v4305_v37 }
 0xde9   : > { %v8475_v14 = vpop.xlane.xlu2 %4163 }
 0xdea   : > { %v4202_v45 = vand.u32 2147483647, %v8475_v14 }
 0xdec   : > { %4408 = vperm.xlu0 %5096, %v4397_v55  }
 0xdf4   : > { %5103 = vset.pattern.permute.xlu0 %v8722_v25  ;;  %v4212_v25 = vsub.f32 0.0, %v4196_v35 }
 0xdf6   : > { %v4234_v46 = vmul.f32 1.442695, %v4212_v25 }
 0xdf8   : > { %4472 = vperm.xlu2 %5101, %v4439_v12   ;;  %v4218_v12 = vsub.f32 0.0, %v4202_v45 }
 0xdfc   : > { %v4134_v55 = vpop.xlane.xlu0 %4133 }
 0xdfd   : > { %v4192_v30 = vand.u32 2147483647, %v4134_v55  ;;  %v4176_v43 = vmax.f32 %v4134_v55, 0.0 }
 0xdff   : > { %v4208_v54 = vsub.f32 0.0, %v4192_v30 }
 0xe00   : > { %4481 = vperm.xlu2 %5101, %v4442_v40  }
 0xe01   : > { %v4226_v50 = vmul.f32 1.442695, %v4208_v54  ;;  %v8460_v4 = vpop.xlane.xlu1 %4130 }
 0xe02   : > { %v4191_v60 = vand.u32 2147483647, %v8460_v4  ;;  %v4175_v55 = vmax.f32 %v8460_v4, 0.0 }
 0xe03   : > { %5317 = vpow2.f32 %v4226_v50 }
 0xe04   : > { %v4207_v23 = vsub.f32 0.0, %v4191_v60  ;;  %v8463_v6 = vpop.xlane.xlu0 %4142 }
 0xe05   : > { %v4195_v21 = vand.u32 2147483647, %v8463_v6 }
 0xe06   : > { %v4224_v15 = vmul.f32 1.442695, %v4207_v23  ;;  %v4246_v23 = vmul.f32 1.442695, %v4218_v12 }
 0xe07   : > { %v4211_v59 = vsub.f32 0.0, %v4195_v21 }
 0xe08   : > { %5319 = vpow2.f32 %v4224_v15 }
 0xe09   : > { %v5318_v58 = vpop.eup %5317  ;;  %v4232_v16 = vmul.f32 1.442695, %v4211_v59  ;;  %v8469_v9 = vpop.xlane.xlu1 %4139  ;;  %5321 = vpow2.f32 %v4234_v46 }
 0xe0a   : > { %v4256_v29 = vadd.f32 1.0, %v5318_v58  ;;  %v4194_v28 = vand.u32 2147483647, %v8469_v9 }
 0xe0b   : > { %5323 = vpow2.f32 %v4232_v16 }
 0xe0c   : > { %5325 = vlog2.f32 %v4256_v29  ;;  %v4210_v57 = vsub.f32 0.0, %v4194_v28  ;;  %v8472_v53 = vpop.xlane.xlu0 %4151 }
 0xe0d   : > { %v4198_v32 = vand.u32 2147483647, %v8472_v53 }
 0xe0e   : > { %v5320_v27 = vpop.eup %5319  ;;  %v4230_v42 = vmul.f32 1.442695, %v4210_v57 }
 0xe0f   : > { %v4255_v52 = vadd.f32 1.0, %v5320_v27  ;;  %v4214_v3 = vsub.f32 0.0, %v4198_v32  ;;  %v5322_v10 = vpop.eup %5321 }
 0xe10   : > { %5327 = vpow2.f32 %v4230_v42  ;;  %v4260_v33 = vadd.f32 1.0, %v5322_v10 }
 0xe11   : > { %v5324_v47 = vpop.eup %5323  ;;  %5329 = vlog2.f32 %v4255_v52  ;;  %v4238_v36 = vmul.f32 1.442695, %v4214_v3  ;;  %v8477_v0 = vpop.xlane.xlu1 %4148 }
 0xe12   : > { %v5326_v19 = vpop.eup %5325  ;;  %v4259_v18 = vadd.f32 1.0, %v5324_v47  ;;  %v4197_v5 = vand.u32 2147483647, %v8477_v0 }
 0xe13   : > { %v4275_v38 = vmul.f32 0.6931472, %v5326_v19  ;;  %5331 = vpow2.f32 %v4238_v36 }
 0xe14   : > { %5333 = vlog2.f32 %v4259_v18  ;;  %v4213_v49 = vsub.f32 0.0, %v4197_v5  ;;  %v8481_v26 = vpop.xlane.xlu0 %4160 }
 0xe15   : > { %v4304_v22 = vadd.f32 %v4275_v38, %v4176_v43  ;;  %v4201_v56 = vand.u32 2147483647, %v8481_v26  ;;  %5335 = vpow2.f32 %v4240_v17  ;;  %v4182_v17 = vmax.f32 %v8472_v53, 0.0 }
 0xe16   : > { %v5328_v34 = vpop.eup %5327  ;;  %v4236_v48 = vmul.f32 1.442695, %v4213_v49  ;;  %5337 = vlog2.f32 %v4260_v33 }
 0xe17   : > { %v5330_v41 = vpop.eup %5329  ;;  %v4441_v37 = vmul.f32 %v8055_v62, %v4304_v22  ;;  %v4258_v30 = vadd.f32 1.0, %v5328_v34  ;;  %v4217_v35 = vsub.f32 0.0, %v4201_v56  ;;  %v4179_v62 = vmax.f32 %v8463_v6, 0.0 }
 0xe18   : > { %v4273_v54 = vmul.f32 0.6931472, %v5330_v41  ;;  %5339 = vpow2.f32 %v4236_v48  ;;  %v4178_v6 = vmax.f32 %v8469_v9, 0.0  ;;  %v4180_v9 = vmax.f32 %v8456_v39, 0.0 }
 0xe19   : > { %v5332_v40 = vpop.eup %5331  ;;  %5341 = vlog2.f32 %v4258_v30  ;;  %v4244_v50 = vmul.f32 1.442695, %v4217_v35  ;;  %4478 = vperm.xlu0 %5103, %v4441_v37   ;;  %v8486_v25 = vpop.xlane.xlu1 %4157  ;;  %v4181_v56 = vmax.f32 %v8477_v0, 0.0  ;;  %v4185_v48 = vmax.f32 %v8481_v26, 0.0 }
 0xe1a   : > { %v5334_v60 = vpop.eup %5333  ;;  %v4303_v21 = vadd.f32 %v4273_v54, %v4175_v55  ;;  %v4262_v46 = vadd.f32 1.0, %v5332_v40  ;;  %v4200_v15 = vand.u32 2147483647, %v8486_v25  ;;  %v4183_v35 = vmax.f32 %v8466_v24, 0.0 }
 0xe1b   : > { %v4281_v59 = vmul.f32 0.6931472, %v5334_v60  ;;  %5343 = vpow2.f32 %v4244_v50  ;;  %v5336_v58 = vpop.eup %5335  ;;  %v4184_v40 = vmax.f32 %v8486_v25, 0.0 }
 0xe1c   : > { %v4440_v4 = vmul.f32 %v8450_v1, %v4303_v21  ;;  %5345 = vlog2.f32 %v4262_v46  ;;  %v4216_v63 = vsub.f32 0.0, %v4200_v15  ;;  %v5338_v16 = vpop.eup %5337  ;;  %v4263_v32 = vadd.f32 1.0, %v5336_v58  ;;  %v4416_v58 = vpop.permute.xlu2 %4415 }
 0xe1d   : > { %v4307_v29 = vadd.f32 %v4281_v59, %v4179_v62  ;;  %5347 = vpow2.f32 %v4246_v23  ;;  %v4283_v45 = vmul.f32 0.6931472, %v5338_v16  ;;  %v4186_v21 = vmax.f32 %v8475_v14, 0.0 }
 0xe1e   : > { %v5340_v28 = vpop.eup %5339  ;;  %v4242_v57 = vmul.f32 1.442695, %v4216_v63  ;;  %4475 = vperm.xlu1 %5102, %v4440_v4  }
 0xe1f   : > { %v5342_v51 = vpop.eup %5341  ;;  %v4444_v27 = vmul.f32 %v8008_v2, %v4307_v29  ;;  %v4261_v42 = vadd.f32 1.0, %v5340_v28  ;;  %v4308_v22 = vadd.f32 %v4283_v45, %v4180_v9 }
 0xe20   : > { %v4279_v52 = vmul.f32 0.6931472, %v5342_v51  ;;  %5349 = vpow2.f32 %v4242_v57 }
 0xe21   : > { %v5344_v3 = vpop.eup %5343  ;;  %5351 = vlog2.f32 %v4261_v42  ;;  %4487 = vperm.xlu2 %5101, %v4444_v27   ;;  %v4445_v39 = vmul.f32 %v8061_v8, %v4308_v22  ;;  %v4167_v24 = vpop.xlane.xlu1 %4166 }
 0xe22   : > { %v5346_v1 = vpop.eup %5345  ;;  %v4306_v10 = vadd.f32 %v4279_v52, %v4178_v6  ;;  %v4265_v47 = vadd.f32 1.0, %v5344_v3  ;;  %5353 = vlog2.f32 %v4263_v32  ;;  %v4203_v15 = vand.u32 2147483647, %v4167_v24 }
 0xe23   : > { %v4287_v36 = vmul.f32 0.6931472, %v5346_v1  ;;  %v5348_v19 = vpop.eup %5347  ;;  %v4187_v42 = vmax.f32 %v4167_v24, 0.0 }
 0xe24   : > { %v4443_v18 = vmul.f32 %v8057_v13, %v4306_v10  ;;  %5355 = vlog2.f32 %v4265_v47  ;;  %v4266_v43 = vadd.f32 1.0, %v5348_v19  ;;  %v4219_v62 = vsub.f32 0.0, %v4203_v15 }
 0xe25   : > { %v4310_v2 = vadd.f32 %v4287_v36, %v4182_v17 }
 0xe26   : > { %v5350_v5 = vpop.eup %5349  ;;  %4484 = vperm.xlu1 %5102, %v4443_v18   ;;  %v4248_v25 = vmul.f32 1.442695, %v4219_v62 }
 0xe27   : > { %v5352_v33 = vpop.eup %5351  ;;  %v4447_v38 = vmul.f32 %v8059_v11, %v4310_v2  ;;  %v4264_v49 = vadd.f32 1.0, %v5350_v5 }
 0xe28   : > { %v4285_v53 = vmul.f32 0.6931472, %v5352_v33  ;;  %v5354_v34 = vpop.eup %5353 }
 0xe29   : > { %5357 = vlog2.f32 %v4264_v49  ;;  %4496 = vperm.xlu2 %5101, %v4447_v38   ;;  %v4289_v37 = vmul.f32 0.6931472, %v5354_v34 }
 0xe2a   : > { %v5356_v12 = vpop.eup %5355  ;;  %v4309_v13 = vadd.f32 %v4285_v53, %v4181_v56  ;;  %5359 = vlog2.f32 %v4266_v43 }
 0xe2b   : > { %v4293_v41 = vmul.f32 0.6931472, %v5356_v12  ;;  %v4311_v54 = vadd.f32 %v4289_v37, %v4183_v35  ;;  %5361 = vpow2.f32 %v4248_v25 }
 0xe2c   : > { %v4446_v30 = vmul.f32 %v8019_v61, %v4309_v13 }
 0xe2d   : > { %v4313_v11 = vadd.f32 %v4293_v41, %v4185_v48  ;;  %v4448_v8 = vmul.f32 %v8423_v7, %v4311_v54 }
 0xe2e   : > { %4490 = vperm.xlu1 %5102, %v4445_v39   ;;  %4493 = vperm.xlu0 %5103, %v4446_v30  }
 0xe2f   : > { %v5358_v0 = vpop.eup %5357  ;;  %v4450_v55 = vmul.f32 %v8426_v20, %v4313_v11 }
 0xe30   : > { %v4291_v50 = vmul.f32 0.6931472, %v5358_v0  ;;  %v5360_v60 = vpop.eup %5359 }
 0xe31   : > { %4505 = vperm.xlu2 %5101, %v4450_v55   ;;  %v4295_v23 = vmul.f32 0.6931472, %v5360_v60  ;;  %v5362_v59 = vpop.eup %5361 }
 0xe32   : > { %v4312_v26 = vadd.f32 %v4291_v50, %v4184_v40  ;;  %v4267_v7 = vadd.f32 1.0, %v5362_v59 }
 0xe33   : > { %v4314_v46 = vadd.f32 %v4295_v23, %v4186_v21 }
 0xe34   : > { %v4449_v61 = vmul.f32 %v8446_v44, %v4312_v26  ;;  %5363 = vlog2.f32 %v4267_v7 }
 0xe35   : > { %v4451_v20 = vmul.f32 %v8453_v31, %v4314_v46 }
 0xe36   : > { %4499 = vperm.xlu1 %5102, %v4448_v8   ;;  %4502 = vperm.xlu0 %5103, %v4449_v61  }
 0xe39   : > { %v4422_v9 = vpop.permute.xlu1 %4421 }
 0xe3a   : > { %v5364_v28 = vpop.eup %5363 }
 0xe3b   : > { %v4297_v27 = vmul.f32 0.6931472, %v5364_v28 }
 0xe3d   : > { %v4315_v6 = vadd.f32 %v4297_v27, %v4187_v42 }
 0xe3e   : > { %4508 = vperm.xlu1 %5102, %v4451_v20  }
 0xe4b   : > { %v4170_v4 = vpop.xlane.xlu0 %4169 }
 0xe4c   : > { %v4204_v63 = vand.u32 2147483647, %v4170_v4  ;;  %v4188_v17 = vmax.f32 %v4170_v4, 0.0 }
 0xe4e   : > { %v4220_v16 = vsub.f32 0.0, %v4204_v63 }
 0xe50   : > { %v4250_v44 = vmul.f32 1.442695, %v4220_v16 }
 0xe52   : > { %5365 = vpow2.f32 %v4250_v44 }
 0xe53   : > { %v4173_v14 = vpop.xlane.xlu2 %4172 }
 0xe54   : > { %v4205_v29 = vand.u32 2147483647, %v4173_v14  ;;  %v4189_v2 = vmax.f32 %v4173_v14, 0.0 }
 0xe56   : > { %v4221_v57 = vsub.f32 0.0, %v4205_v29 }
 0xe58   : > { %v5366_v51 = vpop.eup %5365  ;;  %v4252_v32 = vmul.f32 1.442695, %v4221_v57 }
 0xe59   : > { %v4268_v31 = vadd.f32 1.0, %v5366_v51 }
 0xe5a   : > { %5367 = vpow2.f32 %v4252_v32 }
 0xe5b   : > { %5369 = vlog2.f32 %v4268_v31 }
 0xe5e   : > { %v4409_v52 = vpop.permute.xlu0 %4408 }
 0xe5f   : > { %v4452_v3 = vmul.f32 %v4409_v52, %v4315_v6 }
 0xe60   : > { %v5368_v1 = vpop.eup %5367 }
 0xe61   : > { %v5370_v10 = vpop.eup %5369  ;;  %v4269_v47 = vadd.f32 1.0, %v5368_v1  ;;  %4511 = vperm.xlu0 %5103, %v4452_v3  }
 0xe62   : > { %v4299_v36 = vmul.f32 0.6931472, %v5370_v10 }
 0xe63   : > { %5371 = vlog2.f32 %v4269_v47 }
 0xe64   : > { %v4316_v19 = vadd.f32 %v4299_v36, %v4188_v17 }
 0xe66   : > { %v4453_v45 = vmul.f32 %v4416_v58, %v4316_v19 }
 0xe68   : > { %4514 = vperm.xlu2 %5101, %v4453_v45  }
 0xe69   : > { %v5372_v18 = vpop.eup %5371 }
 0xe6a   : > { %v4301_v5 = vmul.f32 0.6931472, %v5372_v18 }
 0xe6c   : > { %v4317_v33 = vadd.f32 %v4301_v5, %v4189_v2 }
 0xe6e   : > { %v4454_v43 = vmul.f32 %v4422_v9, %v4317_v33 }
 0xe6f   : > { %5494 = shalt.err (!%p5491_p10)
}
 0xe70   : > { %s5587_s29 = smov 128   ;;  %s5588_s22 = smov 8   ;;  %4517 = vperm.xlu1 %5102, %v4454_v43   ;;  %v4473_v38 = vpop.permute.xlu2 %4472  ;;  %v8724_v39 = vlaneseq  ;;  %vm4524_vm0 = vcmask 130112   ;;  %vm4547_vm15 = vcmask 1041409   ;;  %vm4549_vm1 = vcmask 1042434  }
 0xe71   : > { %4999 = dma.vmem_to_hbm [thread:$0]  (%p5733_p4), %s4598_s27, 2048, %s4600_s17, %s4570_s6, %s5587_s29, %s5587_s29, %s5588_s22   ;;  %vm4551_vm4 = vcmask 1043459   ;;  %vm4553_vm5 = vcmask 1044484   ;;  %vm4555_vm6 = vcmask 1045509   ;;  %vm4557_vm7 = vcmask 1046534  }
 0xe72   : > { %v4520_v37 = vand.u32 127, %v8724_v39  ;;  %s8725_s17 = sld [smem:[#allocation40_spill]]  ;;  %s539_s25 = scalar_lea.vmem [#allocation8], %s4745_s18  ;;  %vm4559_vm8 = vcmask 1047559   ;;  %vm4562_vm9 = vcmask 130048  }
 0xe73   : > { %s4582_s14 = sshll.u32 %s539_s25, 4  ;;  %s4583_s14 = int_to_ptr.vmem [resolvable:$true] %s4582_s14 }
 0xe74   : > { %v4522_v11 = vadd.s32 4294967288, %v4520_v37  ;;  %v4521_v54 = vperm.slane %v4473_v38, %v4520_v37 }
 0xe78   : > { %v4482_v22 = vpop.permute.xlu2 %4481  ;;  %s4580_s6 = scalar_lea.hbm %s8725_s17, %s5779_s13  ;;  %s4565_s13 = scalar_lea.sflag [#allocation4], %s5764_s23 }
 0xe79   : > { %v4527_v61 = vperm.slane %v4482_v22, %v4522_v11  ;;  %s4584_s20 = sshll.u32 %s4580_s6, 4  ;;  %s5515_s2 = scalar_lea.hbm %s8725_s17, 16  ;;  %s4585_s20 = int_to_ptr.hbm [resolvable:$true] %s4584_s20 }
 0xe7a   : > { %s5509_s15 = sshra.s32 %s4585_s20, 4  ;;  %s5510_s15 = int_to_ptr.hbm [resolvable:$true] %s5509_s15 }
 0xe7b   : > { %s5511_s21 = scalar_lea.hbm %s5510_s15, 8  ;;  %p5516_p2 = scmp.lt.s32.totalorder %s5510_s15, %s8725_s17 }
 0xe7c   : > { %p5512_p13 = scmp.ne.s32.totalorder %s5510_s15, %s5511_s21  ;;  %p5517_p3 = scmp.lt.s32.totalorder %s5515_s2, %s5511_s21 }
 0xe7e   : > { %p5513_p11 = pnand %p5512_p13, %p5733_p4  ;;  %p5518_p1 = por %p5517_p3, %p5516_p2 }
 0xe80   : > { %v4488_v34 = vpop.permute.xlu2 %4487  ;;  %p5514_p0 = pneg %p5513_p11 }
 0xe81   : > { %v4530_v26 = vperm.slane %v4488_v34, %v4522_v11 }
 0xe82   : > { %p5519_p5 = pnand %p5518_p1, %p5514_p0 }
 0xe88   : > { %v4497_v48 = vpop.permute.xlu2 %4496 }
 0xe89   : > { %v4535_v46 = vperm.slane %v4497_v48, %v4520_v37 }
 0xe8b   : > { %v4479_v53 = vpop.permute.xlu0 %4478 }
 0xe8c   : > { %v4526_v40 = vperm.slane %v4479_v53, %v4520_v37 }
 0xe8e   : > { %v4528_v20 = vsel %vm4524_vm0, %v4527_v61, %v4526_v40 }
 0xe90   : > { %v4476_v49 = vpop.permute.xlu1 %4475  ;;  %v4506_v0 = vpop.permute.xlu2 %4505 }
 0xe91   : > { %v4523_v35 = vperm.slane %v4476_v49, %v4522_v11  ;;  %v4539_v7 = vperm.slane %v4506_v0, %v4522_v11 }
 0xe93   : > { %v4525_v21 = vsel %vm4524_vm0, %v4523_v35, %v4521_v54 }
 0xe94   : > { %v4548_v59 = vsel %vm4547_vm15, %v4528_v20, %v4525_v21 }
 0xe98   : > { %v4485_v56 = vpop.permute.xlu1 %4484 }
 0xe99   : > { %v4529_v55 = vperm.slane %v4485_v56, %v4520_v37 }
 0xe9b   : > { %v4531_v15 = vsel %vm4524_vm0, %v4530_v26, %v4529_v55 }
 0xe9c   : > { %v4550_v63 = vsel %vm4549_vm1, %v4531_v15, %v4548_v59 }
 0xea0   : > { %v4491_v12 = vpop.permute.xlu1 %4490  ;;  %v4494_v13 = vpop.permute.xlu0 %4493 }
 0xea1   : > { %v4533_v50 = vperm.slane %v4494_v13, %v4522_v11  ;;  %v4532_v60 = vperm.slane %v4491_v12, %v4520_v37 }
 0xea3   : > { %v4534_v62 = vsel %vm4524_vm0, %v4533_v50, %v4532_v60 }
 0xea4   : > { %v4552_v16 = vsel %vm4551_vm4, %v4534_v62, %v4550_v63 }
 0xea8   : > { %v4500_v41 = vpop.permute.xlu1 %4499  ;;  %v4503_v30 = vpop.permute.xlu0 %4502 }
 0xea9   : > { %v4536_v8 = vperm.slane %v4500_v41, %v4522_v11  ;;  %v4538_v25 = vperm.slane %v4503_v30, %v4520_v37 }
 0xeab   : > { %v4537_v58 = vsel %vm4524_vm0, %v4536_v8, %v4535_v46  ;;  %v4540_v29 = vsel %vm4524_vm0, %v4539_v7, %v4538_v25 }
 0xeac   : > { %v4554_v28 = vsel %vm4553_vm5, %v4537_v58, %v4552_v16 }
 0xead   : > { %v4556_v27 = vsel %vm4555_vm6, %v4540_v29, %v4554_v28 }
 0xeb0   : > { %v4509_v23 = vpop.permute.xlu1 %4508 }
 0xeb1   : > { %v4541_v44 = vperm.slane %v4509_v23, %v4520_v37 }
 0xec2   : > { %v4515_v14 = vpop.permute.xlu2 %4514 }
 0xec3   : > { %v4544_v32 = vperm.slane %v4515_v14, %v4520_v37 }
 0xed3   : > { %v4512_v24 = vpop.permute.xlu0 %4511 }
 0xed4   : > { %v4542_v4 = vperm.slane %v4512_v24, %v4522_v11 }
 0xed6   : > { %v4543_v57 = vsel %vm4524_vm0, %v4542_v4, %v4541_v44 }
 0xed7   : > { %v4558_v42 = vsel %vm4557_vm7, %v4543_v57, %v4556_v27 }
 0xee2   : > { %v4518_v51 = vpop.permute.xlu1 %4517 }
 0xee3   : > { %v4545_v31 = vperm.slane %v4518_v51, %v4522_v11 }
 0xee5   : > { %v4546_v6 = vsel %vm4524_vm0, %v4545_v31, %v4544_v32 }
 0xee6   : > { %v4560_v52 = vsel %vm4559_vm8, %v4546_v6, %v4558_v42 }
 0xee7   : > { %4563 = vst.msk [vmem:[%s539_s25] sm:$0xff] %vm4562_vm9, %v4560_v52 }
 0xee8   : > { %5522 = shalt.err (!%p5519_p5)
}
 0xee9   : > { %4998 = dma.vmem_to_hbm [thread:$0]  (%p5733_p4), %s4583_s14, 128, %s4585_s20, %s4565_s13  }
 0xeea PF: > { %s8726_s23 = sld [smem:[#allocation15_spill]]  ;;  %p8728_p12 = scmp.ge.s32.totalorder %s5569_s16, 2 }
 0xeec   : > { %p5014_p7 = pnand %p8728_p12, %p5737_p6 }
 0xeee   : > { %p5015_p8 = pneg %p5014_p7 }
 0xef0   : > { %s4614_s27 = sand.u32 1, %s8726_s23  }
 0xef1   : > { %s4615_s6 = scalar_lea.sflag [#allocation4], %s4614_s27 }
 0xef2   : > { %5548 = dma.done.wait (%p5015_p8), %s4615_s6, 128  }
 0xef3   : > { %5550 = vsyncadd (%p5015_p8), %s4615_s6, 4294967168  ;;  %s4625_s25 = scalar_lea.sflag [#allocation10], %s4614_s27 }
 0xef4   : > { %5552 = dma.done.wait (%p5015_p8), %s4625_s25, 2048  }
 0xef5   : > { %5554 = vsyncadd (%p5015_p8), %s4625_s25, 4294965248  ;;  %s8729_s16 = sld [smem:[#allocation17_spill]]  ;;  %s8732_s29 = smov %s5561_s30 }
 0xef6   : > { %s8730_s15 = sld [smem:[#allocation16_spill]] }
 0xef7   : > { %s8731_s26 = sld [smem:[#allocation18_spill]] }
 0xefb   : > { %p32_p4 = scmp.ge.s32.totalorder %s8729_s16, 4  }
 0xefc   : > { %s8733_s30 = smov %s8730_s15 }
 0xefd   : > { %s8734_s15 = smov %s8731_s26  ;;  %34 = sbr.rel (!%p32_p4) target bundleno = 13 (0xd), region = 154 }
 0xf02   :  { %4631 = vsyncpa [#allocation3], 1 }
 0xf03   :  { %4633 = vsyncpa [#allocation3 + $0x1], 1 }
 0xf04   :  { %4634 = vsyncpa [#allocation6], 1 }
 0xf05   :  { %4635 = vsyncpa [#allocation4], 1 }
 0xf06   :  { %4637 = vsyncpa [#allocation4 + $0x1], 1 }
 0xf07   :  { %4638 = vsyncpa [#allocation10], 1 }
 0xf08   :  { %4640 = vsyncpa [#allocation10 + $0x1], 1 }

</bundles_post_ra>
